<compile_context>
chip_gen: v7x
topology: tpu7x:2x2x1
jax: 0.10.0
libtpu: 0.0.40
codegen_flags: <defaults>
</compile_context>

<pallas_src>
import functools

import jax
import jax.numpy as jnp
from jax import lax
from jax.experimental import pallas as pl
from jax.experimental.pallas import tpu as pltpu

NEG_SLOPE = 0.01        # F.leaky_relu default
NEG_SLOPE_GAT = 0.2     # GATConv internal leaky_relu
BN_EPS = 1e-5
MASK_NEG = -1e30        # safe: every node has a self loop, so a row max exists


# ----------------------------- in-kernel math ------------------------------

def _softplus(x):
    # numerically-stable softplus (matches torch.nn.Softplus, beta=1)
    return jnp.maximum(x, 0.0) + jnp.log1p(jnp.exp(-jnp.abs(x)))


def _leaky_relu(x, slope):
    return jnp.where(x >= 0.0, x, slope * x)


def _round_up(x, m):
    return (x + m - 1) // m * m


# ------------------------------ fused kernel --------------------------------

def _make_kernel(w_layout, v_layout, heads, d_x, outdim):
    """Builds the fused kernel closed over static slab layouts / dims."""

    def kernel(anorm_ref, xin_ref, w_slab_ref, v_slab_ref, xf_ref, probs_ref):
        f32 = jnp.float32
        bf16 = jnp.bfloat16

        def w(name):                       # bf16 matmul operand from weight slab
            r0, r, c = w_layout[name]
            return w_slab_ref[r0:r0 + r, 0:c]

        def v(name):                       # f32 (1, c) row from vector slab
            i, c = v_layout[name]
            return v_slab_ref[i:i + 1, 0:c]

        def mm(a, wmat):                   # bf16 MXU matmul, f32 accumulation
            return jnp.dot(a.astype(bf16), wmat, preferred_element_type=f32)

        def linear(x, wname, bname):
            return mm(x, w(wname)) + v(bname)

        def bn_lrelu(x, sname, tname):
            # eval-mode BatchNorm1d folded into scale/shift, then leaky_relu
            return _leaky_relu(x * v(sname) + v(tname), NEG_SLOPE)

        anorm = anorm_ref[...]             # (N, N) f32, D^-1/2 (A+I) D^-1/2
        # Edge mask is implied by anorm (>0 iff edge or self loop): one shared
        # additive bias replaces 15 per-head compare+selects.
        att_bias = jnp.where(anorm > 0.0, 0.0, MASK_NEG)
        anorm_bf = anorm.astype(bf16)

        def gcn(parts, wnames, bname):
            # GCNConv: A_norm @ (concat(parts) @ W) + b, W pre-split per part
            xw = mm(parts[0], w(wnames[0]))
            for part, wn in zip(parts[1:], wnames[1:]):
                xw = xw + mm(part, w(wn))
            agg = jnp.dot(anorm_bf, xw.astype(bf16), preferred_element_type=f32)
            return agg + v(bname)

        def gat(x, name, out_ch):
            # GATConv (concat=False): masked-softmax attention per head, mean
            # over heads, + bias.  Destination scores are folded into the
            # projection weight (wext); source scores come from one dot of the
            # folded (H, Fin) matrix against the layer input.
            x_bf = x.astype(bf16)
            hc = heads * out_ch
            xp_ext = jnp.dot(x_bf, w(name + "_wext"),
                             preferred_element_type=f32)        # (N, H*C + H)
            a_s = lax.dot_general(w(name + "_asw"), x_bf,
                                  (((1,), (1,)), ((), ())),
                                  preferred_element_type=f32)   # (H, N)
            xp = xp_ext[:, :hc]                                 # (N, H*C)
            a_d = xp_ext[:, hc:]                                # (N, H)
            xp_bf = xp.astype(bf16)
            outs = []
            for h in range(heads):         # small static constant -> unroll
                e = _leaky_relu(a_d[:, h:h + 1] + a_s[h:h + 1, :],
                                NEG_SLOPE_GAT)
                e = e + att_bias
                e = e - jnp.max(e, axis=1, keepdims=True)
                p = jnp.exp(e)
                p = p * pl.reciprocal(jnp.sum(p, axis=1, keepdims=True),
                                      approx=True)
                outs.append(jnp.dot(p.astype(bf16),
                                    xp_bf[:, h * out_ch:(h + 1) * out_ch],
                                    preferred_element_type=f32))
            acc = outs[0]
            for o in outs[1:]:
                acc = acc + o
            return acc * (1.0 / heads) + v(name + "_b")

        # ---- nn1 MLP + bn0 + leaky_relu ------------------------------------
        h0 = _softplus(linear(xin_ref[...], "nn1_w0", "nn1_b0"))
        h0 = _softplus(linear(h0, "nn1_w1", "nn1_b1"))
        h0 = linear(h0, "nn1_w2", "nn1_b2")
        x = bn_lrelu(h0, "bn0_s", "bn0_t")

        # ---- block 1 (dropout = identity in eval mode) ----------------------
        x1 = gcn([x], ["gcn1_w"], "gcn1_b")
        x1 = gat(x1, "gat1", outdim // 4)
        x1 = bn_lrelu(x1, "bn1_s", "bn1_t")

        # ---- block 2: skip1 = [x, x1] via split weights ----------------------
        x2 = gcn([x, x1], ["gcn2_wa", "gcn2_wb"], "gcn2_b")
        x2 = gat(x2, "gat2", 3 * outdim // 4)
        x2 = bn_lrelu(x2, "bn2_s", "bn2_t")

        # ---- block 3: skip2 = [x1, x2] via split weights ----------------------
        x3 = gcn([x1, x2], ["gcn3_wa", "gcn3_wb"], "gcn3_b")
        x3 = gat(x3, "gat3", outdim)
        x3 = bn_lrelu(x3, "bn3_s", "bn3_t")

        # ---- xf = concat([x, x3], 1) written as ONE lane-contiguous output ---
        xf_ref[:, 0:d_x] = x
        xf_ref[:, d_x:d_x + outdim] = x3

        # ---- node_pred head (xf fed via split first-layer weights) ----------
        y = _softplus(mm(x, w("np_w0a")) + mm(x3, w("np_w0b")) + v("np_b0"))
        y = _softplus(linear(y, "np_w1", "np_b1"))
        y = _softplus(linear(y, "np_w2", "np_b2"))
        z = linear(y, "np_w3", "np_b3")
        # sigmoid via EUP approx reciprocal (clamped so range stays <= 1.0)
        probs_ref[...] = jnp.minimum(
            pl.reciprocal(1.0 + jnp.exp(-z), approx=True), 1.0)

    return kernel


# ------------------------------- glue (JAX) ---------------------------------

def build_adjacency(edge_index, n):
    src = edge_index[0]
    dst = edge_index[1]
    a = jnp.zeros((n, n), jnp.float32).at[dst, src].set(1.0)
    a_hat = jnp.maximum(a, jnp.eye(n, dtype=jnp.float32))   # add self loops
    deg = jnp.sum(a_hat, axis=1)
    d_inv_sqrt = 1.0 / jnp.sqrt(deg)
    a_norm = d_inv_sqrt[:, None] * a_hat * d_inv_sqrt[None, :]
    return a_norm        # the edge mask is implied by a_norm > 0


def _fold_gat(w, a_src, a_dst):
    # W: (Fin, H*C); a_src/a_dst: (H, C)
    fin, hc = w.shape
    heads, c = a_src.shape
    wr = w.reshape(fin, heads, c)
    w_dst = jnp.einsum("fhc,hc->fh", wr, a_dst)          # dst scores folded in
    w_ext = jnp.concatenate([w, w_dst], axis=1)          # (Fin, H*C + H)
    a_src_w = jnp.einsum("fhc,hc->hf", wr, a_src)        # (H, Fin) src fold
    return w_ext, a_src_w


def _build_slabs(p):
    """Pack all matmul weights (bf16) and row vectors (f32) into two slabs."""
    d_x = p["bn0_s"].shape[-1]      # outdim // 8  (width of x in skip1 / xf)
    d_x1 = p["bn1_s"].shape[-1]     # outdim // 4  (width of x1 in skip2)

    w_entries = []

    def addw(name, arr):
        w_entries.append((name, arr))

    addw("nn1_w0", p["nn1_w0"])
    addw("nn1_w1", p["nn1_w1"])
    addw("nn1_w2", p["nn1_w2"])
    addw("gcn1_w", p["gcn1_w"])
    g1_wext, g1_asw = _fold_gat(p["gat1_w"], p["gat1_as"], p["gat1_ad"])
    addw("gat1_wext", g1_wext)
    addw("gat1_asw", g1_asw)
    addw("gcn2_wa", p["gcn2_w"][:d_x])      # skip1 = [x, x1] split
    addw("gcn2_wb", p["gcn2_w"][d_x:])
    g2_wext, g2_asw = _fold_gat(p["gat2_w"], p["gat2_as"], p["gat2_ad"])
    addw("gat2_wext", g2_wext)
    addw("gat2_asw", g2_asw)
    addw("gcn3_wa", p["gcn3_w"][:d_x1])     # skip2 = [x1, x2] split
    addw("gcn3_wb", p["gcn3_w"][d_x1:])
    g3_wext, g3_asw = _fold_gat(p["gat3_w"], p["gat3_as"], p["gat3_ad"])
    addw("gat3_wext", g3_wext)
    addw("gat3_asw", g3_asw)
    addw("np_w0a", p["np_w0"][:d_x])        # xf = [x, x3] split
    addw("np_w0b", p["np_w0"][d_x:])
    addw("np_w1", p["np_w1"])
    addw("np_w2", p["np_w2"])
    addw("np_w3", p["np_w3"])

    w_layout = {}
    row, width = 0, 0
    for name, arr in w_entries:
        r, c = arr.shape
        w_layout[name] = (row, r, c)
        row = _round_up(row + r, 8)          # sublane-aligned static slices
        width = max(width, c)
    w_slab = jnp.zeros((_round_up(row, 8), width), jnp.bfloat16)
    for name, arr in w_entries:
        r0, r, c = w_layout[name]
        w_slab = w_slab.at[r0:r0 + r, :c].set(arr.astype(jnp.bfloat16))

    v_names = ["nn1_b0", "nn1_b1", "nn1_b2", "gcn1_b", "gat1_b", "gcn2_b",
               "gat2_b", "gcn3_b", "gat3_b", "np_b0", "np_b1", "np_b2",
               "np_b3", "bn0_s", "bn0_t", "bn1_s", "bn1_t", "bn2_s", "bn2_t",
               "bn3_s", "bn3_t"]
    v_arrays = [jnp.asarray(p[nm]).reshape(-1) for nm in v_names]
    v_width = max(a.shape[0] for a in v_arrays)
    v_slab = jnp.zeros((_round_up(len(v_arrays), 8), v_width), jnp.float32)
    v_layout = {}
    for i, (nm, arr) in enumerate(zip(v_names, v_arrays)):
        v_layout[nm] = (i, arr.shape[0])
        v_slab = v_slab.at[i, :arr.shape[0]].set(arr.astype(jnp.float32))

    return w_slab, v_slab, w_layout, v_layout


def gnn_forward(p, x_in, edge_index, heads=None):
    del heads  # head count derived from the attention parameter shapes
    n = x_in.shape[0]
    a_norm = build_adjacency(edge_index, n)
    w_slab, v_slab, w_layout, v_layout = _build_slabs(p)

    n_heads = p["gat1_as"].shape[0]
    d_x = p["bn0_s"].shape[-1]       # outdim // 8
    outdim = p["bn3_s"].shape[-1]    # outdim

    kernel = _make_kernel(w_layout, v_layout, n_heads, d_x, outdim)

    out_shapes = (
        jax.ShapeDtypeStruct((n, d_x + outdim), jnp.float32),   # xf
        jax.ShapeDtypeStruct((n, 1), jnp.float32),              # node_probs
    )
    vmem = pl.BlockSpec(memory_space=pltpu.MemorySpace.VMEM)
    xf, node_probs = pl.pallas_call(
        kernel,
        out_shape=out_shapes,
        in_specs=[vmem, vmem, vmem, vmem],
        out_specs=(vmem, vmem),
    )(a_norm.astype(jnp.float32), x_in.astype(jnp.float32), w_slab, v_slab)
    return xf, node_probs


# ------------------------------ params (eval) --------------------------------

def init_params(key, indim, outdim, heads):
    keys = iter(jax.random.split(key, 64))

    def lin(fin, fout):
        w = jax.random.normal(next(keys), (fin, fout), jnp.float32) / jnp.sqrt(fin)
        b = 0.01 * jax.random.normal(next(keys), (fout,), jnp.float32)
        return w, b

    def bn(f):
        gamma = 1.0 + 0.1 * jax.random.normal(next(keys), (f,), jnp.float32)
        beta = 0.1 * jax.random.normal(next(keys), (f,), jnp.float32)
        rmean = 0.1 * jax.random.normal(next(keys), (f,), jnp.float32)
        rvar = jnp.abs(jax.random.normal(next(keys), (f,), jnp.float32)) + 0.5
        scale = gamma / jnp.sqrt(rvar + BN_EPS)
        shift = beta - rmean * scale
        return scale.reshape(1, -1), shift.reshape(1, -1)

    def gat(fin, fout):
        w = jax.random.normal(next(keys), (fin, heads * fout), jnp.float32) / jnp.sqrt(fin)
        a_src = jax.random.normal(next(keys), (heads, fout), jnp.float32) / jnp.sqrt(fout)
        a_dst = jax.random.normal(next(keys), (heads, fout), jnp.float32) / jnp.sqrt(fout)
        b = 0.01 * jax.random.normal(next(keys), (fout,), jnp.float32)
        return w, a_src, a_dst, b

    p = {}
    # nn1: indim -> 2*indim -> outdim//4 -> outdim//8
    p["nn1_w0"], p["nn1_b0"] = lin(indim, 2 * indim)
    p["nn1_w1"], p["nn1_b1"] = lin(2 * indim, outdim // 4)
    p["nn1_w2"], p["nn1_b2"] = lin(outdim // 4, outdim // 8)
    p["bn0_s"], p["bn0_t"] = bn(outdim // 8)
    # graph block 1
    p["gcn1_w"], p["gcn1_b"] = lin(outdim // 8, outdim // 4)
    p["gat1_w"], p["gat1_as"], p["gat1_ad"], p["gat1_b"] = gat(outdim // 4, outdim // 4)
    p["bn1_s"], p["bn1_t"] = bn(outdim // 4)
    # graph block 2
    p["gcn2_w"], p["gcn2_b"] = lin(3 * outdim // 8, outdim // 2)
    p["gat2_w"], p["gat2_as"], p["gat2_ad"], p["gat2_b"] = gat(outdim // 2, 3 * outdim // 4)
    p["bn2_s"], p["bn2_t"] = bn(3 * outdim // 4)
    # graph block 3
    p["gcn3_w"], p["gcn3_b"] = lin(outdim, outdim)
    p["gat3_w"], p["gat3_as"], p["gat3_ad"], p["gat3_b"] = gat(outdim, outdim)
    p["bn3_s"], p["bn3_t"] = bn(outdim)
    # node_pred head
    catout = outdim + outdim // 8
    p["np_w0"], p["np_b0"] = lin(catout, catout // 2)
    p["np_w1"], p["np_b1"] = lin(catout // 2, catout // 4)
    p["np_w2"], p["np_b2"] = lin(catout // 4, catout // 8)
    p["np_w3"], p["np_b3"] = lin(catout // 8, 1)
    return p


# --------------------------------- driver -----------------------------------

if __name__ == "__main__":
    N = 16       # number of graph nodes
    INDIM = 16
    OUTDIM = 32
    HEADS = 5

    key = jax.random.PRNGKey(0)
    k_x, k_p = jax.random.split(key)

    x_in = jax.random.normal(k_x, (N, INDIM), jnp.float32)

    # deterministic bidirectional ring graph, edge_index in PyG COO [2, E]
    idx = jnp.arange(N, dtype=jnp.int32)
    src = jnp.concatenate([idx, (idx + 1) % N])
    dst = jnp.concatenate([(idx + 1) % N, idx])
    edge_index = jnp.stack([src, dst], axis=0)   # (2, 2N)

    params = init_params(k_p, INDIM, OUTDIM, HEADS)

    fwd = jax.jit(functools.partial(gnn_forward, heads=HEADS))
    xf, node_probs = fwd(params, x_in, edge_index)
    jax.block_until_ready((xf, node_probs))

    assert xf.shape == (N, OUTDIM + OUTDIM // 8)
    assert node_probs.shape == (N, 1)
    assert bool(jnp.all(jnp.isfinite(xf)))
    assert bool(jnp.all((node_probs >= 0.0) & (node_probs <= 1.0)))
    print("KERNEL_OK")
</pallas_src>

<mosaic_0001>
module attributes {stable_mosaic.version = 11 : i64} {
  func.func @kernel(%arg0: memref<16x16xf32, #tpu.memory_space<vmem>>, %arg1: memref<16x16xf32, #tpu.memory_space<vmem>>, %arg2: memref<280x165xbf16, #tpu.memory_space<vmem>>, %arg3: memref<24x32xf32, #tpu.memory_space<vmem>>, %arg4: memref<16x36xf32, #tpu.memory_space<vmem>>, %arg5: memref<16x1xf32, #tpu.memory_space<vmem>>) attributes {dimension_semantics = [], scalar_prefetch = 0 : i64, scratch_operands = 0 : i64, tpu.core_type = #tpu.core_type<tc>} {
    %c0 = arith.constant 0 : index
    %c0_0 = arith.constant 0 : index
    %0 = vector.load %arg0[%c0, %c0_0] : memref<16x16xf32, #tpu.memory_space<vmem>>, vector<16x16xf32>
    %cst = arith.constant 0.000000e+00 : f32
    %1 = vector.broadcast %cst : f32 to vector<16x16xf32>
    %2 = arith.cmpf ogt, %0, %1 : vector<16x16xf32>
    %cst_1 = arith.constant 0.000000e+00 : f32
    %cst_2 = arith.constant -1.000000e+30 : f32
    %3 = vector.broadcast %cst_1 : f32 to vector<16x16xf32>
    %4 = vector.broadcast %cst_2 : f32 to vector<16x16xf32>
    %5 = arith.select %2, %3, %4 : vector<16x16xi1>, vector<16x16xf32>
    %6 = arith.truncf %0 : vector<16x16xf32> to vector<16x16xbf16>
    %c0_3 = arith.constant 0 : index
    %c0_4 = arith.constant 0 : index
    %7 = vector.load %arg1[%c0_3, %c0_4] : memref<16x16xf32, #tpu.memory_space<vmem>>, vector<16x16xf32>
    %c0_5 = arith.constant 0 : index
    %c0_6 = arith.constant 0 : index
    %8 = vector.load %arg2[%c0_5, %c0_6] : memref<280x165xbf16, #tpu.memory_space<vmem>>, vector<16x32xbf16>
    %9 = arith.truncf %7 : vector<16x16xf32> to vector<16x16xbf16>
    %cst_7 = arith.constant dense<0.000000e+00> : vector<16x32xf32>
    %10 = tpu.matmul %9, %8, %cst_7 {dimension_numbers = #tpu.dot_dimension_numbers<[1], [0], [0], [1], [0, 0, 1, 1], [], []>} : vector<16x16xbf16>, vector<16x32xbf16>, vector<16x32xf32> -> vector<16x32xf32>
    %c0_8 = arith.constant 0 : index
    %c0_9 = arith.constant 0 : index
    %11 = vector.load %arg3[%c0_8, %c0_9] : memref<24x32xf32, #tpu.memory_space<vmem>>, vector<1x32xf32>
    %12 = vector.broadcast %11 : vector<1x32xf32> to vector<16x32xf32>
    %13 = arith.addf %10, %12 : vector<16x32xf32>
    %cst_10 = arith.constant 0.000000e+00 : f32
    %14 = vector.broadcast %cst_10 : f32 to vector<16x32xf32>
    %15 = arith.maximumf %13, %14 : vector<16x32xf32>
    %16 = math.absf %13 : vector<16x32xf32>
    %cst_11 = arith.constant 0.000000e+00 : f32
    %17 = vector.broadcast %cst_11 : f32 to vector<16x32xf32>
    %18 = arith.subf %17, %16 : vector<16x32xf32>
    %19 = math.exp %18 : vector<16x32xf32>
    %20 = math.log1p %19 : vector<16x32xf32>
    %21 = arith.addf %15, %20 : vector<16x32xf32>
    %c16 = arith.constant 16 : index
    %c0_12 = arith.constant 0 : index
    %22 = vector.load %arg2[%c16, %c0_12] : memref<280x165xbf16, #tpu.memory_space<vmem>>, vector<32x8xbf16>
    %23 = arith.truncf %21 : vector<16x32xf32> to vector<16x32xbf16>
    %cst_13 = arith.constant dense<0.000000e+00> : vector<16x8xf32>
    %24 = tpu.matmul %23, %22, %cst_13 {dimension_numbers = #tpu.dot_dimension_numbers<[1], [0], [0], [1], [0, 0, 1, 1], [], []>} : vector<16x32xbf16>, vector<32x8xbf16>, vector<16x8xf32> -> vector<16x8xf32>
    %c1 = arith.constant 1 : index
    %c0_14 = arith.constant 0 : index
    %25 = vector.load %arg3[%c1, %c0_14] : memref<24x32xf32, #tpu.memory_space<vmem>>, vector<1x8xf32>
    %26 = vector.broadcast %25 : vector<1x8xf32> to vector<16x8xf32>
    %27 = arith.addf %24, %26 : vector<16x8xf32>
    %cst_15 = arith.constant 0.000000e+00 : f32
    %28 = vector.broadcast %cst_15 : f32 to vector<16x8xf32>
    %29 = arith.maximumf %27, %28 : vector<16x8xf32>
    %30 = math.absf %27 : vector<16x8xf32>
    %cst_16 = arith.constant 0.000000e+00 : f32
    %31 = vector.broadcast %cst_16 : f32 to vector<16x8xf32>
    %32 = arith.subf %31, %30 : vector<16x8xf32>
    %33 = math.exp %32 : vector<16x8xf32>
    %34 = math.log1p %33 : vector<16x8xf32>
    %35 = arith.addf %29, %34 : vector<16x8xf32>
    %c48 = arith.constant 48 : index
    %c0_17 = arith.constant 0 : index
    %36 = vector.load %arg2[%c48, %c0_17] : memref<280x165xbf16, #tpu.memory_space<vmem>>, vector<8x4xbf16>
    %37 = arith.truncf %35 : vector<16x8xf32> to vector<16x8xbf16>
    %cst_18 = arith.constant dense<0.000000e+00> : vector<16x4xf32>
    %38 = tpu.matmul %37, %36, %cst_18 {dimension_numbers = #tpu.dot_dimension_numbers<[1], [0], [0], [1], [0, 0, 1, 1], [], []>} : vector<16x8xbf16>, vector<8x4xbf16>, vector<16x4xf32> -> vector<16x4xf32>
    %c2 = arith.constant 2 : index
    %c0_19 = arith.constant 0 : index
    %39 = vector.load %arg3[%c2, %c0_19] : memref<24x32xf32, #tpu.memory_space<vmem>>, vector<1x4xf32>
    %40 = vector.broadcast %39 : vector<1x4xf32> to vector<16x4xf32>
    %41 = arith.addf %38, %40 : vector<16x4xf32>
    %c13 = arith.constant 13 : index
    %c0_20 = arith.constant 0 : index
    %42 = vector.load %arg3[%c13, %c0_20] : memref<24x32xf32, #tpu.memory_space<vmem>>, vector<1x4xf32>
    %43 = vector.broadcast %42 : vector<1x4xf32> to vector<16x4xf32>
    %44 = arith.mulf %41, %43 : vector<16x4xf32>
    %c14 = arith.constant 14 : index
    %c0_21 = arith.constant 0 : index
    %45 = vector.load %arg3[%c14, %c0_21] : memref<24x32xf32, #tpu.memory_space<vmem>>, vector<1x4xf32>
    %46 = vector.broadcast %45 : vector<1x4xf32> to vector<16x4xf32>
    %47 = arith.addf %44, %46 : vector<16x4xf32>
    %cst_22 = arith.constant 0.000000e+00 : f32
    %48 = vector.broadcast %cst_22 : f32 to vector<16x4xf32>
    %49 = arith.cmpf oge, %47, %48 : vector<16x4xf32>
    %cst_23 = arith.constant 0.00999999977 : f32
    %50 = vector.broadcast %cst_23 : f32 to vector<16x4xf32>
    %51 = arith.mulf %50, %47 : vector<16x4xf32>
    %52 = arith.select %49, %47, %51 : vector<16x4xi1>, vector<16x4xf32>
    %c56 = arith.constant 56 : index
    %c0_24 = arith.constant 0 : index
    %53 = vector.load %arg2[%c56, %c0_24] : memref<280x165xbf16, #tpu.memory_space<vmem>>, vector<4x8xbf16>
    %54 = arith.truncf %52 : vector<16x4xf32> to vector<16x4xbf16>
    %cst_25 = arith.constant dense<0.000000e+00> : vector<16x8xf32>
    %55 = tpu.matmul %54, %53, %cst_25 {dimension_numbers = #tpu.dot_dimension_numbers<[1], [0], [0], [1], [0, 0, 1, 1], [], []>} : vector<16x4xbf16>, vector<4x8xbf16>, vector<16x8xf32> -> vector<16x8xf32>
    %56 = arith.truncf %55 : vector<16x8xf32> to vector<16x8xbf16>
    %cst_26 = arith.constant dense<0.000000e+00> : vector<16x8xf32>
    %57 = tpu.matmul %6, %56, %cst_26 {dimension_numbers = #tpu.dot_dimension_numbers<[1], [0], [0], [1], [0, 0, 1, 1], [], []>} : vector<16x16xbf16>, vector<16x8xbf16>, vector<16x8xf32> -> vector<16x8xf32>
    %c3 = arith.constant 3 : index
    %c0_27 = arith.constant 0 : index
    %58 = vector.load %arg3[%c3, %c0_27] : memref<24x32xf32, #tpu.memory_space<vmem>>, vector<1x8xf32>
    %59 = vector.broadcast %58 : vector<1x8xf32> to vector<16x8xf32>
    %60 = arith.addf %57, %59 : vector<16x8xf32>
    %61 = arith.truncf %60 : vector<16x8xf32> to vector<16x8xbf16>
    %c64 = arith.constant 64 : index
    %c0_28 = arith.constant 0 : index
    %62 = vector.load %arg2[%c64, %c0_28] : memref<280x165xbf16, #tpu.memory_space<vmem>>, vector<8x45xbf16>
    %cst_29 = arith.constant dense<0.000000e+00> : vector<16x45xf32>
    %63 = tpu.matmul %61, %62, %cst_29 {dimension_numbers = #tpu.dot_dimension_numbers<[1], [0], [0], [1], [0, 0, 1, 1], [], []>} : vector<16x8xbf16>, vector<8x45xbf16>, vector<16x45xf32> -> vector<16x45xf32>
    %c72 = arith.constant 72 : index
    %c0_30 = arith.constant 0 : index
    %64 = vector.load %arg2[%c72, %c0_30] : memref<280x165xbf16, #tpu.memory_space<vmem>>, vector<5x8xbf16>
    %cst_31 = arith.constant dense<0.000000e+00> : vector<5x16xf32>
    %65 = tpu.matmul %64, %61, %cst_31 {dimension_numbers = #tpu.dot_dimension_numbers<[1], [1], [0], [0], [0, 0, 1, 0], [], []>} : vector<5x8xbf16>, vector<16x8xbf16>, vector<5x16xf32> -> vector<5x16xf32>
    %66 = vector.extract_strided_slice %63 {offsets = [0, 0], sizes = [16, 40], strides = [1, 1]} : vector<16x45xf32> to vector<16x40xf32>
    %67 = vector.extract_strided_slice %63 {offsets = [0, 40], sizes = [16, 5], strides = [1, 1]} : vector<16x45xf32> to vector<16x5xf32>
    %68 = arith.truncf %66 : vector<16x40xf32> to vector<16x40xbf16>
    %69 = vector.extract_strided_slice %67 {offsets = [0, 0], sizes = [16, 1], strides = [1, 1]} : vector<16x5xf32> to vector<16x1xf32>
    %70 = vector.extract_strided_slice %65 {offsets = [0, 0], sizes = [1, 16], strides = [1, 1]} : vector<5x16xf32> to vector<1x16xf32>
    %71 = vector.broadcast %69 : vector<16x1xf32> to vector<16x16xf32>
    %72 = vector.broadcast %70 : vector<1x16xf32> to vector<16x16xf32>
    %73 = arith.addf %71, %72 : vector<16x16xf32>
    %cst_32 = arith.constant 0.000000e+00 : f32
    %74 = vector.broadcast %cst_32 : f32 to vector<16x16xf32>
    %75 = arith.cmpf oge, %73, %74 : vector<16x16xf32>
    %cst_33 = arith.constant 2.000000e-01 : f32
    %76 = vector.broadcast %cst_33 : f32 to vector<16x16xf32>
    %77 = arith.mulf %76, %73 : vector<16x16xf32>
    %78 = arith.select %75, %73, %77 : vector<16x16xi1>, vector<16x16xf32>
    %79 = arith.addf %78, %5 : vector<16x16xf32>
    %cst_34 = arith.constant dense<0xFF800000> : vector<16xf32>
    %80 = vector.multi_reduction <maximumf>, %79, %cst_34 [1] : vector<16x16xf32> to vector<16xf32>
    %81 = vector.shape_cast %80 : vector<16xf32> to vector<16x1xf32>
    %82 = vector.broadcast %81 : vector<16x1xf32> to vector<16x16xf32>
    %83 = arith.subf %79, %82 : vector<16x16xf32>
    %84 = math.exp %83 : vector<16x16xf32>
    %cst_35 = arith.constant dense<0.000000e+00> : vector<16xf32>
    %85 = vector.multi_reduction <add>, %84, %cst_35 [1] : vector<16x16xf32> to vector<16xf32>
    %86 = vector.shape_cast %85 : vector<16xf32> to vector<16x1xf32>
    %87 = tpu.reciprocal %86 {approx = true} : vector<16x1xf32> -> vector<16x1xf32>
    %88 = vector.broadcast %87 : vector<16x1xf32> to vector<16x16xf32>
    %89 = arith.mulf %84, %88 : vector<16x16xf32>
    %90 = arith.truncf %89 : vector<16x16xf32> to vector<16x16xbf16>
    %91 = vector.extract_strided_slice %68 {offsets = [0, 0], sizes = [16, 8], strides = [1, 1]} : vector<16x40xbf16> to vector<16x8xbf16>
    %cst_36 = arith.constant dense<0.000000e+00> : vector<16x8xf32>
    %92 = tpu.matmul %90, %91, %cst_36 {dimension_numbers = #tpu.dot_dimension_numbers<[1], [0], [0], [1], [0, 0, 1, 1], [], []>} : vector<16x16xbf16>, vector<16x8xbf16>, vector<16x8xf32> -> vector<16x8xf32>
    %93 = vector.extract_strided_slice %67 {offsets = [0, 1], sizes = [16, 1], strides = [1, 1]} : vector<16x5xf32> to vector<16x1xf32>
    %94 = vector.extract_strided_slice %65 {offsets = [1, 0], sizes = [1, 16], strides = [1, 1]} : vector<5x16xf32> to vector<1x16xf32>
    %95 = vector.broadcast %93 : vector<16x1xf32> to vector<16x16xf32>
    %96 = vector.broadcast %94 : vector<1x16xf32> to vector<16x16xf32>
    %97 = arith.addf %95, %96 : vector<16x16xf32>
    %cst_37 = arith.constant 0.000000e+00 : f32
    %98 = vector.broadcast %cst_37 : f32 to vector<16x16xf32>
    %99 = arith.cmpf oge, %97, %98 : vector<16x16xf32>
    %cst_38 = arith.constant 2.000000e-01 : f32
    %100 = vector.broadcast %cst_38 : f32 to vector<16x16xf32>
    %101 = arith.mulf %100, %97 : vector<16x16xf32>
    %102 = arith.select %99, %97, %101 : vector<16x16xi1>, vector<16x16xf32>
    %103 = arith.addf %102, %5 : vector<16x16xf32>
    %cst_39 = arith.constant dense<0xFF800000> : vector<16xf32>
    %104 = vector.multi_reduction <maximumf>, %103, %cst_39 [1] : vector<16x16xf32> to vector<16xf32>
    %105 = vector.shape_cast %104 : vector<16xf32> to vector<16x1xf32>
    %106 = vector.broadcast %105 : vector<16x1xf32> to vector<16x16xf32>
    %107 = arith.subf %103, %106 : vector<16x16xf32>
    %108 = math.exp %107 : vector<16x16xf32>
    %cst_40 = arith.constant dense<0.000000e+00> : vector<16xf32>
    %109 = vector.multi_reduction <add>, %108, %cst_40 [1] : vector<16x16xf32> to vector<16xf32>
    %110 = vector.shape_cast %109 : vector<16xf32> to vector<16x1xf32>
    %111 = tpu.reciprocal %110 {approx = true} : vector<16x1xf32> -> vector<16x1xf32>
    %112 = vector.broadcast %111 : vector<16x1xf32> to vector<16x16xf32>
    %113 = arith.mulf %108, %112 : vector<16x16xf32>
    %114 = arith.truncf %113 : vector<16x16xf32> to vector<16x16xbf16>
    %115 = vector.extract_strided_slice %68 {offsets = [0, 8], sizes = [16, 8], strides = [1, 1]} : vector<16x40xbf16> to vector<16x8xbf16>
    %cst_41 = arith.constant dense<0.000000e+00> : vector<16x8xf32>
    %116 = tpu.matmul %114, %115, %cst_41 {dimension_numbers = #tpu.dot_dimension_numbers<[1], [0], [0], [1], [0, 0, 1, 1], [], []>} : vector<16x16xbf16>, vector<16x8xbf16>, vector<16x8xf32> -> vector<16x8xf32>
    %117 = vector.extract_strided_slice %67 {offsets = [0, 2], sizes = [16, 1], strides = [1, 1]} : vector<16x5xf32> to vector<16x1xf32>
    %118 = vector.extract_strided_slice %65 {offsets = [2, 0], sizes = [1, 16], strides = [1, 1]} : vector<5x16xf32> to vector<1x16xf32>
    %119 = vector.broadcast %117 : vector<16x1xf32> to vector<16x16xf32>
    %120 = vector.broadcast %118 : vector<1x16xf32> to vector<16x16xf32>
    %121 = arith.addf %119, %120 : vector<16x16xf32>
    %cst_42 = arith.constant 0.000000e+00 : f32
    %122 = vector.broadcast %cst_42 : f32 to vector<16x16xf32>
    %123 = arith.cmpf oge, %121, %122 : vector<16x16xf32>
    %cst_43 = arith.constant 2.000000e-01 : f32
    %124 = vector.broadcast %cst_43 : f32 to vector<16x16xf32>
    %125 = arith.mulf %124, %121 : vector<16x16xf32>
    %126 = arith.select %123, %121, %125 : vector<16x16xi1>, vector<16x16xf32>
    %127 = arith.addf %126, %5 : vector<16x16xf32>
    %cst_44 = arith.constant dense<0xFF800000> : vector<16xf32>
    %128 = vector.multi_reduction <maximumf>, %127, %cst_44 [1] : vector<16x16xf32> to vector<16xf32>
    %129 = vector.shape_cast %128 : vector<16xf32> to vector<16x1xf32>
    %130 = vector.broadcast %129 : vector<16x1xf32> to vector<16x16xf32>
    %131 = arith.subf %127, %130 : vector<16x16xf32>
    %132 = math.exp %131 : vector<16x16xf32>
    %cst_45 = arith.constant dense<0.000000e+00> : vector<16xf32>
    %133 = vector.multi_reduction <add>, %132, %cst_45 [1] : vector<16x16xf32> to vector<16xf32>
    %134 = vector.shape_cast %133 : vector<16xf32> to vector<16x1xf32>
    %135 = tpu.reciprocal %134 {approx = true} : vector<16x1xf32> -> vector<16x1xf32>
    %136 = vector.broadcast %135 : vector<16x1xf32> to vector<16x16xf32>
    %137 = arith.mulf %132, %136 : vector<16x16xf32>
    %138 = arith.truncf %137 : vector<16x16xf32> to vector<16x16xbf16>
    %139 = vector.extract_strided_slice %68 {offsets = [0, 16], sizes = [16, 8], strides = [1, 1]} : vector<16x40xbf16> to vector<16x8xbf16>
    %cst_46 = arith.constant dense<0.000000e+00> : vector<16x8xf32>
    %140 = tpu.matmul %138, %139, %cst_46 {dimension_numbers = #tpu.dot_dimension_numbers<[1], [0], [0], [1], [0, 0, 1, 1], [], []>} : vector<16x16xbf16>, vector<16x8xbf16>, vector<16x8xf32> -> vector<16x8xf32>
    %141 = vector.extract_strided_slice %67 {offsets = [0, 3], sizes = [16, 1], strides = [1, 1]} : vector<16x5xf32> to vector<16x1xf32>
    %142 = vector.extract_strided_slice %65 {offsets = [3, 0], sizes = [1, 16], strides = [1, 1]} : vector<5x16xf32> to vector<1x16xf32>
    %143 = vector.broadcast %141 : vector<16x1xf32> to vector<16x16xf32>
    %144 = vector.broadcast %142 : vector<1x16xf32> to vector<16x16xf32>
    %145 = arith.addf %143, %144 : vector<16x16xf32>
    %cst_47 = arith.constant 0.000000e+00 : f32
    %146 = vector.broadcast %cst_47 : f32 to vector<16x16xf32>
    %147 = arith.cmpf oge, %145, %146 : vector<16x16xf32>
    %cst_48 = arith.constant 2.000000e-01 : f32
    %148 = vector.broadcast %cst_48 : f32 to vector<16x16xf32>
    %149 = arith.mulf %148, %145 : vector<16x16xf32>
    %150 = arith.select %147, %145, %149 : vector<16x16xi1>, vector<16x16xf32>
    %151 = arith.addf %150, %5 : vector<16x16xf32>
    %cst_49 = arith.constant dense<0xFF800000> : vector<16xf32>
    %152 = vector.multi_reduction <maximumf>, %151, %cst_49 [1] : vector<16x16xf32> to vector<16xf32>
    %153 = vector.shape_cast %152 : vector<16xf32> to vector<16x1xf32>
    %154 = vector.broadcast %153 : vector<16x1xf32> to vector<16x16xf32>
    %155 = arith.subf %151, %154 : vector<16x16xf32>
    %156 = math.exp %155 : vector<16x16xf32>
    %cst_50 = arith.constant dense<0.000000e+00> : vector<16xf32>
    %157 = vector.multi_reduction <add>, %156, %cst_50 [1] : vector<16x16xf32> to vector<16xf32>
    %158 = vector.shape_cast %157 : vector<16xf32> to vector<16x1xf32>
    %159 = tpu.reciprocal %158 {approx = true} : vector<16x1xf32> -> vector<16x1xf32>
    %160 = vector.broadcast %159 : vector<16x1xf32> to vector<16x16xf32>
    %161 = arith.mulf %156, %160 : vector<16x16xf32>
    %162 = arith.truncf %161 : vector<16x16xf32> to vector<16x16xbf16>
    %163 = vector.extract_strided_slice %68 {offsets = [0, 24], sizes = [16, 8], strides = [1, 1]} : vector<16x40xbf16> to vector<16x8xbf16>
    %cst_51 = arith.constant dense<0.000000e+00> : vector<16x8xf32>
    %164 = tpu.matmul %162, %163, %cst_51 {dimension_numbers = #tpu.dot_dimension_numbers<[1], [0], [0], [1], [0, 0, 1, 1], [], []>} : vector<16x16xbf16>, vector<16x8xbf16>, vector<16x8xf32> -> vector<16x8xf32>
    %165 = vector.extract_strided_slice %67 {offsets = [0, 4], sizes = [16, 1], strides = [1, 1]} : vector<16x5xf32> to vector<16x1xf32>
    %166 = vector.extract_strided_slice %65 {offsets = [4, 0], sizes = [1, 16], strides = [1, 1]} : vector<5x16xf32> to vector<1x16xf32>
    %167 = vector.broadcast %165 : vector<16x1xf32> to vector<16x16xf32>
    %168 = vector.broadcast %166 : vector<1x16xf32> to vector<16x16xf32>
    %169 = arith.addf %167, %168 : vector<16x16xf32>
    %cst_52 = arith.constant 0.000000e+00 : f32
    %170 = vector.broadcast %cst_52 : f32 to vector<16x16xf32>
    %171 = arith.cmpf oge, %169, %170 : vector<16x16xf32>
    %cst_53 = arith.constant 2.000000e-01 : f32
    %172 = vector.broadcast %cst_53 : f32 to vector<16x16xf32>
    %173 = arith.mulf %172, %169 : vector<16x16xf32>
    %174 = arith.select %171, %169, %173 : vector<16x16xi1>, vector<16x16xf32>
    %175 = arith.addf %174, %5 : vector<16x16xf32>
    %cst_54 = arith.constant dense<0xFF800000> : vector<16xf32>
    %176 = vector.multi_reduction <maximumf>, %175, %cst_54 [1] : vector<16x16xf32> to vector<16xf32>
    %177 = vector.shape_cast %176 : vector<16xf32> to vector<16x1xf32>
    %178 = vector.broadcast %177 : vector<16x1xf32> to vector<16x16xf32>
    %179 = arith.subf %175, %178 : vector<16x16xf32>
    %180 = math.exp %179 : vector<16x16xf32>
    %cst_55 = arith.constant dense<0.000000e+00> : vector<16xf32>
    %181 = vector.multi_reduction <add>, %180, %cst_55 [1] : vector<16x16xf32> to vector<16xf32>
    %182 = vector.shape_cast %181 : vector<16xf32> to vector<16x1xf32>
    %183 = tpu.reciprocal %182 {approx = true} : vector<16x1xf32> -> vector<16x1xf32>
    %184 = vector.broadcast %183 : vector<16x1xf32> to vector<16x16xf32>
    %185 = arith.mulf %180, %184 : vector<16x16xf32>
    %186 = arith.truncf %185 : vector<16x16xf32> to vector<16x16xbf16>
    %187 = vector.extract_strided_slice %68 {offsets = [0, 32], sizes = [16, 8], strides = [1, 1]} : vector<16x40xbf16> to vector<16x8xbf16>
    %cst_56 = arith.constant dense<0.000000e+00> : vector<16x8xf32>
    %188 = tpu.matmul %186, %187, %cst_56 {dimension_numbers = #tpu.dot_dimension_numbers<[1], [0], [0], [1], [0, 0, 1, 1], [], []>} : vector<16x16xbf16>, vector<16x8xbf16>, vector<16x8xf32> -> vector<16x8xf32>
    %189 = arith.addf %92, %116 : vector<16x8xf32>
    %190 = arith.addf %189, %140 : vector<16x8xf32>
    %191 = arith.addf %190, %164 : vector<16x8xf32>
    %192 = arith.addf %191, %188 : vector<16x8xf32>
    %cst_57 = arith.constant 2.000000e-01 : f32
    %193 = vector.broadcast %cst_57 : f32 to vector<16x8xf32>
    %194 = arith.mulf %192, %193 : vector<16x8xf32>
    %c4 = arith.constant 4 : index
    %c0_58 = arith.constant 0 : index
    %195 = vector.load %arg3[%c4, %c0_58] : memref<24x32xf32, #tpu.memory_space<vmem>>, vector<1x8xf32>
    %196 = vector.broadcast %195 : vector<1x8xf32> to vector<16x8xf32>
    %197 = arith.addf %194, %196 : vector<16x8xf32>
    %c15 = arith.constant 15 : index
    %c0_59 = arith.constant 0 : index
    %198 = vector.load %arg3[%c15, %c0_59] : memref<24x32xf32, #tpu.memory_space<vmem>>, vector<1x8xf32>
    %199 = vector.broadcast %198 : vector<1x8xf32> to vector<16x8xf32>
    %200 = arith.mulf %197, %199 : vector<16x8xf32>
    %c16_60 = arith.constant 16 : index
    %c0_61 = arith.constant 0 : index
    %201 = vector.load %arg3[%c16_60, %c0_61] : memref<24x32xf32, #tpu.memory_space<vmem>>, vector<1x8xf32>
    %202 = vector.broadcast %201 : vector<1x8xf32> to vector<16x8xf32>
    %203 = arith.addf %200, %202 : vector<16x8xf32>
    %cst_62 = arith.constant 0.000000e+00 : f32
    %204 = vector.broadcast %cst_62 : f32 to vector<16x8xf32>
    %205 = arith.cmpf oge, %203, %204 : vector<16x8xf32>
    %cst_63 = arith.constant 0.00999999977 : f32
    %206 = vector.broadcast %cst_63 : f32 to vector<16x8xf32>
    %207 = arith.mulf %206, %203 : vector<16x8xf32>
    %208 = arith.select %205, %203, %207 : vector<16x8xi1>, vector<16x8xf32>
    %c80 = arith.constant 80 : index
    %c0_64 = arith.constant 0 : index
    %209 = vector.load %arg2[%c80, %c0_64] : memref<280x165xbf16, #tpu.memory_space<vmem>>, vector<4x16xbf16>
    %210 = arith.truncf %52 : vector<16x4xf32> to vector<16x4xbf16>
    %cst_65 = arith.constant dense<0.000000e+00> : vector<16x16xf32>
    %211 = tpu.matmul %210, %209, %cst_65 {dimension_numbers = #tpu.dot_dimension_numbers<[1], [0], [0], [1], [0, 0, 1, 1], [], []>} : vector<16x4xbf16>, vector<4x16xbf16>, vector<16x16xf32> -> vector<16x16xf32>
    %c88 = arith.constant 88 : index
    %c0_66 = arith.constant 0 : index
    %212 = vector.load %arg2[%c88, %c0_66] : memref<280x165xbf16, #tpu.memory_space<vmem>>, vector<8x16xbf16>
    %213 = arith.truncf %208 : vector<16x8xf32> to vector<16x8xbf16>
    %cst_67 = arith.constant dense<0.000000e+00> : vector<16x16xf32>
    %214 = tpu.matmul %213, %212, %cst_67 {dimension_numbers = #tpu.dot_dimension_numbers<[1], [0], [0], [1], [0, 0, 1, 1], [], []>} : vector<16x8xbf16>, vector<8x16xbf16>, vector<16x16xf32> -> vector<16x16xf32>
    %215 = arith.addf %211, %214 : vector<16x16xf32>
    %216 = arith.truncf %215 : vector<16x16xf32> to vector<16x16xbf16>
    %cst_68 = arith.constant dense<0.000000e+00> : vector<16x16xf32>
    %217 = tpu.matmul %6, %216, %cst_68 {dimension_numbers = #tpu.dot_dimension_numbers<[1], [0], [0], [1], [0, 0, 1, 1], [], []>} : vector<16x16xbf16>, vector<16x16xbf16>, vector<16x16xf32> -> vector<16x16xf32>
    %c5 = arith.constant 5 : index
    %c0_69 = arith.constant 0 : index
    %218 = vector.load %arg3[%c5, %c0_69] : memref<24x32xf32, #tpu.memory_space<vmem>>, vector<1x16xf32>
    %219 = vector.broadcast %218 : vector<1x16xf32> to vector<16x16xf32>
    %220 = arith.addf %217, %219 : vector<16x16xf32>
    %221 = arith.truncf %220 : vector<16x16xf32> to vector<16x16xbf16>
    %c96 = arith.constant 96 : index
    %c0_70 = arith.constant 0 : index
    %222 = vector.load %arg2[%c96, %c0_70] : memref<280x165xbf16, #tpu.memory_space<vmem>>, vector<16x125xbf16>
    %cst_71 = arith.constant dense<0.000000e+00> : vector<16x125xf32>
    %223 = tpu.matmul %221, %222, %cst_71 {dimension_numbers = #tpu.dot_dimension_numbers<[1], [0], [0], [1], [0, 0, 1, 1], [], []>} : vector<16x16xbf16>, vector<16x125xbf16>, vector<16x125xf32> -> vector<16x125xf32>
    %c112 = arith.constant 112 : index
    %c0_72 = arith.constant 0 : index
    %224 = vector.load %arg2[%c112, %c0_72] : memref<280x165xbf16, #tpu.memory_space<vmem>>, vector<5x16xbf16>
    %cst_73 = arith.constant dense<0.000000e+00> : vector<5x16xf32>
    %225 = tpu.matmul %224, %221, %cst_73 {dimension_numbers = #tpu.dot_dimension_numbers<[1], [1], [0], [0], [0, 0, 1, 0], [], []>} : vector<5x16xbf16>, vector<16x16xbf16>, vector<5x16xf32> -> vector<5x16xf32>
    %226 = vector.extract_strided_slice %223 {offsets = [0, 0], sizes = [16, 120], strides = [1, 1]} : vector<16x125xf32> to vector<16x120xf32>
    %227 = vector.extract_strided_slice %223 {offsets = [0, 120], sizes = [16, 5], strides = [1, 1]} : vector<16x125xf32> to vector<16x5xf32>
    %228 = arith.truncf %226 : vector<16x120xf32> to vector<16x120xbf16>
    %229 = vector.extract_strided_slice %227 {offsets = [0, 0], sizes = [16, 1], strides = [1, 1]} : vector<16x5xf32> to vector<16x1xf32>
    %230 = vector.extract_strided_slice %225 {offsets = [0, 0], sizes = [1, 16], strides = [1, 1]} : vector<5x16xf32> to vector<1x16xf32>
    %231 = vector.broadcast %229 : vector<16x1xf32> to vector<16x16xf32>
    %232 = vector.broadcast %230 : vector<1x16xf32> to vector<16x16xf32>
    %233 = arith.addf %231, %232 : vector<16x16xf32>
    %cst_74 = arith.constant 0.000000e+00 : f32
    %234 = vector.broadcast %cst_74 : f32 to vector<16x16xf32>
    %235 = arith.cmpf oge, %233, %234 : vector<16x16xf32>
    %cst_75 = arith.constant 2.000000e-01 : f32
    %236 = vector.broadcast %cst_75 : f32 to vector<16x16xf32>
    %237 = arith.mulf %236, %233 : vector<16x16xf32>
    %238 = arith.select %235, %233, %237 : vector<16x16xi1>, vector<16x16xf32>
    %239 = arith.addf %238, %5 : vector<16x16xf32>
    %cst_76 = arith.constant dense<0xFF800000> : vector<16xf32>
    %240 = vector.multi_reduction <maximumf>, %239, %cst_76 [1] : vector<16x16xf32> to vector<16xf32>
    %241 = vector.shape_cast %240 : vector<16xf32> to vector<16x1xf32>
    %242 = vector.broadcast %241 : vector<16x1xf32> to vector<16x16xf32>
    %243 = arith.subf %239, %242 : vector<16x16xf32>
    %244 = math.exp %243 : vector<16x16xf32>
    %cst_77 = arith.constant dense<0.000000e+00> : vector<16xf32>
    %245 = vector.multi_reduction <add>, %244, %cst_77 [1] : vector<16x16xf32> to vector<16xf32>
    %246 = vector.shape_cast %245 : vector<16xf32> to vector<16x1xf32>
    %247 = tpu.reciprocal %246 {approx = true} : vector<16x1xf32> -> vector<16x1xf32>
    %248 = vector.broadcast %247 : vector<16x1xf32> to vector<16x16xf32>
    %249 = arith.mulf %244, %248 : vector<16x16xf32>
    %250 = arith.truncf %249 : vector<16x16xf32> to vector<16x16xbf16>
    %251 = vector.extract_strided_slice %228 {offsets = [0, 0], sizes = [16, 24], strides = [1, 1]} : vector<16x120xbf16> to vector<16x24xbf16>
    %cst_78 = arith.constant dense<0.000000e+00> : vector<16x24xf32>
    %252 = tpu.matmul %250, %251, %cst_78 {dimension_numbers = #tpu.dot_dimension_numbers<[1], [0], [0], [1], [0, 0, 1, 1], [], []>} : vector<16x16xbf16>, vector<16x24xbf16>, vector<16x24xf32> -> vector<16x24xf32>
    %253 = vector.extract_strided_slice %227 {offsets = [0, 1], sizes = [16, 1], strides = [1, 1]} : vector<16x5xf32> to vector<16x1xf32>
    %254 = vector.extract_strided_slice %225 {offsets = [1, 0], sizes = [1, 16], strides = [1, 1]} : vector<5x16xf32> to vector<1x16xf32>
    %255 = vector.broadcast %253 : vector<16x1xf32> to vector<16x16xf32>
    %256 = vector.broadcast %254 : vector<1x16xf32> to vector<16x16xf32>
    %257 = arith.addf %255, %256 : vector<16x16xf32>
    %cst_79 = arith.constant 0.000000e+00 : f32
    %258 = vector.broadcast %cst_79 : f32 to vector<16x16xf32>
    %259 = arith.cmpf oge, %257, %258 : vector<16x16xf32>
    %cst_80 = arith.constant 2.000000e-01 : f32
    %260 = vector.broadcast %cst_80 : f32 to vector<16x16xf32>
    %261 = arith.mulf %260, %257 : vector<16x16xf32>
    %262 = arith.select %259, %257, %261 : vector<16x16xi1>, vector<16x16xf32>
    %263 = arith.addf %262, %5 : vector<16x16xf32>
    %cst_81 = arith.constant dense<0xFF800000> : vector<16xf32>
    %264 = vector.multi_reduction <maximumf>, %263, %cst_81 [1] : vector<16x16xf32> to vector<16xf32>
    %265 = vector.shape_cast %264 : vector<16xf32> to vector<16x1xf32>
    %266 = vector.broadcast %265 : vector<16x1xf32> to vector<16x16xf32>
    %267 = arith.subf %263, %266 : vector<16x16xf32>
    %268 = math.exp %267 : vector<16x16xf32>
    %cst_82 = arith.constant dense<0.000000e+00> : vector<16xf32>
    %269 = vector.multi_reduction <add>, %268, %cst_82 [1] : vector<16x16xf32> to vector<16xf32>
    %270 = vector.shape_cast %269 : vector<16xf32> to vector<16x1xf32>
    %271 = tpu.reciprocal %270 {approx = true} : vector<16x1xf32> -> vector<16x1xf32>
    %272 = vector.broadcast %271 : vector<16x1xf32> to vector<16x16xf32>
    %273 = arith.mulf %268, %272 : vector<16x16xf32>
    %274 = arith.truncf %273 : vector<16x16xf32> to vector<16x16xbf16>
    %275 = vector.extract_strided_slice %228 {offsets = [0, 24], sizes = [16, 24], strides = [1, 1]} : vector<16x120xbf16> to vector<16x24xbf16>
    %cst_83 = arith.constant dense<0.000000e+00> : vector<16x24xf32>
    %276 = tpu.matmul %274, %275, %cst_83 {dimension_numbers = #tpu.dot_dimension_numbers<[1], [0], [0], [1], [0, 0, 1, 1], [], []>} : vector<16x16xbf16>, vector<16x24xbf16>, vector<16x24xf32> -> vector<16x24xf32>
    %277 = vector.extract_strided_slice %227 {offsets = [0, 2], sizes = [16, 1], strides = [1, 1]} : vector<16x5xf32> to vector<16x1xf32>
    %278 = vector.extract_strided_slice %225 {offsets = [2, 0], sizes = [1, 16], strides = [1, 1]} : vector<5x16xf32> to vector<1x16xf32>
    %279 = vector.broadcast %277 : vector<16x1xf32> to vector<16x16xf32>
    %280 = vector.broadcast %278 : vector<1x16xf32> to vector<16x16xf32>
    %281 = arith.addf %279, %280 : vector<16x16xf32>
    %cst_84 = arith.constant 0.000000e+00 : f32
    %282 = vector.broadcast %cst_84 : f32 to vector<16x16xf32>
    %283 = arith.cmpf oge, %281, %282 : vector<16x16xf32>
    %cst_85 = arith.constant 2.000000e-01 : f32
    %284 = vector.broadcast %cst_85 : f32 to vector<16x16xf32>
    %285 = arith.mulf %284, %281 : vector<16x16xf32>
    %286 = arith.select %283, %281, %285 : vector<16x16xi1>, vector<16x16xf32>
    %287 = arith.addf %286, %5 : vector<16x16xf32>
    %cst_86 = arith.constant dense<0xFF800000> : vector<16xf32>
    %288 = vector.multi_reduction <maximumf>, %287, %cst_86 [1] : vector<16x16xf32> to vector<16xf32>
    %289 = vector.shape_cast %288 : vector<16xf32> to vector<16x1xf32>
    %290 = vector.broadcast %289 : vector<16x1xf32> to vector<16x16xf32>
    %291 = arith.subf %287, %290 : vector<16x16xf32>
    %292 = math.exp %291 : vector<16x16xf32>
    %cst_87 = arith.constant dense<0.000000e+00> : vector<16xf32>
    %293 = vector.multi_reduction <add>, %292, %cst_87 [1] : vector<16x16xf32> to vector<16xf32>
    %294 = vector.shape_cast %293 : vector<16xf32> to vector<16x1xf32>
    %295 = tpu.reciprocal %294 {approx = true} : vector<16x1xf32> -> vector<16x1xf32>
    %296 = vector.broadcast %295 : vector<16x1xf32> to vector<16x16xf32>
    %297 = arith.mulf %292, %296 : vector<16x16xf32>
    %298 = arith.truncf %297 : vector<16x16xf32> to vector<16x16xbf16>
    %299 = vector.extract_strided_slice %228 {offsets = [0, 48], sizes = [16, 24], strides = [1, 1]} : vector<16x120xbf16> to vector<16x24xbf16>
    %cst_88 = arith.constant dense<0.000000e+00> : vector<16x24xf32>
    %300 = tpu.matmul %298, %299, %cst_88 {dimension_numbers = #tpu.dot_dimension_numbers<[1], [0], [0], [1], [0, 0, 1, 1], [], []>} : vector<16x16xbf16>, vector<16x24xbf16>, vector<16x24xf32> -> vector<16x24xf32>
    %301 = vector.extract_strided_slice %227 {offsets = [0, 3], sizes = [16, 1], strides = [1, 1]} : vector<16x5xf32> to vector<16x1xf32>
    %302 = vector.extract_strided_slice %225 {offsets = [3, 0], sizes = [1, 16], strides = [1, 1]} : vector<5x16xf32> to vector<1x16xf32>
    %303 = vector.broadcast %301 : vector<16x1xf32> to vector<16x16xf32>
    %304 = vector.broadcast %302 : vector<1x16xf32> to vector<16x16xf32>
    %305 = arith.addf %303, %304 : vector<16x16xf32>
    %cst_89 = arith.constant 0.000000e+00 : f32
    %306 = vector.broadcast %cst_89 : f32 to vector<16x16xf32>
    %307 = arith.cmpf oge, %305, %306 : vector<16x16xf32>
    %cst_90 = arith.constant 2.000000e-01 : f32
    %308 = vector.broadcast %cst_90 : f32 to vector<16x16xf32>
    %309 = arith.mulf %308, %305 : vector<16x16xf32>
    %310 = arith.select %307, %305, %309 : vector<16x16xi1>, vector<16x16xf32>
    %311 = arith.addf %310, %5 : vector<16x16xf32>
    %cst_91 = arith.constant dense<0xFF800000> : vector<16xf32>
    %312 = vector.multi_reduction <maximumf>, %311, %cst_91 [1] : vector<16x16xf32> to vector<16xf32>
    %313 = vector.shape_cast %312 : vector<16xf32> to vector<16x1xf32>
    %314 = vector.broadcast %313 : vector<16x1xf32> to vector<16x16xf32>
    %315 = arith.subf %311, %314 : vector<16x16xf32>
    %316 = math.exp %315 : vector<16x16xf32>
    %cst_92 = arith.constant dense<0.000000e+00> : vector<16xf32>
    %317 = vector.multi_reduction <add>, %316, %cst_92 [1] : vector<16x16xf32> to vector<16xf32>
    %318 = vector.shape_cast %317 : vector<16xf32> to vector<16x1xf32>
    %319 = tpu.reciprocal %318 {approx = true} : vector<16x1xf32> -> vector<16x1xf32>
    %320 = vector.broadcast %319 : vector<16x1xf32> to vector<16x16xf32>
    %321 = arith.mulf %316, %320 : vector<16x16xf32>
    %322 = arith.truncf %321 : vector<16x16xf32> to vector<16x16xbf16>
    %323 = vector.extract_strided_slice %228 {offsets = [0, 72], sizes = [16, 24], strides = [1, 1]} : vector<16x120xbf16> to vector<16x24xbf16>
    %cst_93 = arith.constant dense<0.000000e+00> : vector<16x24xf32>
    %324 = tpu.matmul %322, %323, %cst_93 {dimension_numbers = #tpu.dot_dimension_numbers<[1], [0], [0], [1], [0, 0, 1, 1], [], []>} : vector<16x16xbf16>, vector<16x24xbf16>, vector<16x24xf32> -> vector<16x24xf32>
    %325 = vector.extract_strided_slice %227 {offsets = [0, 4], sizes = [16, 1], strides = [1, 1]} : vector<16x5xf32> to vector<16x1xf32>
    %326 = vector.extract_strided_slice %225 {offsets = [4, 0], sizes = [1, 16], strides = [1, 1]} : vector<5x16xf32> to vector<1x16xf32>
    %327 = vector.broadcast %325 : vector<16x1xf32> to vector<16x16xf32>
    %328 = vector.broadcast %326 : vector<1x16xf32> to vector<16x16xf32>
    %329 = arith.addf %327, %328 : vector<16x16xf32>
    %cst_94 = arith.constant 0.000000e+00 : f32
    %330 = vector.broadcast %cst_94 : f32 to vector<16x16xf32>
    %331 = arith.cmpf oge, %329, %330 : vector<16x16xf32>
    %cst_95 = arith.constant 2.000000e-01 : f32
    %332 = vector.broadcast %cst_95 : f32 to vector<16x16xf32>
    %333 = arith.mulf %332, %329 : vector<16x16xf32>
    %334 = arith.select %331, %329, %333 : vector<16x16xi1>, vector<16x16xf32>
    %335 = arith.addf %334, %5 : vector<16x16xf32>
    %cst_96 = arith.constant dense<0xFF800000> : vector<16xf32>
    %336 = vector.multi_reduction <maximumf>, %335, %cst_96 [1] : vector<16x16xf32> to vector<16xf32>
    %337 = vector.shape_cast %336 : vector<16xf32> to vector<16x1xf32>
    %338 = vector.broadcast %337 : vector<16x1xf32> to vector<16x16xf32>
    %339 = arith.subf %335, %338 : vector<16x16xf32>
    %340 = math.exp %339 : vector<16x16xf32>
    %cst_97 = arith.constant dense<0.000000e+00> : vector<16xf32>
    %341 = vector.multi_reduction <add>, %340, %cst_97 [1] : vector<16x16xf32> to vector<16xf32>
    %342 = vector.shape_cast %341 : vector<16xf32> to vector<16x1xf32>
    %343 = tpu.reciprocal %342 {approx = true} : vector<16x1xf32> -> vector<16x1xf32>
    %344 = vector.broadcast %343 : vector<16x1xf32> to vector<16x16xf32>
    %345 = arith.mulf %340, %344 : vector<16x16xf32>
    %346 = arith.truncf %345 : vector<16x16xf32> to vector<16x16xbf16>
    %347 = vector.extract_strided_slice %228 {offsets = [0, 96], sizes = [16, 24], strides = [1, 1]} : vector<16x120xbf16> to vector<16x24xbf16>
    %cst_98 = arith.constant dense<0.000000e+00> : vector<16x24xf32>
    %348 = tpu.matmul %346, %347, %cst_98 {dimension_numbers = #tpu.dot_dimension_numbers<[1], [0], [0], [1], [0, 0, 1, 1], [], []>} : vector<16x16xbf16>, vector<16x24xbf16>, vector<16x24xf32> -> vector<16x24xf32>
    %349 = arith.addf %252, %276 : vector<16x24xf32>
    %350 = arith.addf %349, %300 : vector<16x24xf32>
    %351 = arith.addf %350, %324 : vector<16x24xf32>
    %352 = arith.addf %351, %348 : vector<16x24xf32>
    %cst_99 = arith.constant 2.000000e-01 : f32
    %353 = vector.broadcast %cst_99 : f32 to vector<16x24xf32>
    %354 = arith.mulf %352, %353 : vector<16x24xf32>
    %c6 = arith.constant 6 : index
    %c0_100 = arith.constant 0 : index
    %355 = vector.load %arg3[%c6, %c0_100] : memref<24x32xf32, #tpu.memory_space<vmem>>, vector<1x24xf32>
    %356 = vector.broadcast %355 : vector<1x24xf32> to vector<16x24xf32>
    %357 = arith.addf %354, %356 : vector<16x24xf32>
    %c17 = arith.constant 17 : index
    %c0_101 = arith.constant 0 : index
    %358 = vector.load %arg3[%c17, %c0_101] : memref<24x32xf32, #tpu.memory_space<vmem>>, vector<1x24xf32>
    %359 = vector.broadcast %358 : vector<1x24xf32> to vector<16x24xf32>
    %360 = arith.mulf %357, %359 : vector<16x24xf32>
    %c18 = arith.constant 18 : index
    %c0_102 = arith.constant 0 : index
    %361 = vector.load %arg3[%c18, %c0_102] : memref<24x32xf32, #tpu.memory_space<vmem>>, vector<1x24xf32>
    %362 = vector.broadcast %361 : vector<1x24xf32> to vector<16x24xf32>
    %363 = arith.addf %360, %362 : vector<16x24xf32>
    %cst_103 = arith.constant 0.000000e+00 : f32
    %364 = vector.broadcast %cst_103 : f32 to vector<16x24xf32>
    %365 = arith.cmpf oge, %363, %364 : vector<16x24xf32>
    %cst_104 = arith.constant 0.00999999977 : f32
    %366 = vector.broadcast %cst_104 : f32 to vector<16x24xf32>
    %367 = arith.mulf %366, %363 : vector<16x24xf32>
    %368 = arith.select %365, %363, %367 : vector<16x24xi1>, vector<16x24xf32>
    %c120 = arith.constant 120 : index
    %c0_105 = arith.constant 0 : index
    %369 = vector.load %arg2[%c120, %c0_105] : memref<280x165xbf16, #tpu.memory_space<vmem>>, vector<8x32xbf16>
    %370 = arith.truncf %208 : vector<16x8xf32> to vector<16x8xbf16>
    %cst_106 = arith.constant dense<0.000000e+00> : vector<16x32xf32>
    %371 = tpu.matmul %370, %369, %cst_106 {dimension_numbers = #tpu.dot_dimension_numbers<[1], [0], [0], [1], [0, 0, 1, 1], [], []>} : vector<16x8xbf16>, vector<8x32xbf16>, vector<16x32xf32> -> vector<16x32xf32>
    %c128 = arith.constant 128 : index
    %c0_107 = arith.constant 0 : index
    %372 = vector.load %arg2[%c128, %c0_107] : memref<280x165xbf16, #tpu.memory_space<vmem>>, vector<24x32xbf16>
    %373 = arith.truncf %368 : vector<16x24xf32> to vector<16x24xbf16>
    %cst_108 = arith.constant dense<0.000000e+00> : vector<16x32xf32>
    %374 = tpu.matmul %373, %372, %cst_108 {dimension_numbers = #tpu.dot_dimension_numbers<[1], [0], [0], [1], [0, 0, 1, 1], [], []>} : vector<16x24xbf16>, vector<24x32xbf16>, vector<16x32xf32> -> vector<16x32xf32>
    %375 = arith.addf %371, %374 : vector<16x32xf32>
    %376 = arith.truncf %375 : vector<16x32xf32> to vector<16x32xbf16>
    %cst_109 = arith.constant dense<0.000000e+00> : vector<16x32xf32>
    %377 = tpu.matmul %6, %376, %cst_109 {dimension_numbers = #tpu.dot_dimension_numbers<[1], [0], [0], [1], [0, 0, 1, 1], [], []>} : vector<16x16xbf16>, vector<16x32xbf16>, vector<16x32xf32> -> vector<16x32xf32>
    %c7 = arith.constant 7 : index
    %c0_110 = arith.constant 0 : index
    %378 = vector.load %arg3[%c7, %c0_110] : memref<24x32xf32, #tpu.memory_space<vmem>>, vector<1x32xf32>
    %379 = vector.broadcast %378 : vector<1x32xf32> to vector<16x32xf32>
    %380 = arith.addf %377, %379 : vector<16x32xf32>
    %381 = arith.truncf %380 : vector<16x32xf32> to vector<16x32xbf16>
    %c152 = arith.constant 152 : index
    %c0_111 = arith.constant 0 : index
    %382 = vector.load %arg2[%c152, %c0_111] : memref<280x165xbf16, #tpu.memory_space<vmem>>, vector<32x165xbf16>
    %cst_112 = arith.constant dense<0.000000e+00> : vector<16x165xf32>
    %383 = tpu.matmul %381, %382, %cst_112 {dimension_numbers = #tpu.dot_dimension_numbers<[1], [0], [0], [1], [0, 0, 1, 1], [], []>} : vector<16x32xbf16>, vector<32x165xbf16>, vector<16x165xf32> -> vector<16x165xf32>
    %c184 = arith.constant 184 : index
    %c0_113 = arith.constant 0 : index
    %384 = vector.load %arg2[%c184, %c0_113] : memref<280x165xbf16, #tpu.memory_space<vmem>>, vector<5x32xbf16>
    %cst_114 = arith.constant dense<0.000000e+00> : vector<5x16xf32>
    %385 = tpu.matmul %384, %381, %cst_114 {dimension_numbers = #tpu.dot_dimension_numbers<[1], [1], [0], [0], [0, 0, 1, 0], [], []>} : vector<5x32xbf16>, vector<16x32xbf16>, vector<5x16xf32> -> vector<5x16xf32>
    %386 = vector.extract_strided_slice %383 {offsets = [0, 0], sizes = [16, 160], strides = [1, 1]} : vector<16x165xf32> to vector<16x160xf32>
    %387 = vector.extract_strided_slice %383 {offsets = [0, 160], sizes = [16, 5], strides = [1, 1]} : vector<16x165xf32> to vector<16x5xf32>
    %388 = arith.truncf %386 : vector<16x160xf32> to vector<16x160xbf16>
    %389 = vector.extract_strided_slice %387 {offsets = [0, 0], sizes = [16, 1], strides = [1, 1]} : vector<16x5xf32> to vector<16x1xf32>
    %390 = vector.extract_strided_slice %385 {offsets = [0, 0], sizes = [1, 16], strides = [1, 1]} : vector<5x16xf32> to vector<1x16xf32>
    %391 = vector.broadcast %389 : vector<16x1xf32> to vector<16x16xf32>
    %392 = vector.broadcast %390 : vector<1x16xf32> to vector<16x16xf32>
    %393 = arith.addf %391, %392 : vector<16x16xf32>
    %cst_115 = arith.constant 0.000000e+00 : f32
    %394 = vector.broadcast %cst_115 : f32 to vector<16x16xf32>
    %395 = arith.cmpf oge, %393, %394 : vector<16x16xf32>
    %cst_116 = arith.constant 2.000000e-01 : f32
    %396 = vector.broadcast %cst_116 : f32 to vector<16x16xf32>
    %397 = arith.mulf %396, %393 : vector<16x16xf32>
    %398 = arith.select %395, %393, %397 : vector<16x16xi1>, vector<16x16xf32>
    %399 = arith.addf %398, %5 : vector<16x16xf32>
    %cst_117 = arith.constant dense<0xFF800000> : vector<16xf32>
    %400 = vector.multi_reduction <maximumf>, %399, %cst_117 [1] : vector<16x16xf32> to vector<16xf32>
    %401 = vector.shape_cast %400 : vector<16xf32> to vector<16x1xf32>
    %402 = vector.broadcast %401 : vector<16x1xf32> to vector<16x16xf32>
    %403 = arith.subf %399, %402 : vector<16x16xf32>
    %404 = math.exp %403 : vector<16x16xf32>
    %cst_118 = arith.constant dense<0.000000e+00> : vector<16xf32>
    %405 = vector.multi_reduction <add>, %404, %cst_118 [1] : vector<16x16xf32> to vector<16xf32>
    %406 = vector.shape_cast %405 : vector<16xf32> to vector<16x1xf32>
    %407 = tpu.reciprocal %406 {approx = true} : vector<16x1xf32> -> vector<16x1xf32>
    %408 = vector.broadcast %407 : vector<16x1xf32> to vector<16x16xf32>
    %409 = arith.mulf %404, %408 : vector<16x16xf32>
    %410 = arith.truncf %409 : vector<16x16xf32> to vector<16x16xbf16>
    %411 = vector.extract_strided_slice %388 {offsets = [0, 0], sizes = [16, 32], strides = [1, 1]} : vector<16x160xbf16> to vector<16x32xbf16>
    %cst_119 = arith.constant dense<0.000000e+00> : vector<16x32xf32>
    %412 = tpu.matmul %410, %411, %cst_119 {dimension_numbers = #tpu.dot_dimension_numbers<[1], [0], [0], [1], [0, 0, 1, 1], [], []>} : vector<16x16xbf16>, vector<16x32xbf16>, vector<16x32xf32> -> vector<16x32xf32>
    %413 = vector.extract_strided_slice %387 {offsets = [0, 1], sizes = [16, 1], strides = [1, 1]} : vector<16x5xf32> to vector<16x1xf32>
    %414 = vector.extract_strided_slice %385 {offsets = [1, 0], sizes = [1, 16], strides = [1, 1]} : vector<5x16xf32> to vector<1x16xf32>
    %415 = vector.broadcast %413 : vector<16x1xf32> to vector<16x16xf32>
    %416 = vector.broadcast %414 : vector<1x16xf32> to vector<16x16xf32>
    %417 = arith.addf %415, %416 : vector<16x16xf32>
    %cst_120 = arith.constant 0.000000e+00 : f32
    %418 = vector.broadcast %cst_120 : f32 to vector<16x16xf32>
    %419 = arith.cmpf oge, %417, %418 : vector<16x16xf32>
    %cst_121 = arith.constant 2.000000e-01 : f32
    %420 = vector.broadcast %cst_121 : f32 to vector<16x16xf32>
    %421 = arith.mulf %420, %417 : vector<16x16xf32>
    %422 = arith.select %419, %417, %421 : vector<16x16xi1>, vector<16x16xf32>
    %423 = arith.addf %422, %5 : vector<16x16xf32>
    %cst_122 = arith.constant dense<0xFF800000> : vector<16xf32>
    %424 = vector.multi_reduction <maximumf>, %423, %cst_122 [1] : vector<16x16xf32> to vector<16xf32>
    %425 = vector.shape_cast %424 : vector<16xf32> to vector<16x1xf32>
    %426 = vector.broadcast %425 : vector<16x1xf32> to vector<16x16xf32>
    %427 = arith.subf %423, %426 : vector<16x16xf32>
    %428 = math.exp %427 : vector<16x16xf32>
    %cst_123 = arith.constant dense<0.000000e+00> : vector<16xf32>
    %429 = vector.multi_reduction <add>, %428, %cst_123 [1] : vector<16x16xf32> to vector<16xf32>
    %430 = vector.shape_cast %429 : vector<16xf32> to vector<16x1xf32>
    %431 = tpu.reciprocal %430 {approx = true} : vector<16x1xf32> -> vector<16x1xf32>
    %432 = vector.broadcast %431 : vector<16x1xf32> to vector<16x16xf32>
    %433 = arith.mulf %428, %432 : vector<16x16xf32>
    %434 = arith.truncf %433 : vector<16x16xf32> to vector<16x16xbf16>
    %435 = vector.extract_strided_slice %388 {offsets = [0, 32], sizes = [16, 32], strides = [1, 1]} : vector<16x160xbf16> to vector<16x32xbf16>
    %cst_124 = arith.constant dense<0.000000e+00> : vector<16x32xf32>
    %436 = tpu.matmul %434, %435, %cst_124 {dimension_numbers = #tpu.dot_dimension_numbers<[1], [0], [0], [1], [0, 0, 1, 1], [], []>} : vector<16x16xbf16>, vector<16x32xbf16>, vector<16x32xf32> -> vector<16x32xf32>
    %437 = vector.extract_strided_slice %387 {offsets = [0, 2], sizes = [16, 1], strides = [1, 1]} : vector<16x5xf32> to vector<16x1xf32>
    %438 = vector.extract_strided_slice %385 {offsets = [2, 0], sizes = [1, 16], strides = [1, 1]} : vector<5x16xf32> to vector<1x16xf32>
    %439 = vector.broadcast %437 : vector<16x1xf32> to vector<16x16xf32>
    %440 = vector.broadcast %438 : vector<1x16xf32> to vector<16x16xf32>
    %441 = arith.addf %439, %440 : vector<16x16xf32>
    %cst_125 = arith.constant 0.000000e+00 : f32
    %442 = vector.broadcast %cst_125 : f32 to vector<16x16xf32>
    %443 = arith.cmpf oge, %441, %442 : vector<16x16xf32>
    %cst_126 = arith.constant 2.000000e-01 : f32
    %444 = vector.broadcast %cst_126 : f32 to vector<16x16xf32>
    %445 = arith.mulf %444, %441 : vector<16x16xf32>
    %446 = arith.select %443, %441, %445 : vector<16x16xi1>, vector<16x16xf32>
    %447 = arith.addf %446, %5 : vector<16x16xf32>
    %cst_127 = arith.constant dense<0xFF800000> : vector<16xf32>
    %448 = vector.multi_reduction <maximumf>, %447, %cst_127 [1] : vector<16x16xf32> to vector<16xf32>
    %449 = vector.shape_cast %448 : vector<16xf32> to vector<16x1xf32>
    %450 = vector.broadcast %449 : vector<16x1xf32> to vector<16x16xf32>
    %451 = arith.subf %447, %450 : vector<16x16xf32>
    %452 = math.exp %451 : vector<16x16xf32>
    %cst_128 = arith.constant dense<0.000000e+00> : vector<16xf32>
    %453 = vector.multi_reduction <add>, %452, %cst_128 [1] : vector<16x16xf32> to vector<16xf32>
    %454 = vector.shape_cast %453 : vector<16xf32> to vector<16x1xf32>
    %455 = tpu.reciprocal %454 {approx = true} : vector<16x1xf32> -> vector<16x1xf32>
    %456 = vector.broadcast %455 : vector<16x1xf32> to vector<16x16xf32>
    %457 = arith.mulf %452, %456 : vector<16x16xf32>
    %458 = arith.truncf %457 : vector<16x16xf32> to vector<16x16xbf16>
    %459 = vector.extract_strided_slice %388 {offsets = [0, 64], sizes = [16, 32], strides = [1, 1]} : vector<16x160xbf16> to vector<16x32xbf16>
    %cst_129 = arith.constant dense<0.000000e+00> : vector<16x32xf32>
    %460 = tpu.matmul %458, %459, %cst_129 {dimension_numbers = #tpu.dot_dimension_numbers<[1], [0], [0], [1], [0, 0, 1, 1], [], []>} : vector<16x16xbf16>, vector<16x32xbf16>, vector<16x32xf32> -> vector<16x32xf32>
    %461 = vector.extract_strided_slice %387 {offsets = [0, 3], sizes = [16, 1], strides = [1, 1]} : vector<16x5xf32> to vector<16x1xf32>
    %462 = vector.extract_strided_slice %385 {offsets = [3, 0], sizes = [1, 16], strides = [1, 1]} : vector<5x16xf32> to vector<1x16xf32>
    %463 = vector.broadcast %461 : vector<16x1xf32> to vector<16x16xf32>
    %464 = vector.broadcast %462 : vector<1x16xf32> to vector<16x16xf32>
    %465 = arith.addf %463, %464 : vector<16x16xf32>
    %cst_130 = arith.constant 0.000000e+00 : f32
    %466 = vector.broadcast %cst_130 : f32 to vector<16x16xf32>
    %467 = arith.cmpf oge, %465, %466 : vector<16x16xf32>
    %cst_131 = arith.constant 2.000000e-01 : f32
    %468 = vector.broadcast %cst_131 : f32 to vector<16x16xf32>
    %469 = arith.mulf %468, %465 : vector<16x16xf32>
    %470 = arith.select %467, %465, %469 : vector<16x16xi1>, vector<16x16xf32>
    %471 = arith.addf %470, %5 : vector<16x16xf32>
    %cst_132 = arith.constant dense<0xFF800000> : vector<16xf32>
    %472 = vector.multi_reduction <maximumf>, %471, %cst_132 [1] : vector<16x16xf32> to vector<16xf32>
    %473 = vector.shape_cast %472 : vector<16xf32> to vector<16x1xf32>
    %474 = vector.broadcast %473 : vector<16x1xf32> to vector<16x16xf32>
    %475 = arith.subf %471, %474 : vector<16x16xf32>
    %476 = math.exp %475 : vector<16x16xf32>
    %cst_133 = arith.constant dense<0.000000e+00> : vector<16xf32>
    %477 = vector.multi_reduction <add>, %476, %cst_133 [1] : vector<16x16xf32> to vector<16xf32>
    %478 = vector.shape_cast %477 : vector<16xf32> to vector<16x1xf32>
    %479 = tpu.reciprocal %478 {approx = true} : vector<16x1xf32> -> vector<16x1xf32>
    %480 = vector.broadcast %479 : vector<16x1xf32> to vector<16x16xf32>
    %481 = arith.mulf %476, %480 : vector<16x16xf32>
    %482 = arith.truncf %481 : vector<16x16xf32> to vector<16x16xbf16>
    %483 = vector.extract_strided_slice %388 {offsets = [0, 96], sizes = [16, 32], strides = [1, 1]} : vector<16x160xbf16> to vector<16x32xbf16>
    %cst_134 = arith.constant dense<0.000000e+00> : vector<16x32xf32>
    %484 = tpu.matmul %482, %483, %cst_134 {dimension_numbers = #tpu.dot_dimension_numbers<[1], [0], [0], [1], [0, 0, 1, 1], [], []>} : vector<16x16xbf16>, vector<16x32xbf16>, vector<16x32xf32> -> vector<16x32xf32>
    %485 = vector.extract_strided_slice %387 {offsets = [0, 4], sizes = [16, 1], strides = [1, 1]} : vector<16x5xf32> to vector<16x1xf32>
    %486 = vector.extract_strided_slice %385 {offsets = [4, 0], sizes = [1, 16], strides = [1, 1]} : vector<5x16xf32> to vector<1x16xf32>
    %487 = vector.broadcast %485 : vector<16x1xf32> to vector<16x16xf32>
    %488 = vector.broadcast %486 : vector<1x16xf32> to vector<16x16xf32>
    %489 = arith.addf %487, %488 : vector<16x16xf32>
    %cst_135 = arith.constant 0.000000e+00 : f32
    %490 = vector.broadcast %cst_135 : f32 to vector<16x16xf32>
    %491 = arith.cmpf oge, %489, %490 : vector<16x16xf32>
    %cst_136 = arith.constant 2.000000e-01 : f32
    %492 = vector.broadcast %cst_136 : f32 to vector<16x16xf32>
    %493 = arith.mulf %492, %489 : vector<16x16xf32>
    %494 = arith.select %491, %489, %493 : vector<16x16xi1>, vector<16x16xf32>
    %495 = arith.addf %494, %5 : vector<16x16xf32>
    %cst_137 = arith.constant dense<0xFF800000> : vector<16xf32>
    %496 = vector.multi_reduction <maximumf>, %495, %cst_137 [1] : vector<16x16xf32> to vector<16xf32>
    %497 = vector.shape_cast %496 : vector<16xf32> to vector<16x1xf32>
    %498 = vector.broadcast %497 : vector<16x1xf32> to vector<16x16xf32>
    %499 = arith.subf %495, %498 : vector<16x16xf32>
    %500 = math.exp %499 : vector<16x16xf32>
    %cst_138 = arith.constant dense<0.000000e+00> : vector<16xf32>
    %501 = vector.multi_reduction <add>, %500, %cst_138 [1] : vector<16x16xf32> to vector<16xf32>
    %502 = vector.shape_cast %501 : vector<16xf32> to vector<16x1xf32>
    %503 = tpu.reciprocal %502 {approx = true} : vector<16x1xf32> -> vector<16x1xf32>
    %504 = vector.broadcast %503 : vector<16x1xf32> to vector<16x16xf32>
    %505 = arith.mulf %500, %504 : vector<16x16xf32>
    %506 = arith.truncf %505 : vector<16x16xf32> to vector<16x16xbf16>
    %507 = vector.extract_strided_slice %388 {offsets = [0, 128], sizes = [16, 32], strides = [1, 1]} : vector<16x160xbf16> to vector<16x32xbf16>
    %cst_139 = arith.constant dense<0.000000e+00> : vector<16x32xf32>
    %508 = tpu.matmul %506, %507, %cst_139 {dimension_numbers = #tpu.dot_dimension_numbers<[1], [0], [0], [1], [0, 0, 1, 1], [], []>} : vector<16x16xbf16>, vector<16x32xbf16>, vector<16x32xf32> -> vector<16x32xf32>
    %509 = arith.addf %412, %436 : vector<16x32xf32>
    %510 = arith.addf %509, %460 : vector<16x32xf32>
    %511 = arith.addf %510, %484 : vector<16x32xf32>
    %512 = arith.addf %511, %508 : vector<16x32xf32>
    %cst_140 = arith.constant 2.000000e-01 : f32
    %513 = vector.broadcast %cst_140 : f32 to vector<16x32xf32>
    %514 = arith.mulf %512, %513 : vector<16x32xf32>
    %c8 = arith.constant 8 : index
    %c0_141 = arith.constant 0 : index
    %515 = vector.load %arg3[%c8, %c0_141] : memref<24x32xf32, #tpu.memory_space<vmem>>, vector<1x32xf32>
    %516 = vector.broadcast %515 : vector<1x32xf32> to vector<16x32xf32>
    %517 = arith.addf %514, %516 : vector<16x32xf32>
    %c19 = arith.constant 19 : index
    %c0_142 = arith.constant 0 : index
    %518 = vector.load %arg3[%c19, %c0_142] : memref<24x32xf32, #tpu.memory_space<vmem>>, vector<1x32xf32>
    %519 = vector.broadcast %518 : vector<1x32xf32> to vector<16x32xf32>
    %520 = arith.mulf %517, %519 : vector<16x32xf32>
    %c20 = arith.constant 20 : index
    %c0_143 = arith.constant 0 : index
    %521 = vector.load %arg3[%c20, %c0_143] : memref<24x32xf32, #tpu.memory_space<vmem>>, vector<1x32xf32>
    %522 = vector.broadcast %521 : vector<1x32xf32> to vector<16x32xf32>
    %523 = arith.addf %520, %522 : vector<16x32xf32>
    %cst_144 = arith.constant 0.000000e+00 : f32
    %524 = vector.broadcast %cst_144 : f32 to vector<16x32xf32>
    %525 = arith.cmpf oge, %523, %524 : vector<16x32xf32>
    %cst_145 = arith.constant 0.00999999977 : f32
    %526 = vector.broadcast %cst_145 : f32 to vector<16x32xf32>
    %527 = arith.mulf %526, %523 : vector<16x32xf32>
    %528 = arith.select %525, %523, %527 : vector<16x32xi1>, vector<16x32xf32>
    %c0_146 = arith.constant 0 : index
    %c0_147 = arith.constant 0 : index
    %529 = vector.load %arg4[%c0_146, %c0_147] : memref<16x36xf32, #tpu.memory_space<vmem>>, vector<16x4xf32>
    tpu.vector_store %arg4[%c0_146, %c0_147], %52 {strides = array<i32>} : memref<16x36xf32, #tpu.memory_space<vmem>>, vector<16x4xf32>,
    %c0_148 = arith.constant 0 : index
    %c4_149 = arith.constant 4 : index
    %530 = vector.load %arg4[%c0_148, %c4_149] : memref<16x36xf32, #tpu.memory_space<vmem>>, vector<16x32xf32>
    tpu.vector_store %arg4[%c0_148, %c4_149], %528 {strides = array<i32>} : memref<16x36xf32, #tpu.memory_space<vmem>>, vector<16x32xf32>,
    %c192 = arith.constant 192 : index
    %c0_150 = arith.constant 0 : index
    %531 = vector.load %arg2[%c192, %c0_150] : memref<280x165xbf16, #tpu.memory_space<vmem>>, vector<4x18xbf16>
    %532 = arith.truncf %52 : vector<16x4xf32> to vector<16x4xbf16>
    %cst_151 = arith.constant dense<0.000000e+00> : vector<16x18xf32>
    %533 = tpu.matmul %532, %531, %cst_151 {dimension_numbers = #tpu.dot_dimension_numbers<[1], [0], [0], [1], [0, 0, 1, 1], [], []>} : vector<16x4xbf16>, vector<4x18xbf16>, vector<16x18xf32> -> vector<16x18xf32>
    %c200 = arith.constant 200 : index
    %c0_152 = arith.constant 0 : index
    %534 = vector.load %arg2[%c200, %c0_152] : memref<280x165xbf16, #tpu.memory_space<vmem>>, vector<32x18xbf16>
    %535 = arith.truncf %528 : vector<16x32xf32> to vector<16x32xbf16>
    %cst_153 = arith.constant dense<0.000000e+00> : vector<16x18xf32>
    %536 = tpu.matmul %535, %534, %cst_153 {dimension_numbers = #tpu.dot_dimension_numbers<[1], [0], [0], [1], [0, 0, 1, 1], [], []>} : vector<16x32xbf16>, vector<32x18xbf16>, vector<16x18xf32> -> vector<16x18xf32>
    %537 = arith.addf %533, %536 : vector<16x18xf32>
    %c9 = arith.constant 9 : index
    %c0_154 = arith.constant 0 : index
    %538 = vector.load %arg3[%c9, %c0_154] : memref<24x32xf32, #tpu.memory_space<vmem>>, vector<1x18xf32>
    %539 = vector.broadcast %538 : vector<1x18xf32> to vector<16x18xf32>
    %540 = arith.addf %537, %539 : vector<16x18xf32>
    %cst_155 = arith.constant 0.000000e+00 : f32
    %541 = vector.broadcast %cst_155 : f32 to vector<16x18xf32>
    %542 = arith.maximumf %540, %541 : vector<16x18xf32>
    %543 = math.absf %540 : vector<16x18xf32>
    %cst_156 = arith.constant 0.000000e+00 : f32
    %544 = vector.broadcast %cst_156 : f32 to vector<16x18xf32>
    %545 = arith.subf %544, %543 : vector<16x18xf32>
    %546 = math.exp %545 : vector<16x18xf32>
    %547 = math.log1p %546 : vector<16x18xf32>
    %548 = arith.addf %542, %547 : vector<16x18xf32>
    %c232 = arith.constant 232 : index
    %c0_157 = arith.constant 0 : index
    %549 = vector.load %arg2[%c232, %c0_157] : memref<280x165xbf16, #tpu.memory_space<vmem>>, vector<18x9xbf16>
    %550 = arith.truncf %548 : vector<16x18xf32> to vector<16x18xbf16>
    %cst_158 = arith.constant dense<0.000000e+00> : vector<16x9xf32>
    %551 = tpu.matmul %550, %549, %cst_158 {dimension_numbers = #tpu.dot_dimension_numbers<[1], [0], [0], [1], [0, 0, 1, 1], [], []>} : vector<16x18xbf16>, vector<18x9xbf16>, vector<16x9xf32> -> vector<16x9xf32>
    %c10 = arith.constant 10 : index
    %c0_159 = arith.constant 0 : index
    %552 = vector.load %arg3[%c10, %c0_159] : memref<24x32xf32, #tpu.memory_space<vmem>>, vector<1x9xf32>
    %553 = vector.broadcast %552 : vector<1x9xf32> to vector<16x9xf32>
    %554 = arith.addf %551, %553 : vector<16x9xf32>
    %cst_160 = arith.constant 0.000000e+00 : f32
    %555 = vector.broadcast %cst_160 : f32 to vector<16x9xf32>
    %556 = arith.maximumf %554, %555 : vector<16x9xf32>
    %557 = math.absf %554 : vector<16x9xf32>
    %cst_161 = arith.constant 0.000000e+00 : f32
    %558 = vector.broadcast %cst_161 : f32 to vector<16x9xf32>
    %559 = arith.subf %558, %557 : vector<16x9xf32>
    %560 = math.exp %559 : vector<16x9xf32>
    %561 = math.log1p %560 : vector<16x9xf32>
    %562 = arith.addf %556, %561 : vector<16x9xf32>
    %c256 = arith.constant 256 : index
    %c0_162 = arith.constant 0 : index
    %563 = vector.load %arg2[%c256, %c0_162] : memref<280x165xbf16, #tpu.memory_space<vmem>>, vector<9x4xbf16>
    %564 = arith.truncf %562 : vector<16x9xf32> to vector<16x9xbf16>
    %cst_163 = arith.constant dense<0.000000e+00> : vector<16x4xf32>
    %565 = tpu.matmul %564, %563, %cst_163 {dimension_numbers = #tpu.dot_dimension_numbers<[1], [0], [0], [1], [0, 0, 1, 1], [], []>} : vector<16x9xbf16>, vector<9x4xbf16>, vector<16x4xf32> -> vector<16x4xf32>
    %c11 = arith.constant 11 : index
    %c0_164 = arith.constant 0 : index
    %566 = vector.load %arg3[%c11, %c0_164] : memref<24x32xf32, #tpu.memory_space<vmem>>, vector<1x4xf32>
    %567 = vector.broadcast %566 : vector<1x4xf32> to vector<16x4xf32>
    %568 = arith.addf %565, %567 : vector<16x4xf32>
    %cst_165 = arith.constant 0.000000e+00 : f32
    %569 = vector.broadcast %cst_165 : f32 to vector<16x4xf32>
    %570 = arith.maximumf %568, %569 : vector<16x4xf32>
    %571 = math.absf %568 : vector<16x4xf32>
    %cst_166 = arith.constant 0.000000e+00 : f32
    %572 = vector.broadcast %cst_166 : f32 to vector<16x4xf32>
    %573 = arith.subf %572, %571 : vector<16x4xf32>
    %574 = math.exp %573 : vector<16x4xf32>
    %575 = math.log1p %574 : vector<16x4xf32>
    %576 = arith.addf %570, %575 : vector<16x4xf32>
    %c272 = arith.constant 272 : index
    %c0_167 = arith.constant 0 : index
    %577 = vector.load %arg2[%c272, %c0_167] : memref<280x165xbf16, #tpu.memory_space<vmem>>, vector<4x1xbf16>
    %578 = arith.truncf %576 : vector<16x4xf32> to vector<16x4xbf16>
    %cst_168 = arith.constant dense<0.000000e+00> : vector<16x1xf32>
    %579 = tpu.matmul %578, %577, %cst_168 {dimension_numbers = #tpu.dot_dimension_numbers<[1], [0], [0], [1], [0, 0, 1, 1], [], []>} : vector<16x4xbf16>, vector<4x1xbf16>, vector<16x1xf32> -> vector<16x1xf32>
    %c12 = arith.constant 12 : index
    %c0_169 = arith.constant 0 : index
    %580 = vector.load %arg3[%c12, %c0_169] : memref<24x32xf32, #tpu.memory_space<vmem>>, vector<1x1xf32>
    %581 = vector.broadcast %580 : vector<1x1xf32> to vector<16x1xf32>
    %582 = arith.addf %579, %581 : vector<16x1xf32>
    %cst_170 = arith.constant 0.000000e+00 : f32
    %583 = vector.broadcast %cst_170 : f32 to vector<16x1xf32>
    %584 = arith.subf %583, %582 : vector<16x1xf32>
    %585 = math.exp %584 : vector<16x1xf32>
    %cst_171 = arith.constant 1.000000e+00 : f32
    %586 = vector.broadcast %cst_171 : f32 to vector<16x1xf32>
    %587 = arith.addf %586, %585 : vector<16x1xf32>
    %588 = tpu.reciprocal %587 {approx = true} : vector<16x1xf32> -> vector<16x1xf32>
    %cst_172 = arith.constant 1.000000e+00 : f32
    %589 = vector.broadcast %cst_172 : f32 to vector<16x1xf32>
    %590 = arith.minimumf %588, %589 : vector<16x1xf32>
    %c0_173 = arith.constant 0 : index
    %c0_174 = arith.constant 0 : index
    %591 = vector.load %arg5[%c0_173, %c0_174] : memref<16x1xf32, #tpu.memory_space<vmem>>, vector<16x1xf32>
    tpu.vector_store %arg5[%c0_173, %c0_174], %590 {strides = array<i32>} : memref<16x1xf32, #tpu.memory_space<vmem>>, vector<16x1xf32>,
    return
  }
}

</mosaic_0001>

<bundles_post_ra>
// kernel: gnn_forward.1
= control target key start
LH: loop header
LB: loop body
LE: loop exit
PB: predicated region body
PF: predicated region fallthrough
CT: control target
= control target key end

     0   :  { %v3605_v0 = vmov 0.0   ;;  %vm3606_vm0 = vmmov 0   ;;  %vm44_vm1 = vcmask 130048   ;;  %s4382_s0 = inlined_call_operand.vmem [shape: f32[16,16], index: 0, kind: input, shape index: {}]   ;;  %s4383_s1 = inlined_call_operand.vmem [shape: f32[16,16], index: 1, kind: input, shape index: {}]   ;;  %s4384_s2 = inlined_call_operand.vmem [shape: bf16[280,165], index: 2, kind: input, shape index: {}]   ;;  %s4385_s3 = inlined_call_operand.vmem [shape: f32[24,32], index: 3, kind: input, shape index: {}]   ;;  %s4386_s4 = inlined_call_operand.hbm [shape: f32[16,36], index: 4, kind: output, shape index: {0}]   ;;  %s4387_s5 = inlined_call_operand.vmem [shape: f32[16,1], index: 5, kind: output, shape index: {1}]  }
   0x1   :  { %3063 = vmatprep.subr.bf16.mxu0 %v3605_v0  ;;  %v3396_v1 = vld [vmem:[%s4384_s2] ss:$8 sps:$4 sm:$0xff]   ;;  %3065 = vmatprep.mubr.msk.bf16.mxu0 %vm3606_vm0, %v3605_v0 }
   0x2   :  { %v28_v2 = vld [vmem:[%s4383_s1] sm:$0xff]  ;;  %v29_v3 = vld [vmem:[%s4383_s1 + $0x8] sm:$0xff]  ;;  %3069 = vmatprep.subr.bf16.mxu1 %v3605_v0  ;;  %3073 = vmatprep.mubr.msk.bf16.mxu1 %vm3606_vm0, %v3605_v0 }
   0x3   :  { %v32_v4 = vpack.c.bf16 %v29_v3, %v28_v2  ;;  %3064 = vmatpush3.bf16.msra.mxu0 %v3396_v1 }
   0x4   :  { %3077 = vmatprep.subr.bf16.mxu0 %v3605_v0 }
   0x6   :  { %3066 = vmatmul.mubr.msk.bf16.vlgmr.msra.gmra.mrb[0].mxu0 %vm44_vm1, %v32_v4 }
   0x7   :  { %3079 = vmatprep.mubr.msk.bf16.mxu0 %vm3606_vm0, %v3605_v0 }
   0x8   :  { %11 = vsyncpa [#allocation3], 0  ;;  %v3397_v5 = vld [vmem:[%s4384_s2 + $0x10] ss:$8 sps:$4 sm:$0xff]   ;;  %v3398_v6 = vld [vmem:[%s4384_s2 + $0x20] ss:$8 sps:$4 sm:$0xff]  }
   0x9   :  { %3070 = vmatpush3.bf16.msra.mxu1 %v3397_v5  ;;  %v2914_v7 = vld [vmem:[%s4385_s3] ss:$0 sm:$0xff]  ;;  %vm141_vm4 = vcmask 261120   ;;  %v216_v43 = vld [vmem:[%s4384_s2 + $0x30] sm:$0xf]  ;;  %vm227_vm5 = vcmask 1043456  }
   0xa   :  { %3071 = vmatprep.subr.bf16.mxu1 %v3605_v0  ;;  %v229_v44 = vsel %vm227_vm5, %v216_v43, 0  ;;  %v2917_v45 = vld [vmem:[%s4385_s3 + $0x1] ss:$0 sm:$0xff]  ;;  %vm223_vm8 = vcmask 64512   ;;  %vm298_vm9 = vcmask 1041408   ;;  %vm294_vm11 = vcmask 31744  }
   0xb   :  { %3078 = vmatpush3.bf16.msra.mxu0 %v229_v44  ;;  %s3613_s25 = smov 120   ;;  %s3614_s1 = smov 112  }
   0xc   :  { %3089 = vmatprep.subr.bf16.mxu0 %v3605_v0  ;;  %s3615_s26 = smov 104   ;;  %s3616_s27 = smov 96  }
   0xd   :  { %3072 = vmatpush3.bf16.msra.mxu1 %v3398_v6  ;;  %s3622_s19 = smov 80   ;;  %s3623_s20 = smov 56  }
   0xe   :  { %3083 = vmatprep.subr.bf16.mxu1 %v3605_v0  ;;  %s3624_s21 = smov 32   ;;  %s3632_s6 = smov 4  }
  0xd9   :  { %v82_v8 = vpop.f32.mrb[0].mxu0 }
  0xda   :  { %v83_v9 = vadd.f32 %v2914_v7, %v82_v8  ;;  %v3067_v10 = vpop.f32.mrb[1].mxu0 }
  0xdb   :  { %v85_v11 = vpop.f32.mrb[2].mxu0 }
  0xdc   :  { %v91_v12 = vand.u32 2147483647, %v83_v9  ;;  %v86_v13 = vadd.f32 %v2914_v7, %v85_v11  ;;  %v3068_v14 = vpop.f32.mrb[3].mxu0  ;;  %v89_v37 = vmax.f32 %v83_v9, 0.0 }
  0xde   :  { %v93_v15 = vsub.f32 0.0, %v91_v12  ;;  %v92_v16 = vand.u32 2147483647, %v86_v13  ;;  %v90_v38 = vmax.f32 %v86_v13, 0.0 }
  0xe0   :  { %v95_v17 = vmul.f32 1.442695, %v93_v15  ;;  %v94_v18 = vsub.f32 0.0, %v92_v16 }
  0xe2   :  { %3413 = vpow2.f32 %v95_v17  ;;  %v97_v19 = vmul.f32 1.442695, %v94_v18  ;;  %v292_v18 = vld [vmem:[%s4384_s2 + $0x38] sm:$0x3] }
  0xe4   :  { %3415 = vpow2.f32 %v97_v19  ;;  %v300_v19 = vsel %vm298_vm9, %v292_v18, 0 }
  0xec   :  { %v3414_v20 = vpop.eup %3413 }
  0xed   :  { %v99_v21 = vadd.f32 1.0, %v3414_v20  ;;  %v102_v24 = vmul.f32 -0.5, %v3414_v20  ;;  %v105_v27 = vand.u32 2147483647, %v3414_v20 }
  0xee   :  { %v3416_v22 = vpop.eup %3415 }
  0xef   :  { %3417 = vlog2.f32 %v99_v21  ;;  %v108_v23 = vadd.f32 1.0, %v3416_v22  ;;  %v111_v25 = vmul.f32 -0.5, %v3416_v22  ;;  %v103_v26 = vadd.f32 1.0, %v102_v24 }
  0xf0   :  { %v114_v30 = vand.u32 2147483647, %v3416_v22  ;;  %vm106_vm2 = vcmp.lt.f32.partialorder %v105_v27, 0.0004427343 }
  0xf1   :  { %3419 = vlog2.f32 %v108_v23  ;;  %v112_v28 = vadd.f32 1.0, %v111_v25  ;;  %v104_v32 = vmul.f32 %v3414_v20, %v103_v26  ;;  %v2921_v20 = vld [vmem:[%s4385_s3 + $0x2] ss:$0 sm:$0xff]  ;;  %v2924_v25 = vld [vmem:[%s4385_s3 + $0xe] ss:$0 sm:$0xff] }
  0xf2   :  { %vm115_vm3 = vcmp.lt.f32.partialorder %v114_v30, 0.0004427343 }
  0xf3   :  { %v113_v36 = vmul.f32 %v3416_v22, %v112_v28  ;;  %v2923_v22 = vld [vmem:[%s4385_s3 + $0xd] ss:$0 sm:$0xff] }
  0xf9   :  { %v3418_v29 = vpop.eup %3417 }
  0xfa   :  { %v101_v31 = vmul.f32 0.6931472, %v3418_v29 }
  0xfb   :  { %v3420_v33 = vpop.eup %3419 }
  0xfc   :  { %v107_v34 = vsel %vm106_vm2, %v104_v32, %v101_v31  ;;  %v110_v35 = vmul.f32 0.6931472, %v3420_v33 }
  0xfd   :  { %v117_v40 = vadd.f32 %v107_v34, %v89_v37 }
  0xfe   :  { %v116_v39 = vsel %vm115_vm3, %v113_v36, %v110_v35 }
  0xff   :  { %v118_v41 = vadd.f32 %v116_v39, %v90_v38 }
 0x101   :  { %v123_v42 = vpack.c.bf16 %v118_v41, %v117_v40  ;;  %v3736_v40 = vld [vmem:[%s4382_s0] sm:$0xff]  ;;  %v3741_v41 = vld [vmem:[%s4382_s0 + $0x8] sm:$0xff] }
 0x102   :  { %vm23_vm13 = vcmp.gt.f32.partialorder %v3736_v40, 0.0  ;;  %vm24_vm14 = vcmp.gt.f32.partialorder %v3741_v41, 0.0 }
 0x103   :  { %3074 = vmatmul.mubr.msk.bf16.vlgmr.msra.gmra.mrb[0].mxu1 %vm141_vm4, %v123_v42 }
 0x104   :  { %3085 = vmatprep.mubr.msk.bf16.mxu1 %vm3606_vm0, %v3605_v0  ;;  %3084 = vmatpush3.bf16.msra.mxu1 %v300_v19  ;;  %v3612_v19 = vmov -1e+30  }
 0x105   :  { %3095 = vmatprep.subr.bf16.mxu1 %v3605_v0 }
 0x1d6   :  { %v179_v46 = vpop.f32.mrb[0].mxu1 }
 0x1d7   :  { %v180_v47 = vadd.f32 %v2917_v45, %v179_v46  ;;  %v3075_v48 = vpop.f32.mrb[1].mxu1  ;;  %v394_v46 = vld [vmem:[%s4384_s2 + $0x40] sm:$0xf] }
 0x1d8   :  { %v182_v49 = vpop.f32.mrb[2].mxu1  ;;  %v3607_v48 = vmov 42  }
 0x1d9   :  { %v188_v50 = vand.u32 2147483647, %v180_v47  ;;  %v183_v51 = vadd.f32 %v2917_v45, %v182_v49  ;;  %v3076_v52 = vpop.f32.mrb[3].mxu1  ;;  %v186_v12 = vmax.f32 %v180_v47, 0.0  ;;  %v3745_v45 = vpack.c.bf16 %v3741_v41, %v3736_v40  ;;  %3376 = vset.pattern.permute.xlu1 %v3607_v48 }
 0x1da   :  { %v399_v47 = vsel %vm227_vm5, %v394_v46, 0  ;;  %v3608_v49 = vmov 41  }
 0x1db   :  { %v190_v53 = vsub.f32 0.0, %v188_v50  ;;  %v189_v54 = vand.u32 2147483647, %v183_v51  ;;  %v187_v13 = vmax.f32 %v183_v51, 0.0  ;;  %3375 = vset.pattern.permute.xlu0 %v3608_v49  ;;  %v2926_v50 = vld [vmem:[%s4385_s3 + $0x3] ss:$0 sm:$0xff] }
 0x1dd   :  { %v192_v55 = vmul.f32 1.442695, %v190_v53  ;;  %v191_v56 = vsub.f32 0.0, %v189_v54 }
 0x1df   :  { %3421 = vpow2.f32 %v192_v55  ;;  %v194_v57 = vmul.f32 1.442695, %v191_v56 }
 0x1e1   :  { %3423 = vpow2.f32 %v194_v57 }
 0x1e9   :  { %v3422_v58 = vpop.eup %3421 }
 0x1ea   :  { %v196_v59 = vadd.f32 1.0, %v3422_v58  ;;  %v199_v62 = vmul.f32 -0.5, %v3422_v58  ;;  %v202_v2 = vand.u32 2147483647, %v3422_v58 }
 0x1eb   :  { %v3424_v60 = vpop.eup %3423 }
 0x1ec   :  { %3425 = vlog2.f32 %v196_v59  ;;  %v205_v61 = vadd.f32 1.0, %v3424_v60  ;;  %v208_v63 = vmul.f32 -0.5, %v3424_v60  ;;  %v200_v1 = vadd.f32 1.0, %v199_v62  ;;  %v442_v59 = vld [vmem:[%s4384_s2 + $0x48] sm:$0x7] }
 0x1ed   :  { %v211_v5 = vand.u32 2147483647, %v3424_v60  ;;  %vm203_vm6 = vcmp.lt.f32.partialorder %v202_v2, 0.0004427343 }
 0x1ee   :  { %3427 = vlog2.f32 %v205_v61  ;;  %v209_v3 = vadd.f32 1.0, %v208_v63  ;;  %v201_v7 = vmul.f32 %v3422_v58, %v200_v1 }
 0x1ef   :  { %vm212_vm7 = vcmp.lt.f32.partialorder %v211_v5, 0.0004427343 }
 0x1f0   :  { %v210_v11 = vmul.f32 %v3424_v60, %v209_v3  ;;  %v3609_v3 = vmov 43  }
 0x1f6   :  { %v3426_v4 = vpop.eup %3425 }
 0x1f7   :  { %v198_v6 = vmul.f32 0.6931472, %v3426_v4 }
 0x1f8   :  { %v3428_v8 = vpop.eup %3427 }
 0x1f9   :  { %v204_v9 = vsel %vm203_vm6, %v201_v7, %v198_v6  ;;  %v207_v10 = vmul.f32 0.6931472, %v3428_v8  ;;  %v3610_v7 = vmov 44   ;;  %v3611_v8 = vmov 40  }
 0x1fa   :  { %v214_v15 = vadd.f32 %v204_v9, %v186_v12  ;;  %v497_v9 = vlaneseq }
 0x1fb   :  { %v213_v14 = vsel %vm212_vm7, %v210_v11, %v207_v10 }
 0x1fc   :  { %v215_v16 = vadd.f32 %v213_v14, %v187_v13  ;;  %v498_v10 = vshrl.u32 %v497_v9, 7 }
 0x1fe   :  { %v217_v17 = vpack.c.bf16 %v215_v16, %v214_v15  ;;  %v3775_v11 = vsub.s32 2, %v498_v10  ;;  %v3777_v12 = vsub.s32 1, %v498_v10  ;;  %v3801_v41 = vsub.s32 4, %v498_v10 }
 0x200   :  { %3080 = vmatmul.mubr.msk.bf16.vlgmr.msra.gmra.mrb[4].mxu0 %vm223_vm8, %v217_v17 }
 0x201   :  { %3091 = vmatprep.mubr.msk.bf16.mxu0 %vm3606_vm0, %v3605_v0 }
 0x2d3   :  { %v265_v21 = vpop.f32.mrb[4].mxu0 }
 0x2d4   :  { %v266_v23 = vadd.f32 %v2921_v20, %v265_v21  ;;  %v3081_v24 = vpop.f32.mrb[5].mxu0 }
 0x2d5   :  { %v268_v26 = vpop.f32.mrb[6].mxu0 }
 0x2d6   :  { %v277_v27 = vmul.f32 %v2923_v22, %v266_v23  ;;  %v269_v28 = vadd.f32 %v2921_v20, %v268_v26  ;;  %v3082_v29 = vpop.f32.mrb[7].mxu0  ;;  %v3785_v20 = vsel %vm23_vm13, 0.0, %v3612_v19 }
 0x2d8   :  { %v284_v30 = vadd.f32 %v2924_v25, %v277_v27  ;;  %v278_v31 = vmul.f32 %v2923_v22, %v269_v28 }
 0x2da   :  { %vm286_vm10 = vcmp.ge.f32.partialorder %v284_v30, 0.0  ;;  %v288_v32 = vmul.f32 0.01, %v284_v30  ;;  %v285_v33 = vadd.f32 %v2924_v25, %v278_v31  ;;  %v3787_v25 = vsub.s32 3, %v498_v10 }
 0x2dc   :  { %v290_v34 = vsel %vm286_vm10, %v284_v30, %v288_v32  ;;  %vm287_vm12 = vcmp.ge.f32.partialorder %v285_v33, 0.0  ;;  %v289_v35 = vmul.f32 0.01, %v285_v33  ;;  %v3789_v30 = vsel %vm24_vm14, 0.0, %v3612_v19 }
 0x2dd   :  { %2478 = vst.msk [vmem:[#allocation2] sm:$0xff] %vm294_vm11, %v290_v34 }
 0x2de   :  { %v291_v36 = vsel %vm287_vm12, %v285_v33, %v289_v35 }
 0x2df   :  { %v3726_v37 = vpack.c.bf16 %v291_v36, %v290_v34  ;;  %2479 = vst.msk [vmem:[#allocation2 + $0x8] sm:$0xff] %vm294_vm11, %v291_v36 }
 0x2e1   :  { %3086 = vmatmul.mubr.msk.bf16.vlgmr.msra.gmra.mrb[4].mxu1 %vm294_vm11, %v3726_v37 }
 0x2e2   :  { %3097 = vmatprep.mubr.msk.bf16.mxu1 %vm3606_vm0, %v3605_v0  ;;  %3096 = vmatpush3.bf16.msra.mxu1 %v399_v47 }
 0x2e3   :  { %3107 = vmatprep.subr.bf16.mxu1 %v3605_v0 }
 0x3b4   :  { %v336_v38 = vpop.f32.mrb[4].mxu1 }
 0x3b5   :  { %v3087_v39 = vpop.f32.mrb[5].mxu1 }
 0x3b6   :  { %v339_v42 = vpop.f32.mrb[6].mxu1 }
 0x3b7   :  { %v343_v43 = vpack.c.bf16 %v339_v42, %v336_v38  ;;  %v3088_v44 = vpop.f32.mrb[7].mxu1 }
 0x3b9   :  { %3090 = vmatpush3.bf16.msra.mxu0 %v343_v43 }
 0x3ba   :  { %3101 = vmatprep.subr.bf16.mxu0 %v3605_v0 }
 0x3bc   :  { %3092 = vmatmul.mubr.msk.bf16.vlgmr.msra.gmra.mrb[8].mxu0 %vm44_vm1, %v3745_v45 }
 0x3bd   :  { %3103 = vmatprep.mubr.msk.bf16.mxu0 %vm3606_vm0, %v3605_v0 }
 0x48f   :  { %v386_v51 = vpop.f32.mrb[8].mxu0 }
 0x490   :  { %v3093_v52 = vpop.f32.mrb[9].mxu0  ;;  %v387_v54 = vadd.f32 %v2926_v50, %v386_v51 }
 0x491   :  { %v389_v53 = vpop.f32.mrb[10].mxu0 }
 0x492   :  { %v390_v55 = vadd.f32 %v2926_v50, %v389_v53  ;;  %v3094_v56 = vpop.f32.mrb[11].mxu0 }
 0x493   :  { %v3815_v56 = vsub.s32 0, %v498_v10 }
 0x494   :  { %v393_v57 = vpack.c.bf16 %v390_v55, %v387_v54 }
 0x496   :  { %3098 = vmatmul.mubr.msk.bf16.vlgmr.msra.gmra.mrb[8].mxu1 %vm223_vm8, %v393_v57  ;;  %v396_v58 = vsel %vm223_vm8, %v393_v57, 0 }
 0x497   :  { %3102 = vmatpush3.bf16.xpose.msra.mxu0 %v396_v58  ;;  %3109 = vmatprep.mubr.msk.bf16.mxu1 %vm3606_vm0, %v3605_v0 }
 0x498   :  { %3137 = vmatprep.subr.bf16.mxu0 %v3605_v0 }
 0x49e   :  { %3104 = vmatmul.mubr.msk.bf16.vlgmr.msra.gmra.mrb[12].mxu0 %vm223_vm8, %v442_v59 }
 0x49f   :  { %3139 = vmatprep.mubr.msk.bf16.mxu0 %vm3606_vm0, %v3605_v0 }
 0x569   :  { %v435_v60 = vpop.f32.mrb[8].mxu1 }
 0x56a   :  { %628 = vperm.xlu1 %3376, %v435_v60   ;;  %535 = vperm.xlu0 %3375, %v435_v60   ;;  %v3099_v61 = vpop.f32.mrb[9].mxu1 }
 0x56b   :  { %v438_v62 = vpop.f32.mrb[10].mxu1 }
 0x56c   :  { %v3771_v63 = vpack.c.bf16 %v438_v62, %v435_v60  ;;  %v3100_v1 = vpop.f32.mrb[11].mxu1 }
 0x56e   :  { %632 = vperm.xlu1 %3376, %v438_v62   ;;  %539 = vperm.xlu0 %3375, %v438_v62  }
 0x571   :  { %v3773_v2 = vpop.f32.mrb[12].mxu0 }
 0x572   :  { %3378 = vset.pattern.permute.xlu1 %v3609_v3  ;;  %3377 = vset.pattern.permute.xlu0 %v3609_v3  ;;  %v3105_v4 = vpop.f32.mrb[13].mxu0  ;;  %v638_v13 = vrot.slane %v3773_v2, %v3775_v11  ;;  %v545_v14 = vrot.slane %v3773_v2, %v3777_v12  ;;  %v730_v35 = vrot.slane %v3773_v2, %v3787_v25 }
 0x573   :  { %724 = vperm.xlu1 %3378, %v438_v62   ;;  %720 = vperm.xlu0 %3377, %v435_v60   ;;  %v483_v5 = vpop.f32.mrb[14].mxu0  ;;  %v822_v52 = vrot.slane %v3773_v2, %v3801_v41 }
 0x574   :  { %v3106_v6 = vpop.f32.mrb[15].mxu0  ;;  %v500_v5 = vrot.slane %v3773_v2, %v3815_v56 }
 0x577   :  { %3379 = vset.pattern.permute.xlu1 %v3610_v7  ;;  %3381 = vset.pattern.permute.xlu0 %v3610_v7 }
 0x578   :  { %812 = vperm.xlu1 %3379, %v435_v60   ;;  %816 = vperm.xlu0 %3381, %v438_v62  }
 0x57c   :  { %3380 = vset.pattern.permute.xlu1 %v3611_v8 }
 0x57d   :  { %489 = vperm.xlu1 %3380, %v435_v60  }
 0x581   :  { %494 = vperm.xlu1 %3380, %v438_v62  }
 0x5e9   :  { %v629_v15 = vpop.permute.xlu1 %628  ;;  %v536_v16 = vpop.permute.xlu0 %535 }
 0x5ea   :  { %v639_v17 = vadd.f32 %v638_v13, %v629_v15  ;;  %v546_v18 = vadd.f32 %v545_v14, %v536_v16 }
 0x5ec   :  { %v643_v21 = vmul.f32 0.2, %v639_v17  ;;  %v550_v22 = vmul.f32 0.2, %v546_v18  ;;  %vm548_vm15 = vcmp.ge.f32.partialorder %v546_v18, 0.0  ;;  %vm641_vm2 = vcmp.ge.f32.partialorder %v639_v17, 0.0 }
 0x5ed   :  { %v633_v23 = vpop.permute.xlu1 %632  ;;  %v540_v24 = vpop.permute.xlu0 %539 }
 0x5ee   :  { %v640_v26 = vadd.f32 %v638_v13, %v633_v23  ;;  %v547_v27 = vadd.f32 %v545_v14, %v540_v24  ;;  %v552_v28 = vsel %vm548_vm15, %v546_v18, %v550_v22  ;;  %v645_v29 = vsel %vm641_vm2, %v639_v17, %v643_v21 }
 0x5ef   :  { %v3792_v31 = vadd.f32 %v552_v28, %v3785_v20  ;;  %v3795_v32 = vadd.f32 %v645_v29, %v3785_v20 }
 0x5f0   :  { %v644_v33 = vmul.f32 0.2, %v640_v26  ;;  %vm549_vm3 = vcmp.ge.f32.partialorder %v547_v27, 0.0  ;;  %v551_v34 = vmul.f32 0.2, %v547_v27  ;;  %vm642_vm6 = vcmp.ge.f32.partialorder %v640_v26, 0.0 }
 0x5f1   :  { %v556_v36 = vsel %vm44_vm1, %v3792_v31, -inf  ;;  %v649_v47 = vsel %vm44_vm1, %v3795_v32, -inf }
 0x5f2   :  { %v725_v38 = vpop.permute.xlu1 %724  ;;  %v721_v39 = vpop.permute.xlu0 %720  ;;  %557 = vmax.xlane.f32.xlu0 %v556_v36  ;;  %v553_v40 = vsel %vm549_vm3, %v547_v27, %v551_v34  ;;  %v646_v42 = vsel %vm642_vm6, %v640_v26, %v644_v33 }
 0x5f3   :  { %v732_v43 = vadd.f32 %v730_v35, %v725_v38  ;;  %v731_v44 = vadd.f32 %v730_v35, %v721_v39  ;;  %v3804_v46 = vadd.f32 %v553_v40, %v3789_v30  ;;  %v3809_v48 = vadd.f32 %v646_v42, %v3789_v30 }
 0x5f5   :  { %v736_v49 = vmul.f32 0.2, %v732_v43  ;;  %vm733_vm7 = vcmp.ge.f32.partialorder %v731_v44, 0.0  ;;  %v735_v50 = vmul.f32 0.2, %v731_v44  ;;  %v559_v51 = vsel %vm44_vm1, %v3804_v46, -inf }
 0x5f6   :  { %560 = vmax.xlane.f32.xlu1 %v559_v51  ;;  %650 = vmax.xlane.f32.xlu0 %v649_v47  ;;  %vm734_vm10 = vcmp.ge.f32.partialorder %v732_v43, 0.0  ;;  %v652_v61 = vsel %vm44_vm1, %v3809_v48, -inf }
 0x5f7   :  { %v813_v53 = vpop.permute.xlu1 %812  ;;  %v817_v54 = vpop.permute.xlu0 %816  ;;  %v737_v55 = vsel %vm733_vm7, %v731_v44, %v735_v50  ;;  %v738_v57 = vsel %vm734_vm10, %v732_v43, %v736_v49 }
 0x5f8   :  { %v823_v58 = vadd.f32 %v822_v52, %v813_v53  ;;  %v824_v59 = vadd.f32 %v822_v52, %v817_v54  ;;  %v3818_v60 = vadd.f32 %v737_v55, %v3785_v20  ;;  %v3823_v62 = vadd.f32 %v738_v57, %v3789_v30 }
 0x5fa   :  { %v827_v1 = vmul.f32 0.2, %v823_v58  ;;  %vm826_vm12 = vcmp.ge.f32.partialorder %v824_v59, 0.0  ;;  %v828_v3 = vmul.f32 0.2, %v824_v59  ;;  %653 = vmax.xlane.f32.xlu0 %v652_v61  ;;  %v741_v4 = vsel %vm44_vm1, %v3818_v60, -inf }
 0x5fb   :  { %742 = vmax.xlane.f32.xlu1 %v741_v4  ;;  %vm825_vm13 = vcmp.ge.f32.partialorder %v823_v58, 0.0  ;;  %v744_v10 = vsel %vm44_vm1, %v3823_v62, -inf }
 0x5fc   :  { %v490_v6 = vpop.permute.xlu1 %489  ;;  %v829_v7 = vsel %vm825_vm13, %v823_v58, %v827_v1  ;;  %v830_v8 = vsel %vm826_vm12, %v824_v59, %v828_v3 }
 0x5fd   :  { %v501_v9 = vadd.f32 %v500_v5, %v490_v6  ;;  %v831_v13 = vadd.f32 %v829_v7, %v3785_v20  ;;  %v3833_v14 = vadd.f32 %v830_v8, %v3789_v30 }
 0x5fe   :  { %745 = vmax.xlane.f32.xlu0 %v744_v10 }
 0x5ff   :  { %vm503_vm14 = vcmp.ge.f32.partialorder %v501_v9, 0.0  ;;  %v505_v15 = vmul.f32 0.2, %v501_v9  ;;  %v833_v16 = vsel %vm44_vm1, %v831_v13, -inf  ;;  %v836_v18 = vsel %vm44_vm1, %v3833_v14, -inf }
 0x600   :  { %v495_v17 = vpop.permute.xlu1 %494  ;;  %834 = vmax.xlane.f32.xlu1 %v833_v16 }
 0x601   :  { %v502_v2 = vadd.f32 %v500_v5, %v495_v17  ;;  %v507_v19 = vsel %vm503_vm14, %v501_v9, %v505_v15 }
 0x602   :  { %837 = vmax.xlane.f32.xlu0 %v836_v18  ;;  %v509_v21 = vadd.f32 %v507_v19, %v3785_v20 }
 0x603   :  { %vm504_vm15 = vcmp.ge.f32.partialorder %v502_v2, 0.0  ;;  %v506_v22 = vmul.f32 0.2, %v502_v2 }
 0x604   :  { %v511_v23 = vsel %vm44_vm1, %v509_v21, -inf }
 0x605   :  { %512 = vmax.xlane.f32.xlu1 %v511_v23  ;;  %v508_v24 = vsel %vm504_vm15, %v502_v2, %v506_v22 }
 0x606   :  { %v3841_v26 = vadd.f32 %v508_v24, %v3789_v30 }
 0x608   :  { %v514_v27 = vsel %vm44_vm1, %v3841_v26, -inf }
 0x609   :  { %515 = vmax.xlane.f32.xlu0 %v514_v27 }
 0x67f   :  { %v558_v28 = vpop.xlane.xlu0 %557 }
 0x680   :  { %v562_v29 = vsub.f32 %v3792_v31, %v558_v28 }
 0x682   :  { %v564_v33 = vmul.f32 1.442695, %v562_v29 }
 0x683   :  { %v561_v34 = vpop.xlane.xlu1 %560  ;;  %v651_v35 = vpop.xlane.xlu0 %650 }
 0x684   :  { %3429 = vpow2.f32 %v564_v33  ;;  %v563_v38 = vsub.f32 %v3804_v46, %v561_v34  ;;  %v655_v55 = vsub.f32 %v3795_v32, %v651_v35 }
 0x686   :  { %v566_v47 = vmul.f32 1.442695, %v563_v38  ;;  %v657_v57 = vmul.f32 1.442695, %v655_v55 }
 0x687   :  { %v654_v39 = vpop.xlane.xlu0 %653 }
 0x688   :  { %v743_v36 = vpop.xlane.xlu1 %742  ;;  %v656_v49 = vsub.f32 %v3809_v48, %v654_v39 }
 0x689   :  { %v747_v58 = vsub.f32 %v3818_v60, %v743_v36 }
 0x68a   :  { %v659_v31 = vmul.f32 1.442695, %v656_v49 }
 0x68b   :  { %v749_v61 = vmul.f32 1.442695, %v747_v58  ;;  %v746_v4 = vpop.xlane.xlu0 %745 }
 0x68c   :  { %v748_v32 = vsub.f32 %v3823_v62, %v746_v4 }
 0x68d   :  { %v835_v40 = vpop.xlane.xlu1 %834 }
 0x68e   :  { %v3847_v42 = vpop.eup %3429  ;;  %v839_v43 = vsub.f32 %v831_v13, %v835_v40  ;;  %v751_v10 = vmul.f32 1.442695, %v748_v32 }
 0x68f   :  { %v568_v44 = vsel %vm44_vm1, %v3847_v42, 0.0  ;;  %v838_v60 = vpop.xlane.xlu0 %837 }
 0x690   :  { %v841_v50 = vmul.f32 1.442695, %v839_v43  ;;  %569 = vadd.xlane.f32.xlu1 %v568_v44  ;;  %v840_v13 = vsub.f32 %v3833_v14, %v838_v60 }
 0x692   :  { %3431 = vpow2.f32 %v841_v50  ;;  %v513_v59 = vpop.xlane.xlu1 %512  ;;  %v843_v17 = vmul.f32 1.442695, %v840_v13 }
 0x693   :  { %3433 = vpow2.f32 %v566_v47  ;;  %v517_v1 = vsub.f32 %v509_v21, %v513_v59 }
 0x694   :  { %3435 = vpow2.f32 %v659_v31 }
 0x695   :  { %3437 = vpow2.f32 %v657_v57  ;;  %v519_v3 = vmul.f32 1.442695, %v517_v1 }
 0x696   :  { %3439 = vpow2.f32 %v749_v61  ;;  %v516_v15 = vpop.xlane.xlu0 %515 }
 0x697   :  { %3441 = vpow2.f32 %v519_v3  ;;  %v518_v2 = vsub.f32 %v3841_v26, %v516_v15 }
 0x698   :  { %3443 = vpow2.f32 %v751_v10 }
 0x699   :  { %3445 = vpow2.f32 %v843_v17  ;;  %v521_v62 = vmul.f32 1.442695, %v518_v2  ;;  %v2936_v17 = vld [vmem:[%s4385_s3 + $0xf] ss:$0 sm:$0xff] }
 0x69b   :  { %3447 = vpow2.f32 %v521_v62 }
 0x69c   :  { %v3852_v51 = vpop.eup %3431 }
 0x69d   :  { %v845_v46 = vsel %vm44_vm1, %v3852_v51, 0.0  ;;  %v3856_v52 = vpop.eup %3433 }
 0x69e   :  { %846 = vadd.xlane.f32.xlu0 %v845_v46  ;;  %v571_v48 = vsel %vm44_vm1, %v3856_v52, 0.0  ;;  %v3861_v53 = vpop.eup %3435 }
 0x69f   :  { %v664_v54 = vsel %vm44_vm1, %v3861_v53, 0.0  ;;  %v3438_v5 = vpop.eup %3437 }
 0x6a0   :  { %v661_v6 = vsel %vm44_vm1, %v3438_v5, 0.0  ;;  %v3869_v7 = vpop.eup %3439 }
 0x6a1   :  { %580 = vrot.lane.b32.xlu1 %v3771_v63, %s3613_s25  ;;  %v753_v8 = vsel %vm44_vm1, %v3869_v7, 0.0  ;;  %v3874_v9 = vpop.eup %3441 }
 0x6a2   :  { %572 = vadd.xlane.f32.xlu0 %v571_v48  ;;  %v523_v16 = vsel %vm44_vm1, %v3874_v9, 0.0  ;;  %v3444_v18 = vpop.eup %3443 }
 0x6a3   :  { %v756_v19 = vsel %vm44_vm1, %v3444_v18, 0.0  ;;  %v3881_v21 = vpop.eup %3445 }
 0x6a4   :  { %v848_v14 = vsel %vm44_vm1, %v3881_v21, 0.0 }
 0x6a5   :  { %v3887_v22 = vpop.eup %3447 }
 0x6a6   :  { %665 = vadd.xlane.f32.xlu0 %v664_v54  ;;  %v526_v23 = vsel %vm44_vm1, %v3887_v22, 0.0 }
 0x6bc   :  { %672 = vrot.lane.b32.xlu0 %v3771_v63, %s3614_s1 }
 0x6c5   :  { %662 = vadd.xlane.f32.xlu1 %v661_v6 }
 0x6c9   :  { %754 = vadd.xlane.f32.xlu1 %v753_v8 }
 0x6cd   :  { %524 = vadd.xlane.f32.xlu1 %v523_v16 }
 0x6db   :  { %757 = vadd.xlane.f32.xlu0 %v756_v19 }
 0x6de   :  { %764 = vrot.lane.b32.xlu1 %v3771_v63, %s3615_s26 }
 0x6df   :  { %849 = vadd.xlane.f32.xlu0 %v848_v14 }
 0x6e3   :  { %527 = vadd.xlane.f32.xlu0 %v526_v23 }
 0x6f9   :  { %856 = vrot.lane.b32.xlu0 %v3771_v63, %s3616_s27 }
 0x71d   :  { %v570_v24 = vpop.xlane.xlu1 %569 }
 0x71e   :  { %3449 = vrcp.f32 %v570_v24 }
 0x721   :  { %v581_v26 = vpop.permute.xlu1 %580 }
 0x722   :  { %3108 = vmatpush3.bf16.msra.mxu1 %v581_v26 }
 0x723   :  { %3113 = vmatprep.subr.bf16.mxu1 %v3605_v0 }
 0x728   :  { %v3450_v29 = vpop.eup %3449 }
 0x729   :  { %v576_v35 = vmul.f32 %v3450_v29, %v3847_v42  ;;  %v982_v29 = vld [vmem:[%s4384_s2 + $0x50] sm:$0x3] }
 0x72b   :  { %v847_v27 = vpop.xlane.xlu0 %846 }
 0x72f   :  { %v573_v28 = vpop.xlane.xlu0 %572 }
 0x730   :  { %3451 = vrcp.f32 %v573_v28 }
 0x733   :  { %v666_v33 = vpop.xlane.xlu0 %665 }
 0x734   :  { %3453 = vrcp.f32 %v666_v33 }
 0x737   :  { %v673_v39 = vpop.permute.xlu0 %672 }
 0x73a   :  { %v3452_v34 = vpop.eup %3451 }
 0x73b   :  { %v577_v36 = vmul.f32 %v3452_v34, %v3856_v52 }
 0x73d   :  { %v578_v38 = vpack.c.bf16 %v577_v36, %v576_v35  ;;  %v1033_v36 = vsel %vm298_vm9, %v982_v29, 0 }
 0x73e   :  { %v3454_v44 = vpop.eup %3453 }
 0x73f   :  { %3110 = vmatmul.mubr.msk.bf16.vlgmr.msra.gmra.mrb[12].mxu1 %vm44_vm1, %v578_v38  ;;  %v670_v42 = vmul.f32 %v3454_v44, %v3861_v53 }
 0x740   :  { %3114 = vmatpush3.bf16.msra.mxu1 %v673_v39  ;;  %3115 = vmatprep.mubr.msk.bf16.mxu1 %vm3606_vm0, %v3605_v0 }
 0x741   :  { %3119 = vmatprep.subr.bf16.mxu1 %v3605_v0 }
 0x752   :  { %v663_v40 = vpop.xlane.xlu1 %662 }
 0x753   :  { %3455 = vrcp.f32 %v663_v40 }
 0x756   :  { %v755_v43 = vpop.xlane.xlu1 %754 }
 0x757   :  { %3457 = vrcp.f32 %v755_v43 }
 0x75a   :  { %v525_v47 = vpop.xlane.xlu1 %524 }
 0x75d   :  { %v3456_v49 = vpop.eup %3455 }
 0x75e   :  { %v669_v50 = vmul.f32 %v3456_v49, %v3438_v5  ;;  %v765_v46 = vpop.permute.xlu1 %764  ;;  %v3617_v49 = vmov 121  }
 0x75f   :  { %3382 = vset.pattern.permute.xlu1 %v3617_v49 }
 0x760   :  { %v671_v31 = vpack.c.bf16 %v670_v42, %v669_v50  ;;  %v3618_v42 = vmov 123   ;;  %v2940_v50 = vld [vmem:[%s4385_s3 + $0x5] ss:$0 sm:$0xff] }
 0x761   :  { %v3458_v54 = vpop.eup %3457  ;;  %3384 = vset.pattern.permute.xlu0 %v3618_v42 }
 0x762   :  { %3116 = vmatmul.mubr.msk.bf16.vlgmr.msra.gmra.mrb[12].mxu1 %vm44_vm1, %v671_v31  ;;  %v761_v53 = vmul.f32 %v3458_v54, %v3869_v7 }
 0x763   :  { %3120 = vmatpush3.bf16.msra.mxu1 %v765_v46  ;;  %3121 = vmatprep.mubr.msk.bf16.mxu1 %vm3606_vm0, %v3605_v0 }
 0x764   :  { %3125 = vmatprep.subr.bf16.mxu1 %v3605_v0 }
 0x768   :  { %v758_v52 = vpop.xlane.xlu0 %757 }
 0x769   :  { %3459 = vrcp.f32 %v758_v52 }
 0x76c   :  { %v850_v48 = vpop.xlane.xlu0 %849 }
 0x76d   :  { %3461 = vrcp.f32 %v850_v48 }
 0x76e   :  { %3463 = vrcp.f32 %v847_v27 }
 0x770   :  { %v528_v55 = vpop.xlane.xlu0 %527 }
 0x771   :  { %3465 = vrcp.f32 %v528_v55 }
 0x772   :  { %3467 = vrcp.f32 %v525_v47  ;;  %v3399_v47 = vld [vmem:[%s4384_s2 + $0x60] ss:$8 sps:$4 sm:$0xff]  }
 0x773   :  { %v3460_v57 = vpop.eup %3459 }
 0x774   :  { %v762_v58 = vmul.f32 %v3460_v57, %v3444_v18  ;;  %v857_v61 = vpop.permute.xlu0 %856 }
 0x776   :  { %v763_v59 = vpack.c.bf16 %v762_v58, %v761_v53  ;;  %v1176_v58 = vld [vmem:[%s4384_s2 + $0x70] sm:$0x7] }
 0x777   :  { %v3462_v1 = vpop.eup %3461 }
 0x778   :  { %3122 = vmatmul.mubr.msk.bf16.vlgmr.msra.gmra.mrb[12].mxu1 %vm44_vm1, %v763_v59  ;;  %v3464_v3 = vpop.eup %3463  ;;  %v854_v4 = vmul.f32 %v3462_v1, %v3881_v21  ;;  %v2937_v21 = vld [vmem:[%s4385_s3 + $0x10] ss:$0 sm:$0xff] }
 0x779   :  { %3126 = vmatpush3.bf16.msra.mxu1 %v857_v61  ;;  %3127 = vmatprep.mubr.msk.bf16.mxu1 %vm3606_vm0, %v3605_v0  ;;  %v853_v5 = vmul.f32 %v3464_v3, %v3852_v51 }
 0x77a   :  { %3131 = vmatprep.subr.bf16.mxu1 %v3605_v0 }
 0x77b   :  { %v855_v6 = vpack.c.bf16 %v854_v4, %v853_v5  ;;  %v3466_v7 = vpop.eup %3465  ;;  %v3619_v5 = vmov 124  }
 0x77c   :  { %v3468_v32 = vpop.eup %3467  ;;  %v532_v60 = vmul.f32 %v3466_v7, %v3887_v22  ;;  %v3620_v7 = vmov 122  }
 0x77d   :  { %v531_v8 = vmul.f32 %v3468_v32, %v3874_v9  ;;  %v2935_v9 = vld [vmem:[%s4385_s3 + $0x4] ss:$0 sm:$0xff] }
 0x77f   :  { %v533_v10 = vpack.c.bf16 %v532_v60, %v531_v8 }
 0x784   :  { %3128 = vmatmul.mubr.msk.bf16.vlgmr.msra.gmra.mrb[12].mxu1 %vm44_vm1, %v855_v6 }
 0x785   :  { %3132 = vmatpush3.bf16.msra.mxu1 %v3771_v63  ;;  %3133 = vmatprep.mubr.msk.bf16.mxu1 %vm3606_vm0, %v3605_v0  ;;  %v983_v63 = vld [vmem:[%s4384_s2 + $0x58] sm:$0xf] }
 0x786   :  { %3167 = vmatprep.subr.bf16.mxu1 %v3605_v0  ;;  %v989_v51 = vsel %vm227_vm5, %v983_v63, 0 }
 0x787   :  { %3138 = vmatpush3.bf16.msra.mxu0 %v989_v51 }
 0x788   :  { %3143 = vmatprep.subr.bf16.mxu0 %v3605_v0 }
 0x790   :  { %3134 = vmatmul.mubr.msk.bf16.vlgmr.msra.gmra.mrb[12].mxu1 %vm44_vm1, %v533_v10  ;;  %v3621_v10 = vmov 120  }
 0x791   :  { %3169 = vmatprep.mubr.msk.bf16.mxu1 %vm3606_vm0, %v3605_v0 }
 0x863   :  { %v940_v13 = vpop.f32.mrb[12].mxu1 }
 0x864   :  { %v953_v15 = vmul.f32 0.2, %v940_v13  ;;  %v3135_v16 = vpop.f32.mrb[13].mxu1 }
 0x865   :  { %v943_v2 = vpop.f32.mrb[14].mxu1 }
 0x866   :  { %v960_v62 = vadd.f32 %v2935_v9, %v953_v15  ;;  %v954_v18 = vmul.f32 0.2, %v943_v2  ;;  %v3136_v19 = vpop.f32.mrb[15].mxu1 }
 0x868   :  { %v967_v14 = vmul.f32 %v2936_v17, %v960_v62  ;;  %v961_v22 = vadd.f32 %v2935_v9, %v954_v18 }
 0x86a   :  { %v974_v23 = vadd.f32 %v2937_v21, %v967_v14  ;;  %v968_v24 = vmul.f32 %v2936_v17, %v961_v22 }
 0x86c   :  { %v978_v26 = vmul.f32 0.01, %v974_v23  ;;  %v975_v27 = vadd.f32 %v2937_v21, %v968_v24  ;;  %vm976_vm2 = vcmp.ge.f32.partialorder %v974_v23, 0.0 }
 0x86e   :  { %vm977_vm3 = vcmp.ge.f32.partialorder %v975_v27, 0.0  ;;  %v979_v28 = vmul.f32 0.01, %v975_v27  ;;  %v980_v33 = vsel %vm976_vm2, %v974_v23, %v978_v26 }
 0x870   :  { %v981_v34 = vsel %vm977_vm3, %v975_v27, %v979_v28 }
 0x871   :  { %v3939_v35 = vpack.c.bf16 %v981_v34, %v980_v33 }
 0x873   :  { %3140 = vmatmul.mubr.msk.bf16.vlgmr.msra.gmra.mrb[16].mxu0 %vm223_vm8, %v3939_v35 }
 0x874   :  { %3144 = vmatpush3.bf16.msra.mxu0 %v1033_v36  ;;  %3145 = vmatprep.mubr.msk.bf16.mxu0 %vm3606_vm0, %v3605_v0 }
 0x875   :  { %3149 = vmatprep.subr.bf16.mxu0 %v3605_v0 }
 0x87f   :  { %3146 = vmatmul.mubr.msk.bf16.vlgmr.msra.gmra.mrb[16].mxu0 %vm294_vm11, %v3726_v37 }
 0x880   :  { %3151 = vmatprep.mubr.msk.bf16.mxu0 %vm3606_vm0, %v3605_v0 }
 0x952   :  { %v1069_v38 = vpop.f32.mrb[16].mxu0 }
 0x953   :  { %v3147_v39 = vpop.f32.mrb[17].mxu0 }
 0x954   :  { %v1072_v40 = vpop.f32.mrb[18].mxu0 }
 0x955   :  { %v1076_v43 = vpack.c.bf16 %v1072_v40, %v1069_v38  ;;  %v3148_v44 = vpop.f32.mrb[19].mxu0 }
 0x957   :  { %3150 = vmatpush3.bf16.msra.mxu0 %v1076_v43 }
 0x958   :  { %3155 = vmatprep.subr.bf16.mxu0 %v3605_v0 }
 0x95a   :  { %3152 = vmatmul.mubr.msk.bf16.vlgmr.msra.gmra.mrb[20].mxu0 %vm44_vm1, %v3745_v45 }
 0x95b   :  { %3156 = vmatpush3.bf16.msra.mxu0 %v3399_v47  ;;  %3157 = vmatprep.mubr.msk.bf16.mxu0 %vm3606_vm0, %v3605_v0 }
 0x95c   :  { %3161 = vmatprep.subr.bf16.mxu0 %v3605_v0 }
 0xa2d   :  { %v1116_v31 = vpop.f32.mrb[20].mxu0 }
 0xa2e   :  { %v3153_v46 = vpop.f32.mrb[21].mxu0  ;;  %v1117_v48 = vadd.f32 %v2940_v50, %v1116_v31 }
 0xa2f   :  { %v1119_v52 = vpop.f32.mrb[22].mxu0 }
 0xa30   :  { %v1120_v54 = vadd.f32 %v2940_v50, %v1119_v52  ;;  %v3154_v55 = vpop.f32.mrb[23].mxu0 }
 0xa32   :  { %v1123_v57 = vpack.c.bf16 %v1120_v54, %v1117_v48 }
 0xa34   :  { %3158 = vmatmul.mubr.msk.bf16.vlgmr.msra.gmra.mrb[24].mxu0 %vm44_vm1, %v1123_v57  ;;  %v1133_v53 = vsel %vm44_vm1, %v1123_v57, 0 }
 0xa35   :  { %3162 = vmatpush3.bf16.xpose.msra.mxu0 %v1133_v53  ;;  %3163 = vmatprep.mubr.msk.bf16.mxu0 %vm3606_vm0, %v3605_v0 }
 0xa36   :  { %3197 = vmatprep.subr.bf16.mxu0 %v3605_v0 }
 0xa3c   :  { %3164 = vmatmul.mubr.msk.bf16.vlgmr.msra.gmra.mrb[28].mxu0 %vm44_vm1, %v1176_v58 }
 0xa3d   :  { %3201 = vmatprep.mubr.msk.bf16.mxu0 %vm3606_vm0, %v3605_v0 }
 0xb07   :  { %v1169_v59 = vpop.f32.mrb[24].mxu0 }
 0xb08   :  { %1454 = vperm.xlu0 %3384, %v1169_v59   ;;  %1269 = vperm.xlu1 %3382, %v1169_v59   ;;  %v3159_v61 = vpop.f32.mrb[25].mxu0 }
 0xb09   :  { %v1172_v1 = vpop.f32.mrb[26].mxu0 }
 0xb0a   :  { %v3974_v3 = vpack.c.bf16 %v1172_v1, %v1169_v59  ;;  %v3160_v4 = vpop.f32.mrb[27].mxu0 }
 0xb0c   :  { %3388 = vset.pattern.permute.xlu0 %v3619_v5  ;;  %1273 = vperm.xlu1 %3382, %v1172_v1  }
 0xb0d   :  { %1550 = vperm.xlu0 %3388, %v1172_v1  }
 0xb0f   :  { %v3976_v6 = vpop.f32.mrb[28].mxu0 }
 0xb10   :  { %3383 = vset.pattern.permute.xlu1 %v3620_v7  ;;  %v3165_v32 = vpop.f32.mrb[29].mxu0  ;;  %v1464_v63 = vrot.slane %v3976_v6, %v3787_v25  ;;  %v1279_v51 = vrot.slane %v3976_v6, %v3777_v12  ;;  %v1372_v21 = vrot.slane %v3976_v6, %v3775_v11  ;;  %v1556_v33 = vrot.slane %v3976_v6, %v3801_v41 }
 0xb11   :  { %1362 = vperm.xlu1 %3383, %v1169_v59   ;;  %v1217_v60 = vpop.f32.mrb[30].mxu0 }
 0xb12   :  { %v3166_v8 = vpop.f32.mrb[31].mxu0  ;;  %v1234_v60 = vrot.slane %v3976_v6, %v3815_v56 }
 0xb15   :  { %1366 = vperm.xlu1 %3383, %v1172_v1  }
 0xb19   :  { %3385 = vset.pattern.permute.xlu1 %v3618_v42 }
 0xb1a   :  { %1458 = vperm.xlu1 %3385, %v1172_v1  }
 0xb1e   :  { %3386 = vset.pattern.permute.xlu1 %v3619_v5 }
 0xb1f   :  { %1546 = vperm.xlu1 %3386, %v1169_v59  }
 0xb23   :  { %3387 = vset.pattern.permute.xlu1 %v3621_v10 }
 0xb24   :  { %1223 = vperm.xlu1 %3387, %v1169_v59  }
 0xb28   :  { %1228 = vperm.xlu1 %3387, %v1172_v1  }
 0xb87   :  { %v1455_v13 = vpop.permute.xlu0 %1454  ;;  %v1270_v9 = vpop.permute.xlu1 %1269 }
 0xb88   :  { %v1465_v15 = vadd.f32 %v1464_v63, %v1455_v13  ;;  %v1280_v16 = vadd.f32 %v1279_v51, %v1270_v9 }
 0xb8a   :  { %vm1282_vm6 = vcmp.ge.f32.partialorder %v1280_v16, 0.0  ;;  %v1284_v17 = vmul.f32 0.2, %v1280_v16  ;;  %v1469_v62 = vmul.f32 0.2, %v1465_v15  ;;  %vm1467_vm7 = vcmp.ge.f32.partialorder %v1465_v15, 0.0 }
 0xb8b   :  { %v1274_v2 = vpop.permute.xlu1 %1273 }
 0xb8c   :  { %v1281_v18 = vadd.f32 %v1279_v51, %v1274_v2  ;;  %v1286_v19 = vsel %vm1282_vm6, %v1280_v16, %v1284_v17  ;;  %v1471_v27 = vsel %vm1467_vm7, %v1465_v15, %v1469_v62  ;;  %v1551_v34 = vpop.permute.xlu0 %1550 }
 0xb8d   :  { %v3985_v14 = vadd.f32 %v1286_v19, %v3785_v20  ;;  %v3997_v39 = vadd.f32 %v1471_v27, %v3785_v20  ;;  %v1558_v47 = vadd.f32 %v1556_v33, %v1551_v34 }
 0xb8e   :  { %vm1283_vm10 = vcmp.ge.f32.partialorder %v1281_v18, 0.0  ;;  %v1285_v22 = vmul.f32 0.2, %v1281_v18 }
 0xb8f   :  { %v1290_v23 = vsel %vm44_vm1, %v3985_v14, -inf  ;;  %v1475_v50 = vsel %vm44_vm1, %v3997_v39, -inf  ;;  %v1562_v48 = vmul.f32 0.2, %v1558_v47  ;;  %vm1560_vm14 = vcmp.ge.f32.partialorder %v1558_v47, 0.0 }
 0xb90   :  { %v1363_v24 = vpop.permute.xlu1 %1362  ;;  %1291 = vmax.xlane.f32.xlu0 %v1290_v23  ;;  %v1287_v26 = vsel %vm1283_vm10, %v1281_v18, %v1285_v22 }
 0xb91   :  { %v1373_v28 = vadd.f32 %v1372_v21, %v1363_v24  ;;  %v3990_v29 = vadd.f32 %v1287_v26, %v3789_v30  ;;  %v1564_v61 = vsel %vm1560_vm14, %v1558_v47, %v1562_v48 }
 0xb92   :  { %v4014_v32 = vadd.f32 %v1564_v61, %v3789_v30 }
 0xb93   :  { %vm1375_vm12 = vcmp.ge.f32.partialorder %v1373_v28, 0.0  ;;  %v1377_v36 = vmul.f32 0.2, %v1373_v28  ;;  %v1293_v38 = vsel %vm44_vm1, %v3990_v29, -inf }
 0xb94   :  { %v1367_v40 = vpop.permute.xlu1 %1366  ;;  %1294 = vmax.xlane.f32.xlu1 %v1293_v38  ;;  %v1570_v13 = vsel %vm44_vm1, %v4014_v32, -inf }
 0xb95   :  { %v1374_v43 = vadd.f32 %v1372_v21, %v1367_v40  ;;  %v1379_v44 = vsel %vm1375_vm12, %v1373_v28, %v1377_v36  ;;  %vm1730_vm12 = vcmask 195584  }
 0xb96   :  { %v4000_v49 = vadd.f32 %v1379_v44, %v3785_v20 }
 0xb97   :  { %vm1376_vm13 = vcmp.ge.f32.partialorder %v1374_v43, 0.0  ;;  %v1378_v42 = vmul.f32 0.2, %v1374_v43 }
 0xb98   :  { %1476 = vmax.xlane.f32.xlu1 %v1475_v50  ;;  %v1383_v31 = vsel %vm44_vm1, %v4000_v49, -inf }
 0xb99   :  { %v1459_v46 = vpop.permute.xlu1 %1458  ;;  %1384 = vmax.xlane.f32.xlu0 %v1383_v31  ;;  %v1380_v52 = vsel %vm1376_vm13, %v1374_v43, %v1378_v42 }
 0xb9a   :  { %v1466_v54 = vadd.f32 %v1464_v63, %v1459_v46  ;;  %v1382_v55 = vadd.f32 %v1380_v52, %v3789_v30 }
 0xb9c   :  { %vm1468_vm15 = vcmp.ge.f32.partialorder %v1466_v54, 0.0  ;;  %v1470_v57 = vmul.f32 0.2, %v1466_v54  ;;  %v1386_v53 = vsel %vm44_vm1, %v1382_v55, -inf }
 0xb9d   :  { %1387 = vmax.xlane.f32.xlu0 %v1386_v53 }
 0xb9e   :  { %v1547_v58 = vpop.permute.xlu1 %1546  ;;  %v1472_v59 = vsel %vm1468_vm15, %v1466_v54, %v1470_v57 }
 0xb9f   :  { %v1557_v1 = vadd.f32 %v1556_v33, %v1547_v58  ;;  %v4009_v4 = vadd.f32 %v1472_v59, %v3789_v30 }
 0xba1   :  { %vm1559_vm2 = vcmp.ge.f32.partialorder %v1557_v1, 0.0  ;;  %v1561_v5 = vmul.f32 0.2, %v1557_v1  ;;  %v1478_v7 = vsel %vm44_vm1, %v4009_v4, -inf }
 0xba2   :  { %1479 = vmax.xlane.f32.xlu0 %v1478_v7 }
 0xba3   :  { %v1224_v8 = vpop.permute.xlu1 %1223  ;;  %v1563_v10 = vsel %vm1559_vm2, %v1557_v1, %v1561_v5 }
 0xba4   :  { %v1235_v63 = vadd.f32 %v1234_v60, %v1224_v8  ;;  %v1565_v51 = vadd.f32 %v1563_v10, %v3785_v20 }
 0xba6   :  { %vm1237_vm3 = vcmp.ge.f32.partialorder %v1235_v63, 0.0  ;;  %v1239_v9 = vmul.f32 0.2, %v1235_v63  ;;  %1571 = vmax.xlane.f32.xlu0 %v1570_v13  ;;  %v1567_v15 = vsel %vm44_vm1, %v1565_v51, -inf }
 0xba7   :  { %v1229_v16 = vpop.permute.xlu1 %1228  ;;  %1568 = vmax.xlane.f32.xlu1 %v1567_v15 }
 0xba8   :  { %v1236_v17 = vadd.f32 %v1234_v60, %v1229_v16  ;;  %v1241_v2 = vsel %vm1237_vm3, %v1235_v63, %v1239_v9 }
 0xba9   :  { %v1243_v62 = vadd.f32 %v1241_v2, %v3785_v20 }
 0xbaa   :  { %vm1238_vm6 = vcmp.ge.f32.partialorder %v1236_v17, 0.0  ;;  %v1240_v6 = vmul.f32 0.2, %v1236_v17 }
 0xbab   :  { %v1245_v18 = vsel %vm44_vm1, %v1243_v62, -inf }
 0xbac   :  { %1246 = vmax.xlane.f32.xlu1 %v1245_v18  ;;  %v1242_v19 = vsel %vm1238_vm6, %v1236_v17, %v1240_v6 }
 0xbad   :  { %v4025_v21 = vadd.f32 %v1242_v19, %v3789_v30 }
 0xbaf   :  { %v1248_v22 = vsel %vm44_vm1, %v4025_v21, -inf }
 0xbb0   :  { %1249 = vmax.xlane.f32.xlu0 %v1248_v22 }
 0xc1d   :  { %v1292_v23 = vpop.xlane.xlu0 %1291 }
 0xc1e   :  { %v1296_v24 = vsub.f32 %v3985_v14, %v1292_v23 }
 0xc20   :  { %v1298_v26 = vmul.f32 1.442695, %v1296_v24 }
 0xc21   :  { %v1295_v27 = vpop.xlane.xlu1 %1294 }
 0xc22   :  { %3469 = vpow2.f32 %v1298_v26  ;;  %v1297_v38 = vsub.f32 %v3990_v29, %v1295_v27 }
 0xc24   :  { %v1300_v47 = vmul.f32 1.442695, %v1297_v38 }
 0xc25   :  { %v1477_v36 = vpop.xlane.xlu1 %1476 }
 0xc26   :  { %v1385_v34 = vpop.xlane.xlu0 %1384  ;;  %v1481_v57 = vsub.f32 %v3997_v39, %v1477_v36 }
 0xc28   :  { %v1483_v59 = vmul.f32 1.442695, %v1481_v57 }
 0xc2a   :  { %v1388_v40 = vpop.xlane.xlu0 %1387 }
 0xc2b   :  { %v1390_v42 = vsub.f32 %v1382_v55, %v1388_v40  ;;  %v1389_v55 = vsub.f32 %v4000_v49, %v1385_v34 }
 0xc2c   :  { %v4030_v28 = vpop.eup %3469 }
 0xc2d   :  { %v1302_v33 = vsel %vm44_vm1, %v4030_v28, 0.0  ;;  %v1393_v14 = vmul.f32 1.442695, %v1390_v42  ;;  %v1391_v53 = vmul.f32 1.442695, %v1389_v55 }
 0xc2e   :  { %1303 = vadd.xlane.f32.xlu1 %v1302_v33 }
 0xc2f   :  { %v1480_v8 = vpop.xlane.xlu0 %1479 }
 0xc30   :  { %v1482_v63 = vsub.f32 %v4009_v4, %v1480_v8 }
 0xc32   :  { %v1485_v13 = vmul.f32 1.442695, %v1482_v63 }
 0xc34   :  { %v1569_v43 = vpop.xlane.xlu1 %1568 }
 0xc35   :  { %v1573_v44 = vsub.f32 %v1565_v51, %v1569_v43  ;;  %v1572_v51 = vpop.xlane.xlu0 %1571 }
 0xc36   :  { %v1574_v9 = vsub.f32 %v4014_v32, %v1572_v51 }
 0xc37   :  { %v1575_v50 = vmul.f32 1.442695, %v1573_v44 }
 0xc38   :  { %v1577_v16 = vmul.f32 1.442695, %v1574_v9 }
 0xc39   :  { %3471 = vpow2.f32 %v1575_v50  ;;  %v1247_v58 = vpop.xlane.xlu1 %1246 }
 0xc3a   :  { %3473 = vpow2.f32 %v1300_v47  ;;  %v1251_v61 = vsub.f32 %v1243_v62, %v1247_v58 }
 0xc3b   :  { %3475 = vpow2.f32 %v1393_v14 }
 0xc3c   :  { %3477 = vpow2.f32 %v1391_v53  ;;  %v1253_v1 = vmul.f32 1.442695, %v1251_v61 }
 0xc3d   :  { %3479 = vpow2.f32 %v1483_v59  ;;  %v1250_v15 = vpop.xlane.xlu0 %1249 }
 0xc3e   :  { %3481 = vpow2.f32 %v1253_v1  ;;  %v1252_v17 = vsub.f32 %v4025_v21, %v1250_v15  ;;  %v2950_v15 = vld [vmem:[%s4385_s3 + $0x6] ss:$0 sm:$0xff] }
 0xc3f   :  { %1314 = vrot.lane.b32.xlu1 %v3974_v3, %s3615_s26  ;;  %3483 = vpow2.f32 %v1485_v13 }
 0xc40   :  { %3485 = vpow2.f32 %v1577_v16  ;;  %v1255_v2 = vmul.f32 1.442695, %v1252_v17 }
 0xc42   :  { %3487 = vpow2.f32 %v1255_v2  ;;  %v2951_v2 = vld [vmem:[%s4385_s3 + $0x11] ss:$0 sm:$0xff] }
 0xc43   :  { %v4037_v31 = vpop.eup %3471 }
 0xc44   :  { %v1579_v46 = vsel %vm44_vm1, %v4037_v31, 0.0  ;;  %v4041_v52 = vpop.eup %3473 }
 0xc45   :  { %1580 = vadd.xlane.f32.xlu0 %v1579_v46  ;;  %v1305_v29 = vsel %vm44_vm1, %v4041_v52, 0.0  ;;  %v4045_v48 = vpop.eup %3475 }
 0xc46   :  { %v1398_v54 = vsel %vm44_vm1, %v4045_v48, 0.0  ;;  %v4051_v5 = vpop.eup %3477 }
 0xc47   :  { %v1395_v7 = vsel %vm44_vm1, %v4051_v5, 0.0  ;;  %v4055_v60 = vpop.eup %3479 }
 0xc48   :  { %v1487_v39 = vsel %vm44_vm1, %v4055_v60, 0.0  ;;  %v4060_v49 = vpop.eup %3481 }
 0xc49   :  { %1306 = vadd.xlane.f32.xlu0 %v1305_v29  ;;  %v1257_v10 = vsel %vm44_vm1, %v4060_v49, 0.0  ;;  %v3484_v62 = vpop.eup %3483 }
 0xc4a   :  { %v1490_v6 = vsel %vm44_vm1, %v3484_v62, 0.0  ;;  %v4069_v18 = vpop.eup %3485 }
 0xc4b   :  { %v1582_v4 = vsel %vm44_vm1, %v4069_v18, 0.0 }
 0xc4c   :  { %v4073_v32 = vpop.eup %3487 }
 0xc4d   :  { %1399 = vadd.xlane.f32.xlu0 %v1398_v54  ;;  %v1260_v19 = vsel %vm44_vm1, %v4073_v32, 0.0 }
 0xc63   :  { %1406 = vrot.lane.b32.xlu0 %v3974_v3, %s3622_s19  ;;  %1396 = vadd.xlane.f32.xlu1 %v1395_v7 }
 0xc67   :  { %1488 = vadd.xlane.f32.xlu1 %v1487_v39 }
 0xc6b   :  { %1258 = vadd.xlane.f32.xlu1 %v1257_v10 }
 0xc7c   :  { %1498 = vrot.lane.b32.xlu1 %v3974_v3, %s3623_s20 }
 0xc82   :  { %1491 = vadd.xlane.f32.xlu0 %v1490_v6 }
 0xc86   :  { %1583 = vadd.xlane.f32.xlu0 %v1582_v4 }
 0xc8a   :  { %1261 = vadd.xlane.f32.xlu0 %v1260_v19 }
 0xca0   :  { %1590 = vrot.lane.b32.xlu0 %v3974_v3, %s3624_s21 }
 0xcbb   :  { %v1304_v21 = vpop.xlane.xlu1 %1303 }
 0xcbc   :  { %3489 = vrcp.f32 %v1304_v21 }
 0xcbf   :  { %v1315_v22 = vpop.permute.xlu1 %1314 }
 0xcc0   :  { %3168 = vmatpush3.bf16.msra.mxu1 %v1315_v22 }
 0xcc1   :  { %3173 = vmatprep.subr.bf16.mxu1 %v3605_v0 }
 0xcc6   :  { %v3490_v26 = vpop.eup %3489 }
 0xcc7   :  { %v1310_v34 = vmul.f32 %v3490_v26, %v4030_v28 }
 0xcd2   :  { %v1581_v23 = vpop.xlane.xlu0 %1580 }
 0xcd6   :  { %v1307_v24 = vpop.xlane.xlu0 %1306 }
 0xcd7   :  { %3491 = vrcp.f32 %v1307_v24 }
 0xcda   :  { %v1400_v27 = vpop.xlane.xlu0 %1399 }
 0xcdb   :  { %3493 = vrcp.f32 %v1400_v27 }
 0xcde   :  { %v1407_v40 = vpop.permute.xlu0 %1406 }
 0xce1   :  { %v3492_v33 = vpop.eup %3491 }
 0xce2   :  { %v1311_v36 = vmul.f32 %v3492_v33, %v4041_v52  ;;  %v1716_v33 = vld [vmem:[%s4384_s2 + $0x78] sm:$0xf] }
 0xce4   :  { %v1312_v38 = vpack.c.bf16 %v1311_v36, %v1310_v34 }
 0xce5   :  { %v3494_v47 = vpop.eup %3493 }
 0xce6   :  { %3170 = vmatmul.mubr.msk.bf16.vlgmr.msra.gmra.mrb[16].mxu1 %vm44_vm1, %v1312_v38  ;;  %v1404_v28 = vmul.f32 %v3494_v47, %v4045_v48 }
 0xce7   :  { %3174 = vmatpush3.bf16.msra.mxu1 %v1407_v40  ;;  %3175 = vmatprep.mubr.msk.bf16.mxu1 %vm3606_vm0, %v3605_v0  ;;  %v1779_v40 = vsel %vm227_vm5, %v1716_v33, 0 }
 0xce8   :  { %3179 = vmatprep.subr.bf16.mxu1 %v3605_v0 }
 0xcf0   :  { %v1397_v43 = vpop.xlane.xlu1 %1396 }
 0xcf1   :  { %3495 = vrcp.f32 %v1397_v43 }
 0xcf4   :  { %v1489_v44 = vpop.xlane.xlu1 %1488 }
 0xcf5   :  { %3497 = vrcp.f32 %v1489_v44 }
 0xcf8   :  { %v1259_v42 = vpop.xlane.xlu1 %1258 }
 0xcfb   :  { %v3496_v50 = vpop.eup %3495 }
 0xcfc   :  { %v1403_v14 = vmul.f32 %v3496_v50, %v4051_v5  ;;  %v1499_v52 = vpop.permute.xlu1 %1498 }
 0xcfe   :  { %v1405_v46 = vpack.c.bf16 %v1404_v28, %v1403_v14  ;;  %v3402_v14 = vld [vmem:[%s4384_s2 + $0x98] ss:$8 sps:$4 sm:$0xff]  }
 0xcff   :  { %v3498_v55 = vpop.eup %3497 }
 0xd00   :  { %3176 = vmatmul.mubr.msk.bf16.vlgmr.msra.gmra.mrb[16].mxu1 %vm44_vm1, %v1405_v46  ;;  %v1495_v53 = vmul.f32 %v3498_v55, %v4055_v60  ;;  %v3405_v46 = vld [vmem:[%s4384_s2 + $0xa8] ss:$8 sps:$4 sm:$0xff]  }
 0xd01   :  { %3180 = vmatpush3.bf16.msra.mxu1 %v1499_v52  ;;  %3181 = vmatprep.mubr.msk.bf16.mxu1 %vm3606_vm0, %v3605_v0  ;;  %v3625_v52 = vmov 0  }
 0xd02   :  { %3185 = vmatprep.subr.bf16.mxu1 %v3605_v0 }
 0xd0f   :  { %v1492_v29 = vpop.xlane.xlu0 %1491 }
 0xd10   :  { %3499 = vrcp.f32 %v1492_v29  ;;  %v2957_v29 = vld [vmem:[%s4385_s3 + $0x7] ss:$0 sm:$0xff] }
 0xd13   :  { %v1584_v54 = vpop.xlane.xlu0 %1583 }
 0xd14   :  { %3501 = vrcp.f32 %v1584_v54 }
 0xd15   :  { %3503 = vrcp.f32 %v1581_v23 }
 0xd17   :  { %v1262_v57 = vpop.xlane.xlu0 %1261 }
 0xd18   :  { %3505 = vrcp.f32 %v1262_v57 }
 0xd19   :  { %3507 = vrcp.f32 %v1259_v42  ;;  %v3404_v42 = vld [vmem:[%s4384_s2 + $0x9c] ss:$8 sps:$4 sm:$0xff]  }
 0xd1a   :  { %v3500_v48 = vpop.eup %3499 }
 0xd1b   :  { %v1496_v58 = vmul.f32 %v3500_v48, %v3484_v62  ;;  %v1591_v61 = vpop.permute.xlu0 %1590 }
 0xd1d   :  { %v1497_v59 = vpack.c.bf16 %v1496_v58, %v1495_v53 }
 0xd1e   :  { %v3502_v1 = vpop.eup %3501 }
 0xd1f   :  { %3182 = vmatmul.mubr.msk.bf16.vlgmr.msra.gmra.mrb[16].mxu1 %vm44_vm1, %v1497_v59  ;;  %v3504_v5 = vpop.eup %3503  ;;  %v1588_v7 = vmul.f32 %v3502_v1, %v4069_v18  ;;  %v3626_v1 = vmov 35  }
 0xd20   :  { %3186 = vmatpush3.bf16.msra.mxu1 %v1591_v61  ;;  %3187 = vmatprep.mubr.msk.bf16.mxu1 %vm3606_vm0, %v3605_v0  ;;  %v1587_v39 = vmul.f32 %v3504_v5, %v4037_v31  ;;  %v3401_v31 = vld [vmem:[%s4384_s2 + $0x90] ss:$0 sps:$4 sm:$0xff]   ;;  %v1940_v61 = vld [vmem:[%s4384_s2 + $0xb8] sm:$0x7]  ;;  %v3627_v5 = vmov 33  }
 0xd21   :  { %3191 = vmatprep.subr.bf16.mxu1 %v3605_v0  ;;  %v1735_v9 = vsel %vm227_vm5, %v3401_v31, 0  ;;  %3391 = vset.pattern.permute.xlu0 %v3626_v1  ;;  %v3629_v31 = vmov 34  }
 0xd22   :  { %v1589_v60 = vpack.c.bf16 %v1588_v7, %v1587_v39  ;;  %v3506_v8 = vpop.eup %3505  ;;  %3389 = vset.pattern.permute.xlu1 %v3627_v5 }
 0xd23   :  { %v3508_v10 = vpop.eup %3507  ;;  %v1266_v63 = vmul.f32 %v3506_v8, %v4073_v32  ;;  %v2952_v32 = vld [vmem:[%s4385_s3 + $0x12] ss:$0 sm:$0xff] }
 0xd24   :  { %v1265_v51 = vmul.f32 %v3508_v10, %v4060_v49 }
 0xd26   :  { %v1267_v13 = vpack.c.bf16 %v1266_v63, %v1265_v51  ;;  %v3628_v51 = vmov 36  }
 0xd2b   :  { %3188 = vmatmul.mubr.msk.bf16.vlgmr.msra.gmra.mrb[16].mxu1 %vm44_vm1, %v1589_v60 }
 0xd2c   :  { %3192 = vmatpush3.bf16.msra.mxu1 %v3974_v3  ;;  %3193 = vmatprep.mubr.msk.bf16.mxu1 %vm3606_vm0, %v3605_v0  ;;  %v3400_v3 = vld [vmem:[%s4384_s2 + $0x80] ss:$8 sps:$4 sm:$0xff]  }
 0xd2d   :  { %3223 = vmatprep.subr.bf16.mxu1 %v3605_v0  ;;  %3198 = vmatpush3.bf16.msra.mxu0 %v3400_v3 }
 0xd2e   :  { %3199 = vmatprep.subr.bf16.mxu0 %v3605_v0 }
 0xd31   :  { %3200 = vmatpush3.bf16.msra.mxu0 %v1735_v9 }
 0xd32   :  { %3205 = vmatprep.subr.bf16.mxu0 %v3605_v0 }
 0xd37   :  { %3194 = vmatmul.mubr.msk.bf16.vlgmr.msra.gmra.mrb[16].mxu1 %vm44_vm1, %v1267_v13 }
 0xd38   :  { %3225 = vmatprep.mubr.msk.bf16.mxu1 %vm3606_vm0, %v3605_v0 }
 0xe0a   :  { %v1674_v49 = vpop.f32.mrb[16].mxu1 }
 0xe0b   :  { %v1687_v16 = vmul.f32 0.2, %v1674_v49  ;;  %v3195_v17 = vpop.f32.mrb[17].mxu1 }
 0xe0c   :  { %v1677_v62 = vpop.f32.mrb[18].mxu1 }
 0xe0d   :  { %v1694_v6 = vadd.f32 %v2950_v15, %v1687_v16  ;;  %v1688_v18 = vmul.f32 0.2, %v1677_v62  ;;  %v3196_v4 = vpop.f32.mrb[19].mxu1 }
 0xe0f   :  { %v1701_v19 = vmul.f32 %v2951_v2, %v1694_v6  ;;  %v1695_v21 = vadd.f32 %v2950_v15, %v1688_v18  ;;  %v3630_v15 = vmov 32  }
 0xe11   :  { %v1708_v22 = vadd.f32 %v2952_v32, %v1701_v19  ;;  %v1702_v23 = vmul.f32 %v2951_v2, %v1695_v21 }
 0xe13   :  { %v1712_v24 = vmul.f32 0.01, %v1708_v22  ;;  %v1709_v26 = vadd.f32 %v2952_v32, %v1702_v23  ;;  %vm1710_vm7 = vcmp.ge.f32.partialorder %v1708_v22, 0.0 }
 0xe15   :  { %vm1711_vm10 = vcmp.ge.f32.partialorder %v1709_v26, 0.0  ;;  %v1713_v27 = vmul.f32 0.01, %v1709_v26  ;;  %v1714_v34 = vsel %vm1710_vm7, %v1708_v22, %v1712_v24 }
 0xe17   :  { %v1715_v36 = vsel %vm1711_vm10, %v1709_v26, %v1713_v27 }
 0xe18   :  { %v1720_v38 = vpack.c.bf16 %v1715_v36, %v1714_v34 }
 0xe1a   :  { %3202 = vmatmul.mubr.msk.bf16.vlgmr.msra.gmra.mrb[32].mxu0 %vm1730_vm12, %v1720_v38 }
 0xe1b   :  { %3206 = vmatpush3.bf16.msra.mxu0 %v1779_v40  ;;  %3207 = vmatprep.mubr.msk.bf16.mxu0 %vm3606_vm0, %v3605_v0 }
 0xe1c   :  { %3211 = vmatprep.subr.bf16.mxu0 %v3605_v0 }
 0xe26   :  { %3208 = vmatmul.mubr.msk.bf16.vlgmr.msra.gmra.mrb[32].mxu0 %vm223_vm8, %v3939_v35  ;;  %v3407_v35 = vld [vmem:[%s4384_s2 + $0xac] ss:$8 sps:$4 sm:$0xff]  }
 0xe27   :  { %3213 = vmatprep.mubr.msk.bf16.mxu0 %vm3606_vm0, %v3605_v0 }
 0xef9   :  { %v1815_v43 = vpop.f32.mrb[32].mxu0 }
 0xefa   :  { %v3209_v44 = vpop.f32.mrb[33].mxu0 }
 0xefb   :  { %v1818_v47 = vpop.f32.mrb[34].mxu0 }
 0xefc   :  { %v1822_v50 = vpack.c.bf16 %v1818_v47, %v1815_v43  ;;  %v3210_v28 = vpop.f32.mrb[35].mxu0 }
 0xefe   :  { %3212 = vmatpush3.bf16.msra.mxu0 %v1822_v50 }
 0xeff   :  { %1897 = vmatprep.subr.bf16.mxu0 %v3404_v42 }
 0xf01   :  { %3214 = vmatmul.mubr.msk.bf16.vlgmr.msra.gmra.mrb[36].mxu0 %vm44_vm1, %v3745_v45 }
 0xf02   :  { %1898 = vmatpush1.bf16.msra.mxu0 %v3402_v14  ;;  %1929 = vmatprep.mubr.bf16.mxu0 %v3625_v52 }
 0xf03   :  { %1899 = vmatprep.subr.bf16.mxu0 %v3407_v35 }
 0xf06   :  { %1900 = vmatpush1.bf16.msra.mxu0 %v3405_v46 }
 0xf07   :  { %3217 = vmatprep.subr.bf16.mxu0 %v3605_v0 }
 0xfd4   :  { %v1862_v45 = vpop.f32.mrb[36].mxu0 }
 0xfd5   :  { %v3215_v54 = vpop.f32.mrb[37].mxu0  ;;  %v1863_v57 = vadd.f32 %v2957_v29, %v1862_v45 }
 0xfd6   :  { %v1865_v55 = vpop.f32.mrb[38].mxu0 }
 0xfd7   :  { %v1866_v48 = vadd.f32 %v2957_v29, %v1865_v55  ;;  %v3216_v53 = vpop.f32.mrb[39].mxu0 }
 0xfd9   :  { %v1869_v58 = vpack.c.bf16 %v1866_v48, %v1863_v57 }
 0xfdb   :  { %2963 = vmatmul.mubr.msk.bf16.vlgmr.msra.gmra.mrb[40].mxu0 %vm141_vm4, %v1869_v58  ;;  %v1895_v59 = vsel %vm141_vm4, %v1869_v58, 0 }
 0xfdc   :  { %3218 = vmatpush3.bf16.xpose.msra.mxu0 %v1895_v59  ;;  %3219 = vmatprep.mubr.msk.bf16.mxu0 %vm3606_vm0, %v3605_v0 }
 0xfdd   :  { %3253 = vmatprep.subr.bf16.mxu0 %v3605_v0 }
 0xfe3   :  { %3220 = vmatmul.mubr.msk.bf16.vlgmr.msra.gmra.mrb[44].mxu0 %vm141_vm4, %v1940_v61 }
 0xfe4   :  { %3257 = vmatprep.mubr.msk.bf16.mxu0 %vm3606_vm0, %v3605_v0 }
0x10ae   :  { %v1931_v7 = vpop.f32.mrb[40].mxu0 }
0x10af   :  { %v4167_v39 = vpop.f32.mrb[41].mxu0 }
0x10b0   :  { %2219 = vperm.xlu0 %3391, %v4167_v39   ;;  %2034 = vperm.xlu1 %3389, %v4167_v39   ;;  %v1935_v60 = vpop.f32.mrb[42].mxu0 }
0x10b1   :  { %v4171_v8 = vpack.c.bf16 %v1935_v60, %v1931_v7  ;;  %v4173_v10 = vpop.f32.mrb[43].mxu0 }
0x10b2   :  { %v1985_v63 = vpack.c.bf16 %v4173_v10, %v4167_v39 }
0x10b4   :  { %3395 = vset.pattern.permute.xlu0 %v3628_v51  ;;  %2038 = vperm.xlu1 %3389, %v4173_v10  }
0x10b5   :  { %2315 = vperm.xlu0 %3395, %v4173_v10  }
0x10b6   :  { %v4179_v13 = vpop.f32.mrb[44].mxu0 }
0x10b7   :  { %v3221_v3 = vpop.f32.mrb[45].mxu0  ;;  %v2229_v16 = vrot.slane %v4179_v13, %v3787_v25  ;;  %v2044_v17 = vrot.slane %v4179_v13, %v3777_v12  ;;  %v2137_v25 = vrot.slane %v4179_v13, %v3775_v11  ;;  %v2321_v11 = vrot.slane %v4179_v13, %v3801_v41 }
0x10b8   :  { %3390 = vset.pattern.permute.xlu1 %v3629_v31  ;;  %v1981_v9 = vpop.f32.mrb[46].mxu0 }
0x10b9   :  { %2127 = vperm.xlu1 %3390, %v4167_v39   ;;  %v3222_v49 = vpop.f32.mrb[47].mxu0 }
0x10bd   :  { %2131 = vperm.xlu1 %3390, %v4173_v10  }
0x10c1   :  { %3392 = vset.pattern.permute.xlu1 %v3626_v1 }
0x10c2   :  { %2223 = vperm.xlu1 %3392, %v4173_v10  }
0x10c6   :  { %3393 = vset.pattern.permute.xlu1 %v3628_v51  ;;  %v1999_v51 = vrot.slane %v4179_v13, %v3815_v56 }
0x10c7   :  { %2311 = vperm.xlu1 %3393, %v4167_v39  }
0x10cb   :  { %3394 = vset.pattern.permute.xlu1 %v3630_v15 }
0x10cc   :  { %1988 = vperm.xlu1 %3394, %v4167_v39  }
0x10d0   :  { %1993 = vperm.xlu1 %3394, %v4173_v10  }
0x112f   :  { %v2220_v2 = vpop.permute.xlu0 %2219  ;;  %v2035_v62 = vpop.permute.xlu1 %2034 }
0x1130   :  { %v2230_v6 = vadd.f32 %v2229_v16, %v2220_v2  ;;  %v2045_v18 = vadd.f32 %v2044_v17, %v2035_v62 }
0x1132   :  { %vm2047_vm8 = vcmp.ge.f32.partialorder %v2045_v18, 0.0  ;;  %v2049_v4 = vmul.f32 0.2, %v2045_v18  ;;  %v2234_v19 = vmul.f32 0.2, %v2230_v6  ;;  %vm2232_vm13 = vcmp.ge.f32.partialorder %v2230_v6, 0.0 }
0x1133   :  { %v2039_v32 = vpop.permute.xlu1 %2038 }
0x1134   :  { %v2046_v21 = vadd.f32 %v2044_v17, %v2039_v32  ;;  %v2051_v22 = vsel %vm2047_vm8, %v2045_v18, %v2049_v4  ;;  %v2236_v33 = vsel %vm2232_vm13, %v2230_v6, %v2234_v19  ;;  %v2316_v38 = vpop.permute.xlu0 %2315  ;;  %vm2488_vm13 = vcmask 293920  }
0x1135   :  { %v4192_v23 = vadd.f32 %v2051_v22, %v3785_v20  ;;  %v4204_v44 = vadd.f32 %v2236_v33, %v3785_v20  ;;  %v2323_v28 = vadd.f32 %v2321_v11, %v2316_v38 }
0x1136   :  { %vm2048_vm14 = vcmp.ge.f32.partialorder %v2046_v21, 0.0  ;;  %v2050_v24 = vmul.f32 0.2, %v2046_v21 }
0x1137   :  { %v2055_v12 = vsel %vm44_vm1, %v4192_v23, -inf  ;;  %v2240_v46 = vsel %vm44_vm1, %v4204_v44, -inf  ;;  %v2327_v45 = vmul.f32 0.2, %v2323_v28  ;;  %vm2325_vm3 = vcmp.ge.f32.partialorder %v2323_v28, 0.0 }
0x1138   :  { %v2128_v26 = vpop.permute.xlu1 %2127  ;;  %2056 = vmax.xlane.f32.xlu0 %v2055_v12  ;;  %v2052_v27 = vsel %vm2048_vm14, %v2046_v21, %v2050_v24 }
0x1139   :  { %v2138_v34 = vadd.f32 %v2137_v25, %v2128_v26  ;;  %v4199_v36 = vadd.f32 %v2052_v27, %v3789_v30  ;;  %v2329_v59 = vsel %vm2325_vm3, %v2323_v28, %v2327_v45  ;;  %vm2748_vm3 = vcmask 1044480  }
0x113a   :  { %v2331_v60 = vadd.f32 %v2329_v59, %v3789_v30 }
0x113b   :  { %vm2140_vm15 = vcmp.ge.f32.partialorder %v2138_v34, 0.0  ;;  %v2142_v40 = vmul.f32 0.2, %v2138_v34  ;;  %v2058_v43 = vsel %vm44_vm1, %v4199_v36, -inf }
0x113c   :  { %v2132_v47 = vpop.permute.xlu1 %2131  ;;  %2059 = vmax.xlane.f32.xlu1 %v2058_v43  ;;  %v2335_v15 = vsel %vm44_vm1, %v2331_v60, -inf }
0x113d   :  { %v2139_v42 = vadd.f32 %v2137_v25, %v2132_v47  ;;  %v2144_v50 = vsel %vm2140_vm15, %v2138_v34, %v2142_v40 }
0x113e   :  { %v4209_v14 = vadd.f32 %v2144_v50, %v3785_v20 }
0x113f   :  { %vm2141_vm2 = vcmp.ge.f32.partialorder %v2139_v42, 0.0  ;;  %v2143_v35 = vmul.f32 0.2, %v2139_v42 }
0x1140   :  { %2241 = vmax.xlane.f32.xlu1 %v2240_v46  ;;  %v2148_v52 = vsel %vm44_vm1, %v4209_v14, -inf }
0x1141   :  { %v2224_v29 = vpop.permute.xlu1 %2223  ;;  %2149 = vmax.xlane.f32.xlu0 %v2148_v52  ;;  %v2145_v41 = vsel %vm2141_vm2, %v2139_v42, %v2143_v35  ;;  %vm2652_vm2 = vcmask 146432  }
0x1142   :  { %v2231_v54 = vadd.f32 %v2229_v16, %v2224_v29  ;;  %v2147_v55 = vadd.f32 %v2145_v41, %v3789_v30 }
0x1144   :  { %vm2233_vm6 = vcmp.ge.f32.partialorder %v2231_v54, 0.0  ;;  %v2235_v57 = vmul.f32 0.2, %v2231_v54  ;;  %v2151_v48 = vsel %vm44_vm1, %v2147_v55, -inf }
0x1145   :  { %2152 = vmax.xlane.f32.xlu0 %v2151_v48 }
0x1146   :  { %v2312_v53 = vpop.permute.xlu1 %2311  ;;  %v2237_v58 = vsel %vm2233_vm6, %v2231_v54, %v2235_v57 }
0x1147   :  { %v2322_v61 = vadd.f32 %v2321_v11, %v2312_v53  ;;  %v2239_v1 = vadd.f32 %v2237_v58, %v3789_v30 }
0x1149   :  { %vm2324_vm7 = vcmp.ge.f32.partialorder %v2322_v61, 0.0  ;;  %v2326_v5 = vmul.f32 0.2, %v2322_v61  ;;  %v2243_v7 = vsel %vm44_vm1, %v2239_v1, -inf }
0x114a   :  { %2244 = vmax.xlane.f32.xlu0 %v2243_v7 }
0x114b   :  { %v1989_v3 = vpop.permute.xlu1 %1988  ;;  %v2328_v31 = vsel %vm2324_vm7, %v2322_v61, %v2326_v5  ;;  %vm2744_vm7 = vcmask 72704  }
0x114c   :  { %v2000_v9 = vadd.f32 %v1999_v51, %v1989_v3  ;;  %v2330_v49 = vadd.f32 %v2328_v31, %v3785_v20 }
0x114e   :  { %vm2002_vm10 = vcmp.ge.f32.partialorder %v2000_v9, 0.0  ;;  %v2004_v16 = vmul.f32 0.2, %v2000_v9  ;;  %2336 = vmax.xlane.f32.xlu0 %v2335_v15  ;;  %v2332_v17 = vsel %vm44_vm1, %v2330_v49, -inf }
0x114f   :  { %v1994_v2 = vpop.permute.xlu1 %1993  ;;  %2333 = vmax.xlane.f32.xlu1 %v2332_v17 }
0x1150   :  { %v2001_v62 = vadd.f32 %v1999_v51, %v1994_v2  ;;  %v2006_v6 = vsel %vm2002_vm10, %v2000_v9, %v2004_v16 }
0x1151   :  { %v2008_v18 = vadd.f32 %v2006_v6, %v3785_v20 }
0x1152   :  { %vm2003_vm12 = vcmp.ge.f32.partialorder %v2001_v62, 0.0  ;;  %v2005_v56 = vmul.f32 0.2, %v2001_v62 }
0x1153   :  { %v2010_v13 = vsel %vm44_vm1, %v2008_v18, -inf }
0x1154   :  { %2011 = vmax.xlane.f32.xlu1 %v2010_v13  ;;  %v2007_v4 = vsel %vm2003_vm12, %v2001_v62, %v2005_v56 }
0x1155   :  { %v4228_v32 = vadd.f32 %v2007_v4, %v3789_v30 }
0x1157   :  { %v2013_v19 = vsel %vm44_vm1, %v4228_v32, -inf }
0x1158   :  { %2014 = vmax.xlane.f32.xlu0 %v2013_v19 }
0x11c5   :  { %v2057_v21 = vpop.xlane.xlu0 %2056 }
0x11c6   :  { %v2061_v22 = vsub.f32 %v4192_v23, %v2057_v21 }
0x11c8   :  { %v2063_v24 = vmul.f32 1.442695, %v2061_v22 }
0x11c9   :  { %v2060_v25 = vpop.xlane.xlu1 %2059 }
0x11ca   :  { %3509 = vpow2.f32 %v2063_v24  ;;  %v2062_v33 = vsub.f32 %v4199_v36, %v2060_v25 }
0x11cc   :  { %v2065_v43 = vmul.f32 1.442695, %v2062_v33 }
0x11cd   :  { %v2242_v27 = vpop.xlane.xlu1 %2241 }
0x11ce   :  { %v2150_v20 = vpop.xlane.xlu0 %2149  ;;  %v2246_v58 = vsub.f32 %v4204_v44, %v2242_v27 }
0x11cf   :  { %v2154_v57 = vsub.f32 %v4209_v14, %v2150_v20 }
0x11d0   :  { %v2248_v5 = vmul.f32 1.442695, %v2246_v58  ;;  %v2971_v58 = vld [vmem:[%s4385_s3 + $0x13] ss:$0 sm:$0xff] }
0x11d1   :  { %v2156_v59 = vmul.f32 1.442695, %v2154_v57  ;;  %v2970_v57 = vld [vmem:[%s4385_s3 + $0x8] ss:$0 sm:$0xff] }
0x11d2   :  { %v2153_v30 = vpop.xlane.xlu0 %2152 }
0x11d3   :  { %v2155_v11 = vsub.f32 %v2147_v55, %v2153_v30 }
0x11d4   :  { %v4233_v12 = vpop.eup %3509 }
0x11d5   :  { %v2067_v26 = vsel %vm44_vm1, %v4233_v12, 0.0  ;;  %v2158_v47 = vmul.f32 1.442695, %v2155_v11 }
0x11d6   :  { %2068 = vadd.xlane.f32.xlu1 %v2067_v26 }
0x11d7   :  { %v2245_v40 = vpop.xlane.xlu0 %2244 }
0x11d8   :  { %v2247_v42 = vsub.f32 %v2239_v1, %v2245_v40 }
0x11da   :  { %v2250_v28 = vmul.f32 1.442695, %v2247_v42 }
0x11db   :  { %v2337_v50 = vpop.xlane.xlu0 %2336 }
0x11dc   :  { %v2334_v34 = vpop.xlane.xlu1 %2333  ;;  %v2339_v35 = vsub.f32 %v2331_v60, %v2337_v50 }
0x11dd   :  { %v2338_v38 = vsub.f32 %v2330_v49, %v2334_v34 }
0x11de   :  { %v2342_v36 = vmul.f32 1.442695, %v2339_v35 }
0x11df   :  { %v2340_v23 = vmul.f32 1.442695, %v2338_v38 }
0x11e1   :  { %3511 = vpow2.f32 %v2340_v23  ;;  %v2012_v61 = vpop.xlane.xlu1 %2011 }
0x11e2   :  { %3513 = vpow2.f32 %v2065_v43  ;;  %v2016_v7 = vsub.f32 %v2008_v18, %v2012_v61 }
0x11e3   :  { %3515 = vpow2.f32 %v2158_v47 }
0x11e4   :  { %3517 = vpow2.f32 %v2250_v28  ;;  %v2018_v14 = vmul.f32 1.442695, %v2016_v7  ;;  %v2972_v7 = vld [vmem:[%s4385_s3 + $0x14] ss:$0 sm:$0xff] }
0x11e5   :  { %3519 = vpow2.f32 %v2342_v36  ;;  %v2015_v49 = vpop.xlane.xlu0 %2014 }
0x11e6   :  { %3521 = vpow2.f32 %v2156_v59  ;;  %v2017_v15 = vsub.f32 %v4228_v32, %v2015_v49 }
0x11e7   :  { %2079 = vrot.lane.b32.xlu1 %v4171_v8, %s3616_s27  ;;  %3523 = vpow2.f32 %v2248_v5  ;;  %s3631_s27 = smov 64  }
0x11e8   :  { %3525 = vpow2.f32 %v2018_v14  ;;  %v2020_v16 = vmul.f32 1.442695, %v2017_v15  ;;  %v2491_v15 = vld [vmem:[%s4384_s2 + $0xc0] sm:$0x3] }
0x11ea   :  { %3527 = vpow2.f32 %v2020_v16 }
0x11eb   :  { %v4240_v46 = vpop.eup %3511 }
0x11ec   :  { %v2344_v52 = vsel %vm44_vm1, %v4240_v46, 0.0  ;;  %v3514_v29 = vpop.eup %3513 }
0x11ed   :  { %2345 = vadd.xlane.f32.xlu0 %v2344_v52  ;;  %v2070_v41 = vsel %vm44_vm1, %v3514_v29, 0.0  ;;  %v4245_v45 = vpop.eup %3515 }
0x11ee   :  { %v2163_v54 = vsel %vm44_vm1, %v4245_v45, 0.0  ;;  %v4249_v55 = vpop.eup %3517 }
0x11ef   :  { %v2255_v48 = vsel %vm44_vm1, %v4249_v55, 0.0  ;;  %v4254_v53 = vpop.eup %3519 }
0x11f0   :  { %v2347_v1 = vsel %vm44_vm1, %v4254_v53, 0.0  ;;  %v3522_v60 = vpop.eup %3521 }
0x11f1   :  { %2071 = vadd.xlane.f32.xlu0 %v2070_v41  ;;  %v2160_v51 = vsel %vm44_vm1, %v3522_v60, 0.0  ;;  %v3524_v3 = vpop.eup %3523 }
0x11f2   :  { %v2252_v44 = vsel %vm44_vm1, %v3524_v3, 0.0  ;;  %v4261_v31 = vpop.eup %3525 }
0x11f3   :  { %v2022_v9 = vsel %vm44_vm1, %v4261_v31, 0.0 }
0x11f4   :  { %v4269_v17 = vpop.eup %3527 }
0x11f5   :  { %2164 = vadd.xlane.f32.xlu0 %v2163_v54  ;;  %v2025_v2 = vsel %vm44_vm1, %v4269_v17, 0.0 }
0x11f9   :  { %2256 = vadd.xlane.f32.xlu0 %v2255_v48 }
0x11fd   :  { %2348 = vadd.xlane.f32.xlu0 %v2347_v1 }
0x120b   :  { %2161 = vadd.xlane.f32.xlu1 %v2160_v51 }
0x120f   :  { %2253 = vadd.xlane.f32.xlu1 %v2252_v44 }
0x1213   :  { %2171 = vrot.lane.b32.xlu0 %v4171_v8, %s3631_s27  ;;  %2023 = vadd.xlane.f32.xlu1 %v2022_v9 }
0x1224   :  { %2263 = vrot.lane.b32.xlu1 %v4171_v8, %s3624_s21 }
0x1232   :  { %2026 = vadd.xlane.f32.xlu0 %v2025_v2  ;;  %v2554_v2 = vsel %vm298_vm9, %v2491_v15, 0 }
0x1263   :  { %v2069_v62 = vpop.xlane.xlu1 %2068 }
0x1264   :  { %3529 = vrcp.f32 %v2069_v62 }
0x1267   :  { %v2080_v6 = vpop.permute.xlu1 %2079 }
0x1268   :  { %3224 = vmatpush3.bf16.msra.mxu1 %v2080_v6 }
0x1269   :  { %3229 = vmatprep.subr.bf16.mxu1 %v3605_v0 }
0x126e   :  { %v3530_v32 = vpop.eup %3529 }
0x126f   :  { %v2075_v21 = vmul.f32 %v3530_v32, %v4233_v12 }
0x127a   :  { %v2346_v18 = vpop.xlane.xlu0 %2345 }
0x127e   :  { %v2072_v56 = vpop.xlane.xlu0 %2071 }
0x127f   :  { %3531 = vrcp.f32 %v2072_v56  ;;  %v3411_v56 = vld [vmem:[%s4384_s2 + $0xf8] ss:$0 sps:$4 sm:$0x11]  }
0x1282   :  { %v2165_v13 = vpop.xlane.xlu0 %2164 }
0x1283   :  { %3533 = vrcp.f32 %v2165_v13 }
0x1286   :  { %v2257_v4 = vpop.xlane.xlu0 %2256 }
0x1289   :  { %v3532_v19 = vpop.eup %3531 }
0x128a   :  { %v2076_v22 = vmul.f32 %v3532_v19, %v3514_v29  ;;  %v2349_v24 = vpop.xlane.xlu0 %2348 }
0x128c   :  { %v2077_v25 = vpack.c.bf16 %v2076_v22, %v2075_v21  ;;  %v2977_v22 = vld [vmem:[%s4385_s3 + $0x9] ss:$0 sm:$0xff] }
0x128d   :  { %v3534_v30 = vpop.eup %3533 }
0x128e   :  { %v2172_v20 = vpop.permute.xlu0 %2171  ;;  %3226 = vmatmul.mubr.msk.bf16.vlgmr.msra.gmra.mrb[20].mxu1 %vm44_vm1, %v2077_v25  ;;  %v2169_v34 = vmul.f32 %v3534_v30, %v4245_v45 }
0x128f   :  { %3230 = vmatpush3.bf16.msra.mxu1 %v2172_v20  ;;  %3231 = vmatprep.mubr.msk.bf16.mxu1 %vm3606_vm0, %v3605_v0 }
0x1290   :  { %3235 = vmatprep.subr.bf16.mxu1 %v3605_v0 }
0x1298   :  { %v2162_v26 = vpop.xlane.xlu1 %2161 }
0x1299   :  { %3535 = vrcp.f32 %v2162_v26 }
0x129c   :  { %v2254_v27 = vpop.xlane.xlu1 %2253 }
0x129d   :  { %3537 = vrcp.f32 %v2254_v27 }
0x129e   :  { %3539 = vrcp.f32 %v2257_v4 }
0x129f   :  { %3541 = vrcp.f32 %v2349_v24 }
0x12a0   :  { %v2024_v33 = vpop.xlane.xlu1 %2023  ;;  %3543 = vrcp.f32 %v2346_v18  ;;  %v3410_v18 = vld [vmem:[%s4384_s2 + $0xe8] ss:$8 sps:$4 sm:$0xff]  }
0x12a1   :  { %3545 = vrcp.f32 %v2024_v33 }
0x12a3   :  { %v3536_v12 = vpop.eup %3535 }
0x12a4   :  { %v2168_v38 = vmul.f32 %v3536_v12, %v3522_v60  ;;  %v2264_v43 = vpop.permute.xlu1 %2263 }
0x12a6   :  { %v2170_v40 = vpack.c.bf16 %v2169_v34, %v2168_v38 }
0x12a7   :  { %v3538_v11 = vpop.eup %3537 }
0x12a8   :  { %3232 = vmatmul.mubr.msk.bf16.vlgmr.msra.gmra.mrb[20].mxu1 %vm44_vm1, %v2170_v40  ;;  %v3540_v23 = vpop.eup %3539  ;;  %v2260_v47 = vmul.f32 %v3538_v11, %v3524_v3 }
0x12a9   :  { %3236 = vmatpush3.bf16.msra.mxu1 %v2264_v43  ;;  %3237 = vmatprep.mubr.msk.bf16.mxu1 %vm3606_vm0, %v3605_v0  ;;  %v2261_v42 = vmul.f32 %v3540_v23, %v4249_v55  ;;  %v3542_v28 = vpop.eup %3541 }
0x12aa   :  { %3241 = vmatprep.subr.bf16.mxu1 %v3605_v0  ;;  %v3544_v35 = vpop.eup %3543  ;;  %v2353_v36 = vmul.f32 %v3542_v28, %v4254_v53 }
0x12ab   :  { %v2262_v50 = vpack.c.bf16 %v2261_v42, %v2260_v47  ;;  %v2352_v52 = vmul.f32 %v3544_v35, %v4240_v46  ;;  %v3546_v39 = vpop.eup %3545  ;;  %v3408_v46 = vld [vmem:[%s4384_s2 + $0xc8] ss:$8 sps:$4 sm:$0xff]  }
0x12ac   :  { %3254 = vmatpush3.bf16.msra.mxu0 %v3408_v46 }
0x12ad   :  { %v2354_v29 = vpack.c.bf16 %v2353_v36, %v2352_v52  ;;  %3255 = vmatprep.subr.bf16.mxu0 %v3605_v0 }
0x12b4   :  { %3238 = vmatmul.mubr.msk.bf16.vlgmr.msra.gmra.mrb[20].mxu1 %vm44_vm1, %v2262_v50 }
0x12b5   :  { %3242 = vmatpush3.bf16.msra.mxu1 %v1985_v63  ;;  %3243 = vmatprep.mubr.msk.bf16.mxu1 %vm3606_vm0, %v3605_v0  ;;  %v2030_v63 = vmul.f32 %v3546_v39, %v4261_v31 }
0x12b6   :  { %3247 = vmatprep.subr.bf16.mxu1 %v3605_v0 }
0x12bf   :  { %v2027_v41 = vpop.xlane.xlu0 %2026 }
0x12c0   :  { %3547 = vrcp.f32 %v2027_v41  ;;  %3244 = vmatmul.mubr.msk.bf16.vlgmr.msra.gmra.mrb[20].mxu1 %vm44_vm1, %v2354_v29 }
0x12c1   :  { %3248 = vmatpush3.bf16.msra.mxu1 %v4171_v8  ;;  %3249 = vmatprep.mubr.msk.bf16.mxu1 %vm3606_vm0, %v3605_v0  ;;  %v3409_v8 = vld [vmem:[%s4384_s2 + $0xd8] ss:$8 sps:$4 sm:$0xff]  }
0x12c2   :  { %3256 = vmatpush3.bf16.msra.mxu0 %v3409_v8 }
0x12c3   :  { %3261 = vmatprep.subr.bf16.mxu0 %v3605_v0 }
0x12ca   :  { %v3548_v10 = vpop.eup %3547 }
0x12cb   :  { %v2031_v45 = vmul.f32 %v3548_v10, %v4269_v17 }
0x12cd   :  { %v2032_v54 = vpack.c.bf16 %v2031_v45, %v2030_v63 }
0x12cf   :  { %3250 = vmatmul.mubr.msk.bf16.vlgmr.msra.gmra.mrb[20].mxu1 %vm44_vm1, %v2032_v54 }
0x13a2   :  { %v2436_v55 = vpop.f32.mrb[20].mxu1 }
0x13a3   :  { %v2449_v48 = vmul.f32 0.2, %v2436_v55  ;;  %v3251_v53 = vpop.f32.mrb[21].mxu1 }
0x13a4   :  { %v2439_v59 = vpop.f32.mrb[22].mxu1 }
0x13a5   :  { %v2456_v61 = vadd.f32 %v2970_v57, %v2449_v48  ;;  %v2450_v1 = vmul.f32 0.2, %v2439_v59  ;;  %v3252_v5 = vpop.f32.mrb[23].mxu1 }
0x13a7   :  { %v2463_v14 = vmul.f32 %v2971_v58, %v2456_v61  ;;  %v2457_v60 = vadd.f32 %v2970_v57, %v2450_v1  ;;  %v3412_v61 = vld [vmem:[%s4384_s2 + $0x100] ss:$8 sps:$4 sm:$0x1f]   ;;  %v3633_v1 = vmov 65535  }
0x13a8   :  { %v2749_v5 = vsel %vm227_vm5, 4294967295, %v3633_v1 }
0x13a9   :  { %v2470_v51 = vadd.f32 %v2972_v7, %v2463_v14  ;;  %v2464_v3 = vmul.f32 %v2971_v58, %v2457_v60  ;;  %v2978_v60 = vld [vmem:[%s4385_s3 + $0xa] ss:$0 sm:$0xff] }
0x13ab   :  { %v2471_v44 = vadd.f32 %v2972_v7, %v2464_v3  ;;  %vm2472_vm1 = vcmp.ge.f32.partialorder %v2470_v51, 0.0  ;;  %v2474_v31 = vmul.f32 0.01, %v2470_v51  ;;  %v2750_v7 = vsel %vm2748_vm3, %v2749_v5, 0 }
0x13ac   :  { %v2752_v14 = vand.u32 %v3412_v61, %v2750_v7 }
0x13ad   :  { %v2476_v9 = vsel %vm2472_vm1, %v2470_v51, %v2474_v31  ;;  %vm2473_vm8 = vcmp.ge.f32.partialorder %v2471_v44, 0.0  ;;  %v2475_v49 = vmul.f32 0.01, %v2471_v44 }
0x13ae   :  { %2482 = vrot.lane.b32.xlu0 %v2476_v9, %s3632_s6 }
0x13af   :  { %v2477_v16 = vsel %vm2473_vm8, %v2471_v44, %v2475_v49 }
0x13b0   :  { %2484 = vrot.lane.b32.xlu1 %v2477_v16, %s3632_s6  ;;  %v2496_v17 = vpack.c.bf16 %v2477_v16, %v2476_v9 }
0x13b2   :  { %3258 = vmatmul.mubr.msk.bf16.vlgmr.msra.gmra.mrb[48].mxu0 %vm141_vm4, %v2496_v17  ;;  %vm2656_vm4 = vcmask 1040384  }
0x13b3   :  { %3262 = vmatpush3.bf16.msra.mxu0 %v2554_v2  ;;  %3263 = vmatprep.mubr.msk.bf16.mxu0 %vm3606_vm0, %v3605_v0 }
0x13b4   :  { %3267 = vmatprep.subr.bf16.mxu0 %v3605_v0 }
0x13ba   :  { %3264 = vmatmul.mubr.msk.bf16.vlgmr.msra.gmra.mrb[52].mxu0 %vm294_vm11, %v3726_v37  ;;  %v2658_v37 = vsel %vm2656_vm4, %v3411_v56, 0 }
0x13bb   :  { %3271 = vmatprep.mubr.msk.bf16.mxu0 %vm3606_vm0, %v3605_v0  ;;  %3268 = vmatpush3.bf16.msra.mxu0 %v3410_v18 }
0x13bc   :  { %3269 = vmatprep.subr.bf16.mxu0 %v3605_v0 }
0x13bf   :  { %3270 = vmatpush3.bf16.msra.mxu0 %v2658_v37 }
0x13c0   :  { %3275 = vmatprep.subr.bf16.mxu0 %v3605_v0 }
0x1420   :  { %v2483_v62 = vpop.permute.xlu0 %2482 }
0x1421   :  { %2489 = vst.msk [vmem:[#allocation2] sm:$0xff] %vm2488_vm13, %v2483_v62 }
0x1422   :  { %v2485_v6 = vpop.permute.xlu1 %2484 }
0x1423   :  { %2490 = vst.msk [vmem:[#allocation2 + $0x8] sm:$0xff] %vm2488_vm13, %v2485_v6 }
0x1485   :  { %v2546_v13 = vpop.f32.mrb[48].mxu0 }
0x1486   :  { %v3259_v4 = vpop.f32.mrb[49].mxu0 }
0x1487   :  { %v2549_v32 = vpop.f32.mrb[50].mxu0 }
0x1488   :  { %v3260_v19 = vpop.f32.mrb[51].mxu0 }
0x148d   :  { %v2590_v21 = vpop.f32.mrb[52].mxu0 }
0x148e   :  { %v2591_v24 = vadd.f32 %v2590_v21, %v2546_v13  ;;  %v3265_v25 = vpop.f32.mrb[53].mxu0 }
0x148f   :  { %v2593_v20 = vpop.f32.mrb[54].mxu0 }
0x1490   :  { %v2602_v26 = vadd.f32 %v2977_v22, %v2591_v24  ;;  %v2594_v27 = vadd.f32 %v2593_v20, %v2549_v32  ;;  %v3266_v30 = vpop.f32.mrb[55].mxu0 }
0x1492   :  { %v2606_v33 = vand.u32 2147483647, %v2602_v26  ;;  %v2603_v12 = vadd.f32 %v2977_v22, %v2594_v27  ;;  %v2604_v55 = vmax.f32 %v2602_v26, 0.0 }
0x1494   :  { %v2608_v34 = vsub.f32 0.0, %v2606_v33  ;;  %v2607_v38 = vand.u32 2147483647, %v2603_v12  ;;  %v2605_v57 = vmax.f32 %v2603_v12, 0.0 }
0x1496   :  { %v2610_v40 = vmul.f32 1.442695, %v2608_v34  ;;  %v2609_v43 = vsub.f32 0.0, %v2607_v38 }
0x1498   :  { %3549 = vpow2.f32 %v2610_v40  ;;  %v2612_v11 = vmul.f32 1.442695, %v2609_v43 }
0x149a   :  { %3551 = vpow2.f32 %v2612_v11 }
0x14a2   :  { %v3550_v23 = vpop.eup %3549 }
0x14a3   :  { %v2614_v47 = vadd.f32 1.0, %v3550_v23  ;;  %v2617_v28 = vmul.f32 -0.5, %v3550_v23  ;;  %v2620_v52 = vand.u32 2147483647, %v3550_v23 }
0x14a4   :  { %v3552_v42 = vpop.eup %3551 }
0x14a5   :  { %3553 = vlog2.f32 %v2614_v47  ;;  %v2623_v50 = vadd.f32 1.0, %v3552_v42  ;;  %v2626_v35 = vmul.f32 -0.5, %v3552_v42  ;;  %v2618_v36 = vadd.f32 1.0, %v2617_v28  ;;  %v2825_v47 = vld [vmem:[%s4384_s2 + $0x110] sm:$0x3]  ;;  %s3634_s2 = smov [#allocation2]  }
0x14a6   :  { %v2629_v39 = vand.u32 2147483647, %v3552_v42  ;;  %vm2621_vm14 = vcmp.lt.f32.partialorder %v2620_v52, 0.0004427343  ;;  %s2899_s20 = sshll.u32 %s3634_s2, 4  ;;  %s2900_s20 = int_to_ptr.vmem [resolvable:$true] %s2899_s20 }
0x14a7   :  { %3555 = vlog2.f32 %v2623_v50  ;;  %v2627_v29 = vadd.f32 1.0, %v2626_v35  ;;  %v2619_v63 = vmul.f32 %v3550_v23, %v2618_v36  ;;  %v2982_v50 = vld [vmem:[%s4385_s3 + $0xb] ss:$0 sm:$0xff]  ;;  %s3581_s21 = scalar_lea.vmem %s2900_s20, 256  ;;  %p3586_p1 = scmp.lt.s32.totalorder %s2900_s20, %s2900_s20 }
0x14a8   :  { %vm2630_vm15 = vcmp.lt.f32.partialorder %v2629_v39, 0.0004427343  ;;  %p3582_p0 = scmp.ne.s32.totalorder %s2900_s20, %s3581_s21  ;;  %p3587_p2 = scmp.lt.s32.totalorder %s3581_s21, %s3581_s21 }
0x14a9   :  { %v2628_v8 = vmul.f32 %v3552_v42, %v2627_v29  ;;  %v2836_v42 = vsel %vm298_vm9, %v2825_v47, 0 }
0x14aa   :  { %p3588_p3 = por %p3587_p2, %p3586_p1 }
0x14ac   :  { %p3589_p4 = pnand %p3588_p3, %p3582_p0 }
0x14af   :  { %v3554_v41 = vpop.eup %3553 }
0x14b0   :  { %v2616_v10 = vmul.f32 0.6931472, %v3554_v41 }
0x14b1   :  { %v3556_v45 = vpop.eup %3555 }
0x14b2   :  { %v2622_v54 = vsel %vm2621_vm14, %v2619_v63, %v2616_v10  ;;  %v2625_v46 = vmul.f32 0.6931472, %v3556_v45 }
0x14b3   :  { %v2632_v53 = vadd.f32 %v2622_v54, %v2604_v55 }
0x14b4   :  { %v2631_v48 = vsel %vm2630_vm15, %v2628_v8, %v2625_v46 }
0x14b5   :  { %v2633_v58 = vadd.f32 %v2631_v48, %v2605_v57 }
0x14b7   :  { %v2637_v59 = vpack.c.bf16 %v2633_v58, %v2632_v53 }
0x14b9   :  { %3272 = vmatmul.mubr.msk.bf16.vlgmr.msra.gmra.mrb[56].mxu0 %vm2652_vm2, %v2637_v59 }
0x14ba   :  { %3277 = vmatprep.mubr.msk.bf16.mxu0 %vm3606_vm0, %v3605_v0  ;;  %3276 = vmatpush3.bf16.msra.mxu0 %v2752_v14 }
0x14bb   :  { %3281 = vmatprep.subr.bf16.mxu0 %v3605_v0 }
0x158c   :  { %v2694_v51 = vpop.f32.mrb[56].mxu0 }
0x158d   :  { %v2695_v3 = vadd.f32 %v2978_v60, %v2694_v51  ;;  %v3273_v44 = vpop.f32.mrb[57].mxu0 }
0x158e   :  { %v2697_v31 = vpop.f32.mrb[58].mxu0 }
0x158f   :  { %v2703_v9 = vand.u32 2147483647, %v2695_v3  ;;  %v2698_v49 = vadd.f32 %v2978_v60, %v2697_v31  ;;  %v3274_v15 = vpop.f32.mrb[59].mxu0  ;;  %v2701_v34 = vmax.f32 %v2695_v3, 0.0 }
0x1591   :  { %v2705_v16 = vsub.f32 0.0, %v2703_v9  ;;  %v2704_v17 = vand.u32 2147483647, %v2698_v49  ;;  %v2702_v38 = vmax.f32 %v2698_v49, 0.0 }
0x1593   :  { %v2707_v2 = vmul.f32 1.442695, %v2705_v16  ;;  %v2706_v62 = vsub.f32 0.0, %v2704_v17 }
0x1595   :  { %3557 = vpow2.f32 %v2707_v2  ;;  %v2709_v6 = vmul.f32 1.442695, %v2706_v62 }
0x1597   :  { %3559 = vpow2.f32 %v2709_v6 }
0x159f   :  { %v3558_v18 = vpop.eup %3557 }
0x15a0   :  { %v2711_v56 = vadd.f32 1.0, %v3558_v18  ;;  %v2714_v4 = vmul.f32 -0.5, %v3558_v18  ;;  %v2717_v21 = vand.u32 2147483647, %v3558_v18 }
0x15a1   :  { %v3560_v37 = vpop.eup %3559 }
0x15a2   :  { %3561 = vlog2.f32 %v2711_v56  ;;  %v2720_v13 = vadd.f32 1.0, %v3560_v37  ;;  %v2723_v32 = vmul.f32 -0.5, %v3560_v37  ;;  %v2715_v19 = vadd.f32 1.0, %v2714_v4 }
0x15a3   :  { %v2726_v25 = vand.u32 2147483647, %v3560_v37  ;;  %vm2718_vm5 = vcmp.lt.f32.partialorder %v2717_v21, 0.0004427343 }
0x15a4   :  { %3563 = vlog2.f32 %v2720_v13  ;;  %v2724_v22 = vadd.f32 1.0, %v2723_v32  ;;  %v2716_v26 = vmul.f32 %v3558_v18, %v2715_v19 }
0x15a5   :  { %vm2727_vm6 = vcmp.lt.f32.partialorder %v2726_v25, 0.0004427343 }
0x15a6   :  { %v2725_v12 = vmul.f32 %v3560_v37, %v2724_v22 }
0x15ac   :  { %v3562_v24 = vpop.eup %3561 }
0x15ad   :  { %v2713_v20 = vmul.f32 0.6931472, %v3562_v24 }
0x15ae   :  { %v3564_v27 = vpop.eup %3563 }
0x15af   :  { %v2719_v30 = vsel %vm2718_vm5, %v2716_v26, %v2713_v20  ;;  %v2722_v33 = vmul.f32 0.6931472, %v3564_v27 }
0x15b0   :  { %v2729_v43 = vadd.f32 %v2719_v30, %v2701_v34 }
0x15b1   :  { %v2728_v40 = vsel %vm2727_vm6, %v2725_v12, %v2722_v33 }
0x15b2   :  { %v2730_v11 = vadd.f32 %v2728_v40, %v2702_v38 }
0x15b4   :  { %v2733_v23 = vpack.c.bf16 %v2730_v11, %v2729_v43 }
0x15b6   :  { %3278 = vmatmul.mubr.msk.bf16.vlgmr.msra.gmra.mrb[60].mxu0 %vm2744_vm7, %v2733_v23 }
0x15b7   :  { %3283 = vmatprep.mubr.msk.bf16.mxu0 %vm3606_vm0, %v3605_v0  ;;  %3282 = vmatpush3.bf16.msra.mxu0 %v2836_v42 }
0x1689   :  { %v2788_v28 = vpop.f32.mrb[60].mxu0 }
0x168a   :  { %v2789_v35 = vadd.f32 %v2982_v50, %v2788_v28  ;;  %v3279_v36 = vpop.f32.mrb[61].mxu0 }
0x168b   :  { %v2791_v52 = vpop.f32.mrb[62].mxu0 }
0x168c   :  { %v2797_v29 = vand.u32 2147483647, %v2789_v35  ;;  %v2792_v41 = vadd.f32 %v2982_v50, %v2791_v52  ;;  %v3280_v39 = vpop.f32.mrb[63].mxu0  ;;  %v2795_v31 = vmax.f32 %v2789_v35, 0.0 }
0x168e   :  { %v2799_v10 = vsub.f32 0.0, %v2797_v29  ;;  %v2798_v0 = vand.u32 2147483647, %v2792_v41  ;;  %v2796_v9 = vmax.f32 %v2792_v41, 0.0 }
0x1690   :  { %v2801_v63 = vmul.f32 1.442695, %v2799_v10  ;;  %v2800_v45 = vsub.f32 0.0, %v2798_v0 }
0x1692   :  { %3565 = vpow2.f32 %v2801_v63  ;;  %v2803_v54 = vmul.f32 1.442695, %v2800_v45 }
0x1694   :  { %3567 = vpow2.f32 %v2803_v54 }
0x169c   :  { %v3566_v46 = vpop.eup %3565 }
0x169d   :  { %v2805_v8 = vadd.f32 1.0, %v3566_v46  ;;  %v2808_v48 = vmul.f32 -0.5, %v3566_v46  ;;  %v2811_v59 = vand.u32 2147483647, %v3566_v46 }
0x169e   :  { %v3568_v55 = vpop.eup %3567 }
0x169f   :  { %3569 = vlog2.f32 %v2805_v8  ;;  %v2814_v57 = vadd.f32 1.0, %v3568_v55  ;;  %v2817_v53 = vmul.f32 -0.5, %v3568_v55  ;;  %v2809_v58 = vadd.f32 1.0, %v2808_v48 }
0x16a0   :  { %v2820_v5 = vand.u32 2147483647, %v3568_v55  ;;  %vm2812_vm0 = vcmp.lt.f32.partialorder %v2811_v59, 0.0004427343 }
0x16a1   :  { %3571 = vlog2.f32 %v2814_v57  ;;  %v2818_v61 = vadd.f32 1.0, %v2817_v53  ;;  %v2810_v14 = vmul.f32 %v3566_v46, %v2809_v58 }
0x16a2   :  { %vm2821_vm9 = vcmp.lt.f32.partialorder %v2820_v5, 0.0004427343 }
0x16a3   :  { %v2819_v44 = vmul.f32 %v3568_v55, %v2818_v61 }
0x16a9   :  { %v3570_v1 = vpop.eup %3569 }
0x16aa   :  { %v2807_v7 = vmul.f32 0.6931472, %v3570_v1 }
0x16ab   :  { %v3572_v60 = vpop.eup %3571 }
0x16ac   :  { %v2813_v51 = vsel %vm2812_vm0, %v2810_v14, %v2807_v7  ;;  %v2816_v3 = vmul.f32 0.6931472, %v3572_v60 }
0x16ad   :  { %v2823_v15 = vadd.f32 %v2813_v51, %v2795_v31 }
0x16ae   :  { %v2822_v49 = vsel %vm2821_vm9, %v2819_v44, %v2816_v3 }
0x16af   :  { %v2824_v16 = vadd.f32 %v2822_v49, %v2796_v9 }
0x16b1   :  { %v2826_v17 = vpack.c.bf16 %v2824_v16, %v2823_v15 }
0x16b3   :  { %3284 = vmatmul.mubr.msk.bf16.vlgmr.msra.gmra.mrb[64].mxu0 %vm294_vm11, %v2826_v17 }
0x16b4   :  { %3592 = shalt.err (!%p3589_p4)
}
0x16b5   :  { %s3593_s23 = scalar_lea.hbm %s4386_s4, 256 }
0x16b6   :  { %p3594_p5 = scmp.ne.s32.totalorder %s4386_s4, %s3593_s23  ;;  %p3597_p6 = scmp.lt.u32.totalorder %s3593_s23, %s4386_s4 }
0x16b8   :  { %p3599_p7 = pnand %p3597_p6, %p3594_p5 }
0x16ba   :  { %3602 = shalt.err (!%p3599_p7)
}
0x16bb   :  { %s3635_s28 = smov 128   ;;  %s3636_s29 = smov 8   ;;  %v2985_v2 = vld [vmem:[%s4385_s3 + $0xc] ss:$0 sm:$0xff]  ;;  %vm2891_vm11 = vcmask 7168  }
0x16bc   :  { %2905 = dma.vmem_to_hbm [thread:$0]  %s2900_s20, 256, %s4386_s4, [#allocation3], %s3635_s28, %s3635_s28, %s3636_s29  }
0x1786   :  { %v2872_v62 = vpop.f32.mrb[64].mxu0 }
0x1787   :  { %v2873_v6 = vadd.f32 %v2985_v2, %v2872_v62  ;;  %v3285_v18 = vpop.f32.mrb[65].mxu0 }
0x1788   :  { %v2875_v56 = vpop.f32.mrb[66].mxu0 }
0x1789   :  { %v2879_v37 = vsub.f32 0.0, %v2873_v6  ;;  %v2876_v13 = vadd.f32 %v2985_v2, %v2875_v56  ;;  %v3286_v4 = vpop.f32.mrb[67].mxu0 }
0x178b   :  { %v2881_v32 = vmul.f32 1.442695, %v2879_v37  ;;  %v2880_v19 = vsub.f32 0.0, %v2876_v13 }
0x178d   :  { %3573 = vpow2.f32 %v2881_v32  ;;  %v2883_v21 = vmul.f32 1.442695, %v2880_v19 }
0x178f   :  { %3575 = vpow2.f32 %v2883_v21 }
0x1797   :  { %v3574_v22 = vpop.eup %3573 }
0x1798   :  { %v2885_v24 = vadd.f32 1.0, %v3574_v22 }
0x1799   :  { %v3576_v25 = vpop.eup %3575 }
0x179a   :  { %3577 = vrcp.f32 %v2885_v24  ;;  %v2886_v20 = vadd.f32 1.0, %v3576_v25 }
0x179c   :  { %3579 = vrcp.f32 %v2886_v20 }
0x17a4   :  { %v3578_v26 = vpop.eup %3577 }
0x17a5   :  { %v2889_v27 = vmin.f32 %v3578_v26, 1.0 }
0x17a6   :  { %v3580_v30 = vpop.eup %3579 }
0x17a7   :  { %2892 = vst.msk [vmem:[%s4387_s5] sm:$0xff] %vm2891_vm11, %v2889_v27  ;;  %v2890_v33 = vmin.f32 %v3580_v30, 1.0 }
0x17a9   :  { %2893 = vst.msk [vmem:[%s4387_s5 + $0x8] sm:$0xff] %vm2891_vm11, %v2890_v33 }
0x17aa   :  { %3603 = dma.done.wait [#allocation3], 256  }
0x17ab   :  { %3604 = vsyncadd [#allocation3], 4294967040 }
0x17ac   :  { %2913 = vsyncpa [#allocation3], 1 }

</bundles_post_ra>
